<compile_context>
chip_gen: v5e
topology: v5e:2x2
jax: 0.10.0
libtpu: 0.0.40
codegen_flags: <defaults>
</compile_context>

<pallas_src>
import math
import functools

import jax
import jax.numpy as jnp
from jax.experimental import pallas as pl
from jax.experimental.pallas import tpu as pltpu


# ----------------------------- in-kernel math helpers -----------------------------

def _erf(x):
    # Abramowitz & Stegun 7.1.26 rational approximation, |error| <= 1.5e-7 (~f32 eps).
    # lax.erf has no Mosaic lowering; this matches torch's exact (erf) GELU to f32 eps.
    a1, a2, a3, a4, a5 = 0.254829592, -0.284496736, 1.421413741, -1.453152027, 1.061405429
    p = 0.3275911
    ax = jnp.abs(x)
    t = 1.0 / (1.0 + p * ax)
    poly = ((((a5 * t + a4) * t + a3) * t + a2) * t + a1) * t
    y = 1.0 - poly * jnp.exp(-ax * ax)
    return jnp.where(x >= 0.0, y, -y)


def _gelu(x):
    return 0.5 * x * (1.0 + _erf(x * (1.0 / math.sqrt(2.0))))


def _layernorm(x, g, b, eps=1e-5):
    mu = jnp.mean(x, axis=-1, keepdims=True)
    var = jnp.mean(jnp.square(x - mu), axis=-1, keepdims=True)
    return (x - mu) * jax.lax.rsqrt(var + eps) * g + b


# ------------------------------ fused forward kernel -------------------------------
# Row layout: R = B*(S+1) rows: [batch0: CLS, S tokens][batch1: CLS, S tokens]...
# Lane layout of the fused residual stream x:(R, 2E): lanes [0,E) = audio branch,
# lanes [E,2E) = video branch.  Global head index g in [0, 2*nhead) owns lanes
# [g*dh, (g+1)*dh).  All per-layer weights are block-diagonal over the two branches.

def _fused_forward_kernel(
        feat_ref,      # (R, Da+Dv) f32   [audio | video] token features, zero CLS rows
        pfeat_ref,     # (B, Dp)    f32   personality features
        add_ref,       # (R, 2E)    f32   PE + proj-bias (tokens) / PE + CLS token (CLS rows)
        bias_ref,      # (R, nhT*R) f32   additive block-diag batch mask, tiled per head
        hmask_ref,     # (nhT*R, 2E) f32  head-block selector for packed K / V
        smat_ref,      # (nhT*R, nhT*R) bf16  block-diagonal ones (softmax block sums)
        projw_ref,     # (Da+Dv, 2E) bf16 block-diag [audio_proj | video_proj]
        wqkv_ref,      # (L, 2E, 6E) bf16
        wo_ref,        # (L, 2E, 2E) bf16
        w1_ref,        # (L, 2E, 2F) bf16
        w2_ref,        # (L, 2F, 2E) bf16
        vec_ref,       # (L, 8, 6E)  f32  [bqkv, bo, ln1g, ln1b, b1, b2, ln2g, ln2b]
        hmat_ref,      # (Dp+D+Fh, hw) f32  [pers_w ; fusion_w1 ; fusion_w2]
        hvec_ref,      # (5, 128)    f32  [fusion_ln_g, fusion_ln_b, fusion_b1, fusion_b2, pers_b]
        o_ref,         # (B, C)
        *, nhead, n_layers, E, Sp, Dp, H, Fh, C):
    f32, bf16 = jnp.float32, jnp.bfloat16
    E2 = 2 * E
    F2 = w1_ref.shape[-1]
    nhT = 2 * nhead
    dh = E // nhead
    scale = 1.0 / math.sqrt(dh)
    B = o_ref.shape[0]
    D = E2 + H

    def mm(a, b):                           # bf16 MXU matmul, f32 accumulation
        return jnp.dot(a.astype(bf16), b.astype(bf16), preferred_element_type=f32)

    # per-branch LayerNorm over the fused (audio ‖ video) lane layout
    lane = jax.lax.broadcasted_iota(jnp.int32, (1, E2), 1)
    is_audio_lane = lane < E

    def ln_halves(x, g, b, eps=1e-5):
        xa, xv = x[:, :E], x[:, E:]
        mu_a = jnp.mean(xa, axis=-1, keepdims=True)
        mu_v = jnp.mean(xv, axis=-1, keepdims=True)
        va = jnp.mean(jnp.square(xa - mu_a), axis=-1, keepdims=True)
        vv = jnp.mean(jnp.square(xv - mu_v), axis=-1, keepdims=True)
        mu = jnp.where(is_audio_lane, mu_a, mu_v)
        var = jnp.where(is_audio_lane, va, vv)
        return (x - mu) * jax.lax.rsqrt(var + eps) * g + b

    hmask = hmask_ref[...]
    bias = bias_ref[...]
    smat = smat_ref[...]

    # ---- modality projections + CLS token + positional encoding (one matmul) ----
    x = mm(feat_ref[...], projw_ref[...]) + add_ref[...]                 # (R, 2E) f32

    # ---- fused (audio ‖ video) transformer encoder stack ----
    for l in range(n_layers):                                            # static unroll
        vec = vec_ref[l]                                                 # (8, 6E) f32
        bqkv = vec[0:1, :]
        bo = vec[1:2, :E2]
        ln1g, ln1b = vec[2:3, :E2], vec[3:4, :E2]
        b1 = vec[4:5, :F2]
        b2 = vec[5:6, :E2]
        ln2g, ln2b = vec[6:7, :E2], vec[7:8, :E2]

        qkv = mm(x, wqkv_ref[l]) + bqkv                                  # (R, 6E)
        q, k, v = qkv[:, :E2], qkv[:, E2:2 * E2], qkv[:, 2 * E2:]

        # head-expanded K / V: sublane block g holds head g's lanes only
        kexp = (jnp.concatenate([k] * nhT, axis=0) * hmask).astype(bf16)   # (nhT*R, 2E)
        vexp = (jnp.concatenate([v] * nhT, axis=0) * hmask).astype(bf16)

        # all heads' scores in ONE matmul: s[:, g*R:(g+1)*R] = q_g @ k_g^T
        s = jax.lax.dot_general(q.astype(bf16), kexp,
                                (((1,), (1,)), ((), ())),
                                preferred_element_type=f32)              # (R, nhT*R)
        s = s * scale + bias
        s = s - jnp.max(s, axis=-1, keepdims=True)       # row-global shift (exact softmax)
        p = jnp.exp(s)
        denom = mm(p, smat)                              # per-head row sums (one matmul)
        p = p * pl.reciprocal(denom, approx=True)        # EUP divide
        ctx = mm(p, vexp)                                # (R, 2E)  all heads' contexts
        attn = mm(ctx, wo_ref[l]) + bo
        x1 = ln_halves(x + attn, ln1g, ln1b)
        hmid = _gelu(mm(x1, w1_ref[l]) + b1)             # (R, 2F) — 128-lane dense
        ff = mm(hmid, w2_ref[l]) + b2
        x = ln_halves(x1 + ff, ln2g, ln2b)

    # ---- CLS rows: static row extraction (rows 0, Sp, 2Sp, ...) — no selector matmul
    cls = jnp.concatenate([x[b * Sp:b * Sp + 1, :] for b in range(B)], axis=0)   # (B, 2E)

    # ---- personality MLP + fusion head (kept f32; tiny) ----
    hmat = hmat_ref[...]
    pw = hmat[0:Dp, :H]
    fw1 = hmat[Dp:Dp + D, :Fh]
    fw2 = hmat[Dp + D:Dp + D + Fh, :C]
    fln_g = hvec_ref[0:1, :D]
    fln_b = hvec_ref[1:2, :D]
    fb1 = hvec_ref[2:3, :Fh]
    fb2 = hvec_ref[3:4, :C]
    pb = hvec_ref[4:5, :H]

    pproc = jnp.maximum(
        jnp.dot(pfeat_ref[...], pw, preferred_element_type=f32) + pb, 0.0)       # (B, H)
    comb = jnp.concatenate([cls, pproc], axis=-1)                                  # (B, D)
    hf = _layernorm(comb, fln_g, fln_b)
    hf = _gelu(jnp.dot(hf, fw1, preferred_element_type=f32) + fb1)
    logits = jnp.dot(hf, fw2, preferred_element_type=f32) + fb2
    o_ref[...] = logits.astype(o_ref.dtype)


def _full_spec(a):
    nd = a.ndim
    return pl.BlockSpec(a.shape, lambda i, nd=nd: (0,) * nd)


# --------------------------------- model forward -----------------------------------

def model_forward(packed, A_feat, V_feat, P_feat, cfg):
    E = cfg["embed_dim"]
    nhead = cfg["nhead"]
    nL = cfg["num_encoder_layers"]
    H = cfg["hidden_dim_mlp"]
    C = cfg["num_classes"]
    Fh = cfg["fusion_hidden_dim"]
    Dp = cfg["pers_dim"]

    if P_feat.ndim == 1:
        P_feat = P_feat[None, :]
    B, S, Da = A_feat.shape
    Dv = V_feat.shape[-1]
    Sp = S + 1
    R = B * Sp
    nhT = 2 * nhead

    # ---- tiny host-side glue (static shapes; fused / const-folded by XLA) ----
    a_flat = jnp.pad(A_feat, ((0, 0), (1, 0), (0, 0))).reshape(R, Da)    # zero CLS rows
    v_flat = jnp.pad(V_feat, ((0, 0), (1, 0), (0, 0))).reshape(R, Dv)
    feat = jnp.concatenate([a_flat, v_flat], axis=-1).astype(jnp.float32)   # (R, Da+Dv)

    pe = packed["pe"][:Sp]                                                # (Sp, E)
    base_a = (pe + packed["audio_proj_b"]).at[0, :].set(pe[0] + packed["cls_audio"][0])
    base_v = (pe + packed["video_proj_b"]).at[0, :].set(pe[0] + packed["cls_video"][0])
    add = jnp.tile(jnp.concatenate([base_a, base_v], axis=-1), (B, 1))    # (R, 2E)

    bid = jnp.repeat(jnp.arange(B, dtype=jnp.int32), Sp)
    bias = jnp.where(bid[:, None] == bid[None, :], 0.0, -1e30).astype(jnp.float32)
    bias_packed = jnp.tile(bias, (1, nhT))                                # (R, nhT*R)

    g_row = jnp.repeat(jnp.arange(nhT, dtype=jnp.int32), R)               # (nhT*R,)
    g_col = jnp.arange(2 * E, dtype=jnp.int32) // (E // nhead)            # (2E,)
    hmask = (g_row[:, None] == g_col[None, :]).astype(jnp.float32)        # (nhT*R, 2E)
    smat = (g_row[:, None] == g_row[None, :]).astype(jnp.bfloat16)        # (nhT*R, nhT*R)

    args = (feat, P_feat.astype(jnp.float32), add, bias_packed, hmask, smat,
            packed["projw"], packed["wqkv"], packed["wo"], packed["w1"], packed["w2"],
            packed["vecs"], packed["hmat"], packed["hvec"])

    kernel = functools.partial(_fused_forward_kernel, nhead=nhead, n_layers=nL,
                               E=E, Sp=Sp, Dp=Dp, H=H, Fh=Fh, C=C)
    return pl.pallas_call(
        kernel,
        out_shape=jax.ShapeDtypeStruct((B, C), jnp.float32),
        grid=(1,),
        in_specs=[_full_spec(a) for a in args],
        out_specs=pl.BlockSpec((B, C), lambda i: (0, 0)),
        compiler_params=pltpu.CompilerParams(dimension_semantics=("arbitrary",)),
    )(*args)


# ------------------------------- parameters / buffers ------------------------------

def make_positional_encoding(max_len, d_model):
    position = jnp.arange(max_len, dtype=jnp.float32)[:, None]
    div_term = jnp.exp(jnp.arange(0, d_model, 2, dtype=jnp.float32) *
                       (-math.log(10000.0) / d_model))
    pe = jnp.zeros((max_len, d_model), jnp.float32)
    pe = pe.at[:, 0::2].set(jnp.sin(position * div_term))
    pe = pe.at[:, 1::2].set(jnp.cos(position * div_term))
    return pe


def init_params(key, cfg):
    """Raw per-branch parameters ((in,out) weights, (1,N) biases, encoder layers stacked
    along a leading dim: audio layers first, then video)."""
    E, F = cfg["embed_dim"], cfg["dim_feedforward"]
    H = cfg["hidden_dim_mlp"]
    D = 2 * E + H
    L = 2 * cfg["num_encoder_layers"]
    Fh = cfg["fusion_hidden_dim"]
    C = cfg["num_classes"]

    keys = iter(jax.random.split(key, 64))
    nrm = lambda shp, s: s * jax.random.normal(next(keys), shp, jnp.float32)

    p = {}
    p["cls_audio"] = nrm((1, E), 0.02)
    p["cls_video"] = nrm((1, E), 0.02)
    p["pe"] = make_positional_encoding(cfg["max_len"] + 1, E)
    p["audio_proj_w"] = nrm((cfg["audio_dim"], E), 0.05)
    p["audio_proj_b"] = nrm((1, E), 0.02)
    p["video_proj_w"] = nrm((cfg["video_dim"], E), 0.05)
    p["video_proj_b"] = nrm((1, E), 0.02)
    p["wq"] = nrm((L, E, E), 0.05); p["bq"] = nrm((L, 1, E), 0.02)
    p["wk"] = nrm((L, E, E), 0.05); p["bk"] = nrm((L, 1, E), 0.02)
    p["wv"] = nrm((L, E, E), 0.05); p["bv"] = nrm((L, 1, E), 0.02)
    p["wo"] = nrm((L, E, E), 0.05); p["bo"] = nrm((L, 1, E), 0.02)
    p["ln1g"] = 1.0 + nrm((L, 1, E), 0.02); p["ln1b"] = nrm((L, 1, E), 0.02)
    p["w1"] = nrm((L, E, F), 0.05); p["b1"] = nrm((L, 1, F), 0.02)
    p["w2"] = nrm((L, F, E), 0.05); p["b2"] = nrm((L, 1, E), 0.02)
    p["ln2g"] = 1.0 + nrm((L, 1, E), 0.02); p["ln2b"] = nrm((L, 1, E), 0.02)
    p["pers_w"] = nrm((cfg["pers_dim"], H), 0.05)
    p["pers_b"] = nrm((1, H), 0.02)
    p["fusion_ln_g"] = 1.0 + nrm((1, D), 0.02)
    p["fusion_ln_b"] = nrm((1, D), 0.02)
    p["fusion_w1"] = nrm((D, Fh), 0.05); p["fusion_b1"] = nrm((1, Fh), 0.02)
    p["fusion_w2"] = nrm((Fh, C), 0.05); p["fusion_b2"] = nrm((1, C), 0.02)
    return p


def pack_params(p, cfg):
    """Kernel-ready layout, built ONCE: block-diagonal (audio ‖ video) fused-layer
    weights in bf16 plus a handful of lane-dense f32 vector slabs."""
    E, F = cfg["embed_dim"], cfg["dim_feedforward"]
    nL = cfg["num_encoder_layers"]
    H, Fh, C, Dp = cfg["hidden_dim_mlp"], cfg["fusion_hidden_dim"], cfg["num_classes"], cfg["pers_dim"]
    bf16 = jnp.bfloat16

    def bdiag(a, b):
        ia, oa = a.shape
        ib, ob = b.shape
        z = jnp.zeros((ia + ib, oa + ob), jnp.float32)
        return z.at[:ia, :oa].set(a).at[ia:, oa:].set(b)

    def lanepad(v, w):
        return jnp.pad(v, ((0, 0), (0, w - v.shape[-1])))

    wqkv, wo, w1, w2, vecs = [], [], [], [], []
    for l in range(nL):
        la, lv = l, nL + l                       # audio layer l, video layer l
        cat = lambda name: jnp.concatenate([p[name][la], p[name][lv]], axis=-1)
        wqkv.append(jnp.concatenate([bdiag(p["wq"][la], p["wq"][lv]),
                                     bdiag(p["wk"][la], p["wk"][lv]),
                                     bdiag(p["wv"][la], p["wv"][lv])], axis=-1))   # (2E,6E)
        wo.append(bdiag(p["wo"][la], p["wo"][lv]))                                 # (2E,2E)
        w1.append(bdiag(p["w1"][la], p["w1"][lv]))                                 # (2E,2F)
        w2.append(bdiag(p["w2"][la], p["w2"][lv]))                                 # (2F,2E)
        bqkv = jnp.concatenate([cat("bq"), cat("bk"), cat("bv")], axis=-1)         # (1,6E)
        vecs.append(jnp.concatenate(
            [bqkv] + [lanepad(cat(n), 6 * E)
                      for n in ("bo", "ln1g", "ln1b", "b1", "b2", "ln2g", "ln2b")],
            axis=0))                                                               # (8,6E)

    hw = max(H, Fh, C)
    hmat = jnp.concatenate([lanepad(p["pers_w"], hw),
                            lanepad(p["fusion_w1"], hw),
                            lanepad(p["fusion_w2"], hw)], axis=0)                  # (Dp+D+Fh,hw)
    hvec = jnp.concatenate([lanepad(v, 128) for v in
                            (p["fusion_ln_g"], p["fusion_ln_b"],
                             p["fusion_b1"], p["fusion_b2"], p["pers_b"])], axis=0)  # (5,128)

    return dict(
        pe=p["pe"], cls_audio=p["cls_audio"], cls_video=p["cls_video"],
        audio_proj_b=p["audio_proj_b"], video_proj_b=p["video_proj_b"],
        projw=bdiag(p["audio_proj_w"], p["video_proj_w"]).astype(bf16),
        wqkv=jnp.stack(wqkv).astype(bf16),
        wo=jnp.stack(wo).astype(bf16),
        w1=jnp.stack(w1).astype(bf16),
        w2=jnp.stack(w2).astype(bf16),
        vecs=jnp.stack(vecs).astype(jnp.float32),
        hmat=hmat.astype(jnp.float32),
        hvec=hvec.astype(jnp.float32))


# ---------------------------- pure-JAX reference (check) ---------------------------

def ref_forward(params, A_feat, V_feat, P_feat, cfg):
    hp = jax.lax.Precision.HIGHEST
    E, nhead, nlayers = cfg["embed_dim"], cfg["nhead"], cfg["num_encoder_layers"]
    dh = E // nhead
    if P_feat.ndim == 1:
        P_feat = P_feat[None, :]
    B, S, _ = A_feat.shape
    Sp = S + 1
    pe = params["pe"][:Sp]

    def gelu(x):
        return 0.5 * x * (1.0 + jax.scipy.special.erf(x / jnp.sqrt(jnp.float32(2.0))))

    def layernorm(x, g, b):
        mu = jnp.mean(x, axis=-1, keepdims=True)
        var = jnp.mean((x - mu) ** 2, axis=-1, keepdims=True)
        return (x - mu) / jnp.sqrt(var + 1e-5) * g + b

    def enc_layer(x, idx):
        q = jnp.einsum("bse,ef->bsf", x, params["wq"][idx], precision=hp) + params["bq"][idx, 0]
        k = jnp.einsum("bse,ef->bsf", x, params["wk"][idx], precision=hp) + params["bk"][idx, 0]
        v = jnp.einsum("bse,ef->bsf", x, params["wv"][idx], precision=hp) + params["bv"][idx, 0]
        q = q.reshape(B, Sp, nhead, dh).transpose(0, 2, 1, 3)
        k = k.reshape(B, Sp, nhead, dh).transpose(0, 2, 1, 3)
        v = v.reshape(B, Sp, nhead, dh).transpose(0, 2, 1, 3)
        s = jnp.einsum("bhqd,bhkd->bhqk", q, k, precision=hp) / jnp.sqrt(jnp.float32(dh))
        p = jax.nn.softmax(s, axis=-1)
        o = jnp.einsum("bhqk,bhkd->bhqd", p, v, precision=hp).transpose(0, 2, 1, 3).reshape(B, Sp, E)
        attn = jnp.einsum("bse,ef->bsf", o, params["wo"][idx], precision=hp) + params["bo"][idx, 0]
        x1 = layernorm(x + attn, params["ln1g"][idx, 0], params["ln1b"][idx, 0])
        h = gelu(jnp.einsum("bse,ef->bsf", x1, params["w1"][idx], precision=hp) + params["b1"][idx, 0])
        ff = jnp.einsum("bsf,fe->bse", h, params["w2"][idx], precision=hp) + params["b2"][idx, 0]
        return layernorm(x1 + ff, params["ln2g"][idx, 0], params["ln2b"][idx, 0])

    def branch(feat, pw, pb, cls_tok, layer0):
        proj = jnp.einsum("bsd,de->bse", feat, pw, precision=hp) + pb[0]
        x = jnp.concatenate([jnp.broadcast_to(cls_tok[None], (B, 1, E)), proj], axis=1)
        x = x + pe[None]
        for l in range(nlayers):
            x = enc_layer(x, layer0 + l)
        return x[:, 0]

    A_agg = branch(A_feat, params["audio_proj_w"], params["audio_proj_b"],
                   params["cls_audio"], 0)
    V_agg = branch(V_feat, params["video_proj_w"], params["video_proj_b"],
                   params["cls_video"], nlayers)
    P_proc = jnp.maximum(
        jnp.einsum("bd,dh->bh", P_feat, params["pers_w"], precision=hp)
        + params["pers_b"][0], 0.0)
    comb = jnp.concatenate([A_agg, V_agg, P_proc], axis=1)
    h = layernorm(comb, params["fusion_ln_g"][0], params["fusion_ln_b"][0])
    h = gelu(jnp.einsum("bd,df->bf", h, params["fusion_w1"], precision=hp)
             + params["fusion_b1"][0])
    return (jnp.einsum("bf,fc->bc", h, params["fusion_w2"], precision=hp)
            + params["fusion_b2"][0])


# -------------------------------------- main ---------------------------------------

if __name__ == "__main__":
    cfg = dict(audio_dim=20, video_dim=24, pers_dim=12, embed_dim=32, nhead=4,
               num_encoder_layers=2, dim_feedforward=64, hidden_dim_mlp=16,
               num_classes=5, max_len=8, fusion_hidden_dim=48)

    key = jax.random.PRNGKey(0)
    kparams, ka, kv, kp = jax.random.split(key, 4)
    params = init_params(kparams, cfg)
    packed = pack_params(params, cfg)          # kernel-ready slabs, built once

    B, S = 2, cfg["max_len"]
    A_feat = jax.random.normal(ka, (B, S, cfg["audio_dim"]), jnp.float32)
    V_feat = jax.random.normal(kv, (B, S, cfg["video_dim"]), jnp.float32)
    P_feat = jax.random.normal(kp, (B, cfg["pers_dim"]), jnp.float32)

    fwd = jax.jit(functools.partial(model_forward, cfg=cfg))
    logits = jax.block_until_ready(fwd(packed, A_feat, V_feat, P_feat))

    ref = jax.block_until_ready(ref_forward(params, A_feat, V_feat, P_feat, cfg))
    assert logits.shape == (B, cfg["num_classes"])
    assert bool(jnp.allclose(logits, ref, rtol=2e-2, atol=2e-2)), (logits, ref)

    print("KERNEL_OK")
</pallas_src>

<mosaic_0001>
module attributes {stable_mosaic.version = 11 : i64} {
  func.func @_fused_forward_kernel(%arg0: i32, %arg1: memref<18x44xf32, #tpu.memory_space<vmem>>, %arg2: memref<2x12xf32, #tpu.memory_space<vmem>>, %arg3: memref<18x64xf32, #tpu.memory_space<vmem>>, %arg4: memref<18x144xf32, #tpu.memory_space<vmem>>, %arg5: memref<144x64xf32, #tpu.memory_space<vmem>>, %arg6: memref<144x144xbf16, #tpu.memory_space<vmem>>, %arg7: memref<44x64xbf16, #tpu.memory_space<vmem>>, %arg8: memref<2x64x192xbf16, #tpu.memory_space<vmem>>, %arg9: memref<2x64x64xbf16, #tpu.memory_space<vmem>>, %arg10: memref<2x64x128xbf16, #tpu.memory_space<vmem>>, %arg11: memref<2x128x64xbf16, #tpu.memory_space<vmem>>, %arg12: memref<2x8x192xf32, #tpu.memory_space<vmem>>, %arg13: memref<140x48xf32, #tpu.memory_space<vmem>>, %arg14: memref<5x128xf32, #tpu.memory_space<vmem>>, %arg15: memref<2x5xf32, #tpu.memory_space<vmem>>) attributes {dimension_semantics = [#tpu.dimension_semantics<arbitrary>], iteration_bounds = array<i64: 1>, scalar_prefetch = 0 : i64, scratch_operands = 0 : i64, tpu.core_type = #tpu.core_type<tc>, window_params = [{pipeline_mode = #tpu.pipeline_mode<synchronous>, transform_indices = @transform_0, window_bounds = array<i64: 18, 44>}, {pipeline_mode = #tpu.pipeline_mode<synchronous>, transform_indices = @transform_1, window_bounds = array<i64: 2, 12>}, {pipeline_mode = #tpu.pipeline_mode<synchronous>, transform_indices = @transform_2, window_bounds = array<i64: 18, 64>}, {pipeline_mode = #tpu.pipeline_mode<synchronous>, transform_indices = @transform_3, window_bounds = array<i64: 18, 144>}, {pipeline_mode = #tpu.pipeline_mode<synchronous>, transform_indices = @transform_4, window_bounds = array<i64: 144, 64>}, {pipeline_mode = #tpu.pipeline_mode<synchronous>, transform_indices = @transform_5, window_bounds = array<i64: 144, 144>}, {pipeline_mode = #tpu.pipeline_mode<synchronous>, transform_indices = @transform_6, window_bounds = array<i64: 44, 64>}, {pipeline_mode = #tpu.pipeline_mode<synchronous>, transform_indices = @transform_7, window_bounds = array<i64: 2, 64, 192>}, {pipeline_mode = #tpu.pipeline_mode<synchronous>, transform_indices = @transform_8, window_bounds = array<i64: 2, 64, 64>}, {pipeline_mode = #tpu.pipeline_mode<synchronous>, transform_indices = @transform_9, window_bounds = array<i64: 2, 64, 128>}, {pipeline_mode = #tpu.pipeline_mode<synchronous>, transform_indices = @transform_10, window_bounds = array<i64: 2, 128, 64>}, {pipeline_mode = #tpu.pipeline_mode<synchronous>, transform_indices = @transform_11, window_bounds = array<i64: 2, 8, 192>}, {pipeline_mode = #tpu.pipeline_mode<synchronous>, transform_indices = @transform_12, window_bounds = array<i64: 140, 48>}, {pipeline_mode = #tpu.pipeline_mode<synchronous>, transform_indices = @transform_13, window_bounds = array<i64: 5, 128>}, {pipeline_mode = #tpu.pipeline_mode<synchronous>, transform_indices = @transform_14, window_bounds = array<i64: 2, 5>}]} {
    %0 = tpu.iota {dimensions = array<i32: 1>} : vector<1x64xi32>
    %c32_i32 = arith.constant 32 : i32
    %1 = vector.broadcast %c32_i32 : i32 to vector<1x64xi32>
    %2 = arith.cmpi slt, %0, %1 : vector<1x64xi32>
    %c0 = arith.constant 0 : index
    %c0_0 = arith.constant 0 : index
    %3 = vector.load %arg5[%c0, %c0_0] : memref<144x64xf32, #tpu.memory_space<vmem>>, vector<144x64xf32>
    %c0_1 = arith.constant 0 : index
    %c0_2 = arith.constant 0 : index
    %4 = vector.load %arg4[%c0_1, %c0_2] : memref<18x144xf32, #tpu.memory_space<vmem>>, vector<18x144xf32>
    %c0_3 = arith.constant 0 : index
    %c0_4 = arith.constant 0 : index
    %5 = vector.load %arg6[%c0_3, %c0_4] : memref<144x144xbf16, #tpu.memory_space<vmem>>, vector<144x144xbf16>
    %c0_5 = arith.constant 0 : index
    %c0_6 = arith.constant 0 : index
    %6 = vector.load %arg1[%c0_5, %c0_6] : memref<18x44xf32, #tpu.memory_space<vmem>>, vector<18x44xf32>
    %c0_7 = arith.constant 0 : index
    %c0_8 = arith.constant 0 : index
    %7 = vector.load %arg7[%c0_7, %c0_8] : memref<44x64xbf16, #tpu.memory_space<vmem>>, vector<44x64xbf16>
    %8 = arith.truncf %6 : vector<18x44xf32> to vector<18x44xbf16>
    %cst = arith.constant dense<0.000000e+00> : vector<18x64xf32>
    %9 = tpu.matmul %8, %7, %cst {dimension_numbers = #tpu.dot_dimension_numbers<[1], [0], [0], [1], [0, 0, 1, 1], [], []>} : vector<18x44xbf16>, vector<44x64xbf16>, vector<18x64xf32> -> vector<18x64xf32>
    %c0_9 = arith.constant 0 : index
    %c0_10 = arith.constant 0 : index
    %10 = vector.load %arg3[%c0_9, %c0_10] : memref<18x64xf32, #tpu.memory_space<vmem>>, vector<18x64xf32>
    %11 = arith.addf %9, %10 : vector<18x64xf32>
    %c0_11 = arith.constant 0 : index
    %c0_12 = arith.constant 0 : index
    %c0_13 = arith.constant 0 : index
    %12 = vector.load %arg12[%c0_11, %c0_12, %c0_13] : memref<2x8x192xf32, #tpu.memory_space<vmem>>, vector<1x8x192xf32>
    %13 = vector.shape_cast %12 : vector<1x8x192xf32> to vector<8x192xf32>
    %14 = vector.extract_strided_slice %13 {offsets = [0, 0], sizes = [1, 192], strides = [1, 1]} : vector<8x192xf32> to vector<1x192xf32>
    %15 = vector.extract_strided_slice %13 {offsets = [1, 0], sizes = [1, 64], strides = [1, 1]} : vector<8x192xf32> to vector<1x64xf32>
    %16 = vector.extract_strided_slice %13 {offsets = [2, 0], sizes = [1, 64], strides = [1, 1]} : vector<8x192xf32> to vector<1x64xf32>
    %17 = vector.extract_strided_slice %13 {offsets = [3, 0], sizes = [1, 64], strides = [1, 1]} : vector<8x192xf32> to vector<1x64xf32>
    %18 = vector.extract_strided_slice %13 {offsets = [4, 0], sizes = [1, 128], strides = [1, 1]} : vector<8x192xf32> to vector<1x128xf32>
    %19 = vector.extract_strided_slice %13 {offsets = [5, 0], sizes = [1, 64], strides = [1, 1]} : vector<8x192xf32> to vector<1x64xf32>
    %20 = vector.extract_strided_slice %13 {offsets = [6, 0], sizes = [1, 64], strides = [1, 1]} : vector<8x192xf32> to vector<1x64xf32>
    %21 = vector.extract_strided_slice %13 {offsets = [7, 0], sizes = [1, 64], strides = [1, 1]} : vector<8x192xf32> to vector<1x64xf32>
    %c0_14 = arith.constant 0 : index
    %c0_15 = arith.constant 0 : index
    %c0_16 = arith.constant 0 : index
    %22 = vector.load %arg8[%c0_14, %c0_15, %c0_16] : memref<2x64x192xbf16, #tpu.memory_space<vmem>>, vector<1x64x192xbf16>
    %23 = vector.shape_cast %22 : vector<1x64x192xbf16> to vector<64x192xbf16>
    %24 = arith.truncf %11 : vector<18x64xf32> to vector<18x64xbf16>
    %cst_17 = arith.constant dense<0.000000e+00> : vector<18x192xf32>
    %25 = tpu.matmul %24, %23, %cst_17 {dimension_numbers = #tpu.dot_dimension_numbers<[1], [0], [0], [1], [0, 0, 1, 1], [], []>} : vector<18x64xbf16>, vector<64x192xbf16>, vector<18x192xf32> -> vector<18x192xf32>
    %26 = vector.broadcast %14 : vector<1x192xf32> to vector<18x192xf32>
    %27 = arith.addf %25, %26 : vector<18x192xf32>
    %28 = vector.extract_strided_slice %27 {offsets = [0, 0], sizes = [18, 64], strides = [1, 1]} : vector<18x192xf32> to vector<18x64xf32>
    %29 = vector.extract_strided_slice %27 {offsets = [0, 64], sizes = [18, 64], strides = [1, 1]} : vector<18x192xf32> to vector<18x64xf32>
    %30 = vector.extract_strided_slice %27 {offsets = [0, 128], sizes = [18, 64], strides = [1, 1]} : vector<18x192xf32> to vector<18x64xf32>
    %31 = tpu.concatenate %29, %29, %29, %29, %29, %29, %29, %29 in 0 : vector<18x64xf32>, vector<18x64xf32>, vector<18x64xf32>, vector<18x64xf32>, vector<18x64xf32>, vector<18x64xf32>, vector<18x64xf32>, vector<18x64xf32> -> vector<144x64xf32>
    %32 = arith.mulf %31, %3 : vector<144x64xf32>
    %33 = arith.truncf %32 : vector<144x64xf32> to vector<144x64xbf16>
    %34 = tpu.concatenate %30, %30, %30, %30, %30, %30, %30, %30 in 0 : vector<18x64xf32>, vector<18x64xf32>, vector<18x64xf32>, vector<18x64xf32>, vector<18x64xf32>, vector<18x64xf32>, vector<18x64xf32>, vector<18x64xf32> -> vector<144x64xf32>
    %35 = arith.mulf %34, %3 : vector<144x64xf32>
    %36 = arith.truncf %35 : vector<144x64xf32> to vector<144x64xbf16>
    %37 = arith.truncf %28 : vector<18x64xf32> to vector<18x64xbf16>
    %cst_18 = arith.constant dense<0.000000e+00> : vector<18x144xf32>
    %38 = tpu.matmul %37, %33, %cst_18 {dimension_numbers = #tpu.dot_dimension_numbers<[1], [1], [0], [0], [0, 0, 1, 0], [], []>} : vector<18x64xbf16>, vector<144x64xbf16>, vector<18x144xf32> -> vector<18x144xf32>
    %cst_19 = arith.constant 0.353553385 : f32
    %39 = vector.broadcast %cst_19 : f32 to vector<18x144xf32>
    %40 = arith.mulf %38, %39 : vector<18x144xf32>
    %41 = arith.addf %40, %4 : vector<18x144xf32>
    %cst_20 = arith.constant dense<0xFF800000> : vector<18xf32>
    %42 = vector.multi_reduction <maximumf>, %41, %cst_20 [1] : vector<18x144xf32> to vector<18xf32>
    %43 = vector.shape_cast %42 : vector<18xf32> to vector<18x1xf32>
    %44 = vector.broadcast %43 : vector<18x1xf32> to vector<18x144xf32>
    %45 = arith.subf %41, %44 : vector<18x144xf32>
    %46 = math.exp %45 : vector<18x144xf32>
    %47 = arith.truncf %46 : vector<18x144xf32> to vector<18x144xbf16>
    %cst_21 = arith.constant dense<0.000000e+00> : vector<18x144xf32>
    %48 = tpu.matmul %47, %5, %cst_21 {dimension_numbers = #tpu.dot_dimension_numbers<[1], [0], [0], [1], [0, 0, 1, 1], [], []>} : vector<18x144xbf16>, vector<144x144xbf16>, vector<18x144xf32> -> vector<18x144xf32>
    %49 = tpu.reciprocal %48 {approx = true} : vector<18x144xf32> -> vector<18x144xf32>
    %50 = arith.mulf %46, %49 : vector<18x144xf32>
    %51 = arith.truncf %50 : vector<18x144xf32> to vector<18x144xbf16>
    %cst_22 = arith.constant dense<0.000000e+00> : vector<18x64xf32>
    %52 = tpu.matmul %51, %36, %cst_22 {dimension_numbers = #tpu.dot_dimension_numbers<[1], [0], [0], [1], [0, 0, 1, 1], [], []>} : vector<18x144xbf16>, vector<144x64xbf16>, vector<18x64xf32> -> vector<18x64xf32>
    %c0_23 = arith.constant 0 : index
    %c0_24 = arith.constant 0 : index
    %c0_25 = arith.constant 0 : index
    %53 = vector.load %arg9[%c0_23, %c0_24, %c0_25] : memref<2x64x64xbf16, #tpu.memory_space<vmem>>, vector<1x64x64xbf16>
    %54 = vector.shape_cast %53 : vector<1x64x64xbf16> to vector<64x64xbf16>
    %55 = arith.truncf %52 : vector<18x64xf32> to vector<18x64xbf16>
    %cst_26 = arith.constant dense<0.000000e+00> : vector<18x64xf32>
    %56 = tpu.matmul %55, %54, %cst_26 {dimension_numbers = #tpu.dot_dimension_numbers<[1], [0], [0], [1], [0, 0, 1, 1], [], []>} : vector<18x64xbf16>, vector<64x64xbf16>, vector<18x64xf32> -> vector<18x64xf32>
    %57 = vector.broadcast %15 : vector<1x64xf32> to vector<18x64xf32>
    %58 = arith.addf %56, %57 : vector<18x64xf32>
    %59 = arith.addf %11, %58 : vector<18x64xf32>
    %60 = vector.extract_strided_slice %59 {offsets = [0, 0], sizes = [18, 32], strides = [1, 1]} : vector<18x64xf32> to vector<18x32xf32>
    %61 = vector.extract_strided_slice %59 {offsets = [0, 32], sizes = [18, 32], strides = [1, 1]} : vector<18x64xf32> to vector<18x32xf32>
    %cst_27 = arith.constant dense<0.000000e+00> : vector<18xf32>
    %62 = vector.multi_reduction <add>, %60, %cst_27 [1] : vector<18x32xf32> to vector<18xf32>
    %63 = vector.shape_cast %62 : vector<18xf32> to vector<18x1xf32>
    %cst_28 = arith.constant 3.200000e+01 : f32
    %64 = vector.broadcast %cst_28 : f32 to vector<18x1xf32>
    %65 = arith.divf %63, %64 : vector<18x1xf32>
    %cst_29 = arith.constant dense<0.000000e+00> : vector<18xf32>
    %66 = vector.multi_reduction <add>, %61, %cst_29 [1] : vector<18x32xf32> to vector<18xf32>
    %67 = vector.shape_cast %66 : vector<18xf32> to vector<18x1xf32>
    %cst_30 = arith.constant 3.200000e+01 : f32
    %68 = vector.broadcast %cst_30 : f32 to vector<18x1xf32>
    %69 = arith.divf %67, %68 : vector<18x1xf32>
    %70 = vector.broadcast %65 : vector<18x1xf32> to vector<18x32xf32>
    %71 = arith.subf %60, %70 : vector<18x32xf32>
    %72 = arith.mulf %71, %71 : vector<18x32xf32>
    %cst_31 = arith.constant dense<0.000000e+00> : vector<18xf32>
    %73 = vector.multi_reduction <add>, %72, %cst_31 [1] : vector<18x32xf32> to vector<18xf32>
    %74 = vector.shape_cast %73 : vector<18xf32> to vector<18x1xf32>
    %cst_32 = arith.constant 3.200000e+01 : f32
    %75 = vector.broadcast %cst_32 : f32 to vector<18x1xf32>
    %76 = arith.divf %74, %75 : vector<18x1xf32>
    %77 = vector.broadcast %69 : vector<18x1xf32> to vector<18x32xf32>
    %78 = arith.subf %61, %77 : vector<18x32xf32>
    %79 = arith.mulf %78, %78 : vector<18x32xf32>
    %cst_33 = arith.constant dense<0.000000e+00> : vector<18xf32>
    %80 = vector.multi_reduction <add>, %79, %cst_33 [1] : vector<18x32xf32> to vector<18xf32>
    %81 = vector.shape_cast %80 : vector<18xf32> to vector<18x1xf32>
    %cst_34 = arith.constant 3.200000e+01 : f32
    %82 = vector.broadcast %cst_34 : f32 to vector<18x1xf32>
    %83 = arith.divf %81, %82 : vector<18x1xf32>
    %84 = vector.shape_cast %2 : vector<1x64xi1> to vector<1x64xi1>
    %85 = vector.broadcast %84 : vector<1x64xi1> to vector<18x64xi1>
    %86 = vector.shape_cast %65 : vector<18x1xf32> to vector<18x1xf32>
    %87 = vector.broadcast %86 : vector<18x1xf32> to vector<18x64xf32>
    %88 = vector.shape_cast %69 : vector<18x1xf32> to vector<18x1xf32>
    %89 = vector.broadcast %88 : vector<18x1xf32> to vector<18x64xf32>
    %90 = arith.select %85, %87, %89 : vector<18x64xi1>, vector<18x64xf32>
    %91 = vector.shape_cast %2 : vector<1x64xi1> to vector<1x64xi1>
    %92 = vector.broadcast %91 : vector<1x64xi1> to vector<18x64xi1>
    %93 = vector.shape_cast %76 : vector<18x1xf32> to vector<18x1xf32>
    %94 = vector.broadcast %93 : vector<18x1xf32> to vector<18x64xf32>
    %95 = vector.shape_cast %83 : vector<18x1xf32> to vector<18x1xf32>
    %96 = vector.broadcast %95 : vector<18x1xf32> to vector<18x64xf32>
    %97 = arith.select %92, %94, %96 : vector<18x64xi1>, vector<18x64xf32>
    %98 = arith.subf %59, %90 : vector<18x64xf32>
    %cst_35 = arith.constant 9.99999974E-6 : f32
    %99 = vector.broadcast %cst_35 : f32 to vector<18x64xf32>
    %100 = arith.addf %97, %99 : vector<18x64xf32>
    %101 = math.rsqrt %100 : vector<18x64xf32>
    %102 = arith.mulf %98, %101 : vector<18x64xf32>
    %103 = vector.broadcast %16 : vector<1x64xf32> to vector<18x64xf32>
    %104 = arith.mulf %102, %103 : vector<18x64xf32>
    %105 = vector.broadcast %17 : vector<1x64xf32> to vector<18x64xf32>
    %106 = arith.addf %104, %105 : vector<18x64xf32>
    %c0_36 = arith.constant 0 : index
    %c0_37 = arith.constant 0 : index
    %c0_38 = arith.constant 0 : index
    %107 = vector.load %arg10[%c0_36, %c0_37, %c0_38] : memref<2x64x128xbf16, #tpu.memory_space<vmem>>, vector<1x64x128xbf16>
    %108 = vector.shape_cast %107 : vector<1x64x128xbf16> to vector<64x128xbf16>
    %109 = arith.truncf %106 : vector<18x64xf32> to vector<18x64xbf16>
    %cst_39 = arith.constant dense<0.000000e+00> : vector<18x128xf32>
    %110 = tpu.matmul %109, %108, %cst_39 {dimension_numbers = #tpu.dot_dimension_numbers<[1], [0], [0], [1], [0, 0, 1, 1], [], []>} : vector<18x64xbf16>, vector<64x128xbf16>, vector<18x128xf32> -> vector<18x128xf32>
    %111 = vector.broadcast %18 : vector<1x128xf32> to vector<18x128xf32>
    %112 = arith.addf %110, %111 : vector<18x128xf32>
    %cst_40 = arith.constant 5.000000e-01 : f32
    %113 = vector.broadcast %cst_40 : f32 to vector<18x128xf32>
    %114 = arith.mulf %113, %112 : vector<18x128xf32>
    %cst_41 = arith.constant 0.707106769 : f32
    %115 = vector.broadcast %cst_41 : f32 to vector<18x128xf32>
    %116 = arith.mulf %112, %115 : vector<18x128xf32>
    %117 = math.absf %116 : vector<18x128xf32>
    %cst_42 = arith.constant 0.327591091 : f32
    %118 = vector.broadcast %cst_42 : f32 to vector<18x128xf32>
    %119 = arith.mulf %118, %117 : vector<18x128xf32>
    %cst_43 = arith.constant 1.000000e+00 : f32
    %120 = vector.broadcast %cst_43 : f32 to vector<18x128xf32>
    %121 = arith.addf %120, %119 : vector<18x128xf32>
    %cst_44 = arith.constant 1.000000e+00 : f32
    %122 = vector.broadcast %cst_44 : f32 to vector<18x128xf32>
    %123 = arith.divf %122, %121 : vector<18x128xf32>
    %cst_45 = arith.constant 1.06140542 : f32
    %124 = vector.broadcast %cst_45 : f32 to vector<18x128xf32>
    %125 = arith.mulf %124, %123 : vector<18x128xf32>
    %cst_46 = arith.constant -1.45315206 : f32
    %126 = vector.broadcast %cst_46 : f32 to vector<18x128xf32>
    %127 = arith.addf %125, %126 : vector<18x128xf32>
    %128 = arith.mulf %127, %123 : vector<18x128xf32>
    %cst_47 = arith.constant 1.42141378 : f32
    %129 = vector.broadcast %cst_47 : f32 to vector<18x128xf32>
    %130 = arith.addf %128, %129 : vector<18x128xf32>
    %131 = arith.mulf %130, %123 : vector<18x128xf32>
    %cst_48 = arith.constant -0.284496725 : f32
    %132 = vector.broadcast %cst_48 : f32 to vector<18x128xf32>
    %133 = arith.addf %131, %132 : vector<18x128xf32>
    %134 = arith.mulf %133, %123 : vector<18x128xf32>
    %cst_49 = arith.constant 0.254829586 : f32
    %135 = vector.broadcast %cst_49 : f32 to vector<18x128xf32>
    %136 = arith.addf %134, %135 : vector<18x128xf32>
    %137 = arith.mulf %136, %123 : vector<18x128xf32>
    %cst_50 = arith.constant 0.000000e+00 : f32
    %138 = vector.broadcast %cst_50 : f32 to vector<18x128xf32>
    %139 = arith.subf %138, %117 : vector<18x128xf32>
    %140 = arith.mulf %139, %117 : vector<18x128xf32>
    %141 = math.exp %140 : vector<18x128xf32>
    %142 = arith.mulf %137, %141 : vector<18x128xf32>
    %cst_51 = arith.constant 1.000000e+00 : f32
    %143 = vector.broadcast %cst_51 : f32 to vector<18x128xf32>
    %144 = arith.subf %143, %142 : vector<18x128xf32>
    %cst_52 = arith.constant 0.000000e+00 : f32
    %145 = vector.broadcast %cst_52 : f32 to vector<18x128xf32>
    %146 = arith.cmpf oge, %116, %145 : vector<18x128xf32>
    %cst_53 = arith.constant 0.000000e+00 : f32
    %147 = vector.broadcast %cst_53 : f32 to vector<18x128xf32>
    %148 = arith.subf %147, %144 : vector<18x128xf32>
    %149 = arith.select %146, %144, %148 : vector<18x128xi1>, vector<18x128xf32>
    %cst_54 = arith.constant 1.000000e+00 : f32
    %150 = vector.broadcast %cst_54 : f32 to vector<18x128xf32>
    %151 = arith.addf %150, %149 : vector<18x128xf32>
    %152 = arith.mulf %114, %151 : vector<18x128xf32>
    %c0_55 = arith.constant 0 : index
    %c0_56 = arith.constant 0 : index
    %c0_57 = arith.constant 0 : index
    %153 = vector.load %arg11[%c0_55, %c0_56, %c0_57] : memref<2x128x64xbf16, #tpu.memory_space<vmem>>, vector<1x128x64xbf16>
    %154 = vector.shape_cast %153 : vector<1x128x64xbf16> to vector<128x64xbf16>
    %155 = arith.truncf %152 : vector<18x128xf32> to vector<18x128xbf16>
    %cst_58 = arith.constant dense<0.000000e+00> : vector<18x64xf32>
    %156 = tpu.matmul %155, %154, %cst_58 {dimension_numbers = #tpu.dot_dimension_numbers<[1], [0], [0], [1], [0, 0, 1, 1], [], []>} : vector<18x128xbf16>, vector<128x64xbf16>, vector<18x64xf32> -> vector<18x64xf32>
    %157 = vector.broadcast %19 : vector<1x64xf32> to vector<18x64xf32>
    %158 = arith.addf %156, %157 : vector<18x64xf32>
    %159 = arith.addf %106, %158 : vector<18x64xf32>
    %160 = vector.extract_strided_slice %159 {offsets = [0, 0], sizes = [18, 32], strides = [1, 1]} : vector<18x64xf32> to vector<18x32xf32>
    %161 = vector.extract_strided_slice %159 {offsets = [0, 32], sizes = [18, 32], strides = [1, 1]} : vector<18x64xf32> to vector<18x32xf32>
    %cst_59 = arith.constant dense<0.000000e+00> : vector<18xf32>
    %162 = vector.multi_reduction <add>, %160, %cst_59 [1] : vector<18x32xf32> to vector<18xf32>
    %163 = vector.shape_cast %162 : vector<18xf32> to vector<18x1xf32>
    %cst_60 = arith.constant 3.200000e+01 : f32
    %164 = vector.broadcast %cst_60 : f32 to vector<18x1xf32>
    %165 = arith.divf %163, %164 : vector<18x1xf32>
    %cst_61 = arith.constant dense<0.000000e+00> : vector<18xf32>
    %166 = vector.multi_reduction <add>, %161, %cst_61 [1] : vector<18x32xf32> to vector<18xf32>
    %167 = vector.shape_cast %166 : vector<18xf32> to vector<18x1xf32>
    %cst_62 = arith.constant 3.200000e+01 : f32
    %168 = vector.broadcast %cst_62 : f32 to vector<18x1xf32>
    %169 = arith.divf %167, %168 : vector<18x1xf32>
    %170 = vector.broadcast %165 : vector<18x1xf32> to vector<18x32xf32>
    %171 = arith.subf %160, %170 : vector<18x32xf32>
    %172 = arith.mulf %171, %171 : vector<18x32xf32>
    %cst_63 = arith.constant dense<0.000000e+00> : vector<18xf32>
    %173 = vector.multi_reduction <add>, %172, %cst_63 [1] : vector<18x32xf32> to vector<18xf32>
    %174 = vector.shape_cast %173 : vector<18xf32> to vector<18x1xf32>
    %cst_64 = arith.constant 3.200000e+01 : f32
    %175 = vector.broadcast %cst_64 : f32 to vector<18x1xf32>
    %176 = arith.divf %174, %175 : vector<18x1xf32>
    %177 = vector.broadcast %169 : vector<18x1xf32> to vector<18x32xf32>
    %178 = arith.subf %161, %177 : vector<18x32xf32>
    %179 = arith.mulf %178, %178 : vector<18x32xf32>
    %cst_65 = arith.constant dense<0.000000e+00> : vector<18xf32>
    %180 = vector.multi_reduction <add>, %179, %cst_65 [1] : vector<18x32xf32> to vector<18xf32>
    %181 = vector.shape_cast %180 : vector<18xf32> to vector<18x1xf32>
    %cst_66 = arith.constant 3.200000e+01 : f32
    %182 = vector.broadcast %cst_66 : f32 to vector<18x1xf32>
    %183 = arith.divf %181, %182 : vector<18x1xf32>
    %184 = vector.shape_cast %2 : vector<1x64xi1> to vector<1x64xi1>
    %185 = vector.broadcast %184 : vector<1x64xi1> to vector<18x64xi1>
    %186 = vector.shape_cast %165 : vector<18x1xf32> to vector<18x1xf32>
    %187 = vector.broadcast %186 : vector<18x1xf32> to vector<18x64xf32>
    %188 = vector.shape_cast %169 : vector<18x1xf32> to vector<18x1xf32>
    %189 = vector.broadcast %188 : vector<18x1xf32> to vector<18x64xf32>
    %190 = arith.select %185, %187, %189 : vector<18x64xi1>, vector<18x64xf32>
    %191 = vector.shape_cast %2 : vector<1x64xi1> to vector<1x64xi1>
    %192 = vector.broadcast %191 : vector<1x64xi1> to vector<18x64xi1>
    %193 = vector.shape_cast %176 : vector<18x1xf32> to vector<18x1xf32>
    %194 = vector.broadcast %193 : vector<18x1xf32> to vector<18x64xf32>
    %195 = vector.shape_cast %183 : vector<18x1xf32> to vector<18x1xf32>
    %196 = vector.broadcast %195 : vector<18x1xf32> to vector<18x64xf32>
    %197 = arith.select %192, %194, %196 : vector<18x64xi1>, vector<18x64xf32>
    %198 = arith.subf %159, %190 : vector<18x64xf32>
    %cst_67 = arith.constant 9.99999974E-6 : f32
    %199 = vector.broadcast %cst_67 : f32 to vector<18x64xf32>
    %200 = arith.addf %197, %199 : vector<18x64xf32>
    %201 = math.rsqrt %200 : vector<18x64xf32>
    %202 = arith.mulf %198, %201 : vector<18x64xf32>
    %203 = vector.broadcast %20 : vector<1x64xf32> to vector<18x64xf32>
    %204 = arith.mulf %202, %203 : vector<18x64xf32>
    %205 = vector.broadcast %21 : vector<1x64xf32> to vector<18x64xf32>
    %206 = arith.addf %204, %205 : vector<18x64xf32>
    %c1 = arith.constant 1 : index
    %c0_68 = arith.constant 0 : index
    %c0_69 = arith.constant 0 : index
    %207 = vector.load %arg12[%c1, %c0_68, %c0_69] : memref<2x8x192xf32, #tpu.memory_space<vmem>>, vector<1x8x192xf32>
    %208 = vector.shape_cast %207 : vector<1x8x192xf32> to vector<8x192xf32>
    %209 = vector.extract_strided_slice %208 {offsets = [0, 0], sizes = [1, 192], strides = [1, 1]} : vector<8x192xf32> to vector<1x192xf32>
    %210 = vector.extract_strided_slice %208 {offsets = [1, 0], sizes = [1, 64], strides = [1, 1]} : vector<8x192xf32> to vector<1x64xf32>
    %211 = vector.extract_strided_slice %208 {offsets = [2, 0], sizes = [1, 64], strides = [1, 1]} : vector<8x192xf32> to vector<1x64xf32>
    %212 = vector.extract_strided_slice %208 {offsets = [3, 0], sizes = [1, 64], strides = [1, 1]} : vector<8x192xf32> to vector<1x64xf32>
    %213 = vector.extract_strided_slice %208 {offsets = [4, 0], sizes = [1, 128], strides = [1, 1]} : vector<8x192xf32> to vector<1x128xf32>
    %214 = vector.extract_strided_slice %208 {offsets = [5, 0], sizes = [1, 64], strides = [1, 1]} : vector<8x192xf32> to vector<1x64xf32>
    %215 = vector.extract_strided_slice %208 {offsets = [6, 0], sizes = [1, 64], strides = [1, 1]} : vector<8x192xf32> to vector<1x64xf32>
    %216 = vector.extract_strided_slice %208 {offsets = [7, 0], sizes = [1, 64], strides = [1, 1]} : vector<8x192xf32> to vector<1x64xf32>
    %c1_70 = arith.constant 1 : index
    %c0_71 = arith.constant 0 : index
    %c0_72 = arith.constant 0 : index
    %217 = vector.load %arg8[%c1_70, %c0_71, %c0_72] : memref<2x64x192xbf16, #tpu.memory_space<vmem>>, vector<1x64x192xbf16>
    %218 = vector.shape_cast %217 : vector<1x64x192xbf16> to vector<64x192xbf16>
    %219 = arith.truncf %206 : vector<18x64xf32> to vector<18x64xbf16>
    %cst_73 = arith.constant dense<0.000000e+00> : vector<18x192xf32>
    %220 = tpu.matmul %219, %218, %cst_73 {dimension_numbers = #tpu.dot_dimension_numbers<[1], [0], [0], [1], [0, 0, 1, 1], [], []>} : vector<18x64xbf16>, vector<64x192xbf16>, vector<18x192xf32> -> vector<18x192xf32>
    %221 = vector.broadcast %209 : vector<1x192xf32> to vector<18x192xf32>
    %222 = arith.addf %220, %221 : vector<18x192xf32>
    %223 = vector.extract_strided_slice %222 {offsets = [0, 0], sizes = [18, 64], strides = [1, 1]} : vector<18x192xf32> to vector<18x64xf32>
    %224 = vector.extract_strided_slice %222 {offsets = [0, 64], sizes = [18, 64], strides = [1, 1]} : vector<18x192xf32> to vector<18x64xf32>
    %225 = vector.extract_strided_slice %222 {offsets = [0, 128], sizes = [18, 64], strides = [1, 1]} : vector<18x192xf32> to vector<18x64xf32>
    %226 = tpu.concatenate %224, %224, %224, %224, %224, %224, %224, %224 in 0 : vector<18x64xf32>, vector<18x64xf32>, vector<18x64xf32>, vector<18x64xf32>, vector<18x64xf32>, vector<18x64xf32>, vector<18x64xf32>, vector<18x64xf32> -> vector<144x64xf32>
    %227 = arith.mulf %226, %3 : vector<144x64xf32>
    %228 = arith.truncf %227 : vector<144x64xf32> to vector<144x64xbf16>
    %229 = tpu.concatenate %225, %225, %225, %225, %225, %225, %225, %225 in 0 : vector<18x64xf32>, vector<18x64xf32>, vector<18x64xf32>, vector<18x64xf32>, vector<18x64xf32>, vector<18x64xf32>, vector<18x64xf32>, vector<18x64xf32> -> vector<144x64xf32>
    %230 = arith.mulf %229, %3 : vector<144x64xf32>
    %231 = arith.truncf %230 : vector<144x64xf32> to vector<144x64xbf16>
    %232 = arith.truncf %223 : vector<18x64xf32> to vector<18x64xbf16>
    %cst_74 = arith.constant dense<0.000000e+00> : vector<18x144xf32>
    %233 = tpu.matmul %232, %228, %cst_74 {dimension_numbers = #tpu.dot_dimension_numbers<[1], [1], [0], [0], [0, 0, 1, 0], [], []>} : vector<18x64xbf16>, vector<144x64xbf16>, vector<18x144xf32> -> vector<18x144xf32>
    %cst_75 = arith.constant 0.353553385 : f32
    %234 = vector.broadcast %cst_75 : f32 to vector<18x144xf32>
    %235 = arith.mulf %233, %234 : vector<18x144xf32>
    %236 = arith.addf %235, %4 : vector<18x144xf32>
    %cst_76 = arith.constant dense<0xFF800000> : vector<18xf32>
    %237 = vector.multi_reduction <maximumf>, %236, %cst_76 [1] : vector<18x144xf32> to vector<18xf32>
    %238 = vector.shape_cast %237 : vector<18xf32> to vector<18x1xf32>
    %239 = vector.broadcast %238 : vector<18x1xf32> to vector<18x144xf32>
    %240 = arith.subf %236, %239 : vector<18x144xf32>
    %241 = math.exp %240 : vector<18x144xf32>
    %242 = arith.truncf %241 : vector<18x144xf32> to vector<18x144xbf16>
    %cst_77 = arith.constant dense<0.000000e+00> : vector<18x144xf32>
    %243 = tpu.matmul %242, %5, %cst_77 {dimension_numbers = #tpu.dot_dimension_numbers<[1], [0], [0], [1], [0, 0, 1, 1], [], []>} : vector<18x144xbf16>, vector<144x144xbf16>, vector<18x144xf32> -> vector<18x144xf32>
    %244 = tpu.reciprocal %243 {approx = true} : vector<18x144xf32> -> vector<18x144xf32>
    %245 = arith.mulf %241, %244 : vector<18x144xf32>
    %246 = arith.truncf %245 : vector<18x144xf32> to vector<18x144xbf16>
    %cst_78 = arith.constant dense<0.000000e+00> : vector<18x64xf32>
    %247 = tpu.matmul %246, %231, %cst_78 {dimension_numbers = #tpu.dot_dimension_numbers<[1], [0], [0], [1], [0, 0, 1, 1], [], []>} : vector<18x144xbf16>, vector<144x64xbf16>, vector<18x64xf32> -> vector<18x64xf32>
    %c1_79 = arith.constant 1 : index
    %c0_80 = arith.constant 0 : index
    %c0_81 = arith.constant 0 : index
    %248 = vector.load %arg9[%c1_79, %c0_80, %c0_81] : memref<2x64x64xbf16, #tpu.memory_space<vmem>>, vector<1x64x64xbf16>
    %249 = vector.shape_cast %248 : vector<1x64x64xbf16> to vector<64x64xbf16>
    %250 = arith.truncf %247 : vector<18x64xf32> to vector<18x64xbf16>
    %cst_82 = arith.constant dense<0.000000e+00> : vector<18x64xf32>
    %251 = tpu.matmul %250, %249, %cst_82 {dimension_numbers = #tpu.dot_dimension_numbers<[1], [0], [0], [1], [0, 0, 1, 1], [], []>} : vector<18x64xbf16>, vector<64x64xbf16>, vector<18x64xf32> -> vector<18x64xf32>
    %252 = vector.broadcast %210 : vector<1x64xf32> to vector<18x64xf32>
    %253 = arith.addf %251, %252 : vector<18x64xf32>
    %254 = arith.addf %206, %253 : vector<18x64xf32>
    %255 = vector.extract_strided_slice %254 {offsets = [0, 0], sizes = [18, 32], strides = [1, 1]} : vector<18x64xf32> to vector<18x32xf32>
    %256 = vector.extract_strided_slice %254 {offsets = [0, 32], sizes = [18, 32], strides = [1, 1]} : vector<18x64xf32> to vector<18x32xf32>
    %cst_83 = arith.constant dense<0.000000e+00> : vector<18xf32>
    %257 = vector.multi_reduction <add>, %255, %cst_83 [1] : vector<18x32xf32> to vector<18xf32>
    %258 = vector.shape_cast %257 : vector<18xf32> to vector<18x1xf32>
    %cst_84 = arith.constant 3.200000e+01 : f32
    %259 = vector.broadcast %cst_84 : f32 to vector<18x1xf32>
    %260 = arith.divf %258, %259 : vector<18x1xf32>
    %cst_85 = arith.constant dense<0.000000e+00> : vector<18xf32>
    %261 = vector.multi_reduction <add>, %256, %cst_85 [1] : vector<18x32xf32> to vector<18xf32>
    %262 = vector.shape_cast %261 : vector<18xf32> to vector<18x1xf32>
    %cst_86 = arith.constant 3.200000e+01 : f32
    %263 = vector.broadcast %cst_86 : f32 to vector<18x1xf32>
    %264 = arith.divf %262, %263 : vector<18x1xf32>
    %265 = vector.broadcast %260 : vector<18x1xf32> to vector<18x32xf32>
    %266 = arith.subf %255, %265 : vector<18x32xf32>
    %267 = arith.mulf %266, %266 : vector<18x32xf32>
    %cst_87 = arith.constant dense<0.000000e+00> : vector<18xf32>
    %268 = vector.multi_reduction <add>, %267, %cst_87 [1] : vector<18x32xf32> to vector<18xf32>
    %269 = vector.shape_cast %268 : vector<18xf32> to vector<18x1xf32>
    %cst_88 = arith.constant 3.200000e+01 : f32
    %270 = vector.broadcast %cst_88 : f32 to vector<18x1xf32>
    %271 = arith.divf %269, %270 : vector<18x1xf32>
    %272 = vector.broadcast %264 : vector<18x1xf32> to vector<18x32xf32>
    %273 = arith.subf %256, %272 : vector<18x32xf32>
    %274 = arith.mulf %273, %273 : vector<18x32xf32>
    %cst_89 = arith.constant dense<0.000000e+00> : vector<18xf32>
    %275 = vector.multi_reduction <add>, %274, %cst_89 [1] : vector<18x32xf32> to vector<18xf32>
    %276 = vector.shape_cast %275 : vector<18xf32> to vector<18x1xf32>
    %cst_90 = arith.constant 3.200000e+01 : f32
    %277 = vector.broadcast %cst_90 : f32 to vector<18x1xf32>
    %278 = arith.divf %276, %277 : vector<18x1xf32>
    %279 = vector.shape_cast %2 : vector<1x64xi1> to vector<1x64xi1>
    %280 = vector.broadcast %279 : vector<1x64xi1> to vector<18x64xi1>
    %281 = vector.shape_cast %260 : vector<18x1xf32> to vector<18x1xf32>
    %282 = vector.broadcast %281 : vector<18x1xf32> to vector<18x64xf32>
    %283 = vector.shape_cast %264 : vector<18x1xf32> to vector<18x1xf32>
    %284 = vector.broadcast %283 : vector<18x1xf32> to vector<18x64xf32>
    %285 = arith.select %280, %282, %284 : vector<18x64xi1>, vector<18x64xf32>
    %286 = vector.shape_cast %2 : vector<1x64xi1> to vector<1x64xi1>
    %287 = vector.broadcast %286 : vector<1x64xi1> to vector<18x64xi1>
    %288 = vector.shape_cast %271 : vector<18x1xf32> to vector<18x1xf32>
    %289 = vector.broadcast %288 : vector<18x1xf32> to vector<18x64xf32>
    %290 = vector.shape_cast %278 : vector<18x1xf32> to vector<18x1xf32>
    %291 = vector.broadcast %290 : vector<18x1xf32> to vector<18x64xf32>
    %292 = arith.select %287, %289, %291 : vector<18x64xi1>, vector<18x64xf32>
    %293 = arith.subf %254, %285 : vector<18x64xf32>
    %cst_91 = arith.constant 9.99999974E-6 : f32
    %294 = vector.broadcast %cst_91 : f32 to vector<18x64xf32>
    %295 = arith.addf %292, %294 : vector<18x64xf32>
    %296 = math.rsqrt %295 : vector<18x64xf32>
    %297 = arith.mulf %293, %296 : vector<18x64xf32>
    %298 = vector.broadcast %211 : vector<1x64xf32> to vector<18x64xf32>
    %299 = arith.mulf %297, %298 : vector<18x64xf32>
    %300 = vector.broadcast %212 : vector<1x64xf32> to vector<18x64xf32>
    %301 = arith.addf %299, %300 : vector<18x64xf32>
    %c1_92 = arith.constant 1 : index
    %c0_93 = arith.constant 0 : index
    %c0_94 = arith.constant 0 : index
    %302 = vector.load %arg10[%c1_92, %c0_93, %c0_94] : memref<2x64x128xbf16, #tpu.memory_space<vmem>>, vector<1x64x128xbf16>
    %303 = vector.shape_cast %302 : vector<1x64x128xbf16> to vector<64x128xbf16>
    %304 = arith.truncf %301 : vector<18x64xf32> to vector<18x64xbf16>
    %cst_95 = arith.constant dense<0.000000e+00> : vector<18x128xf32>
    %305 = tpu.matmul %304, %303, %cst_95 {dimension_numbers = #tpu.dot_dimension_numbers<[1], [0], [0], [1], [0, 0, 1, 1], [], []>} : vector<18x64xbf16>, vector<64x128xbf16>, vector<18x128xf32> -> vector<18x128xf32>
    %306 = vector.broadcast %213 : vector<1x128xf32> to vector<18x128xf32>
    %307 = arith.addf %305, %306 : vector<18x128xf32>
    %cst_96 = arith.constant 5.000000e-01 : f32
    %308 = vector.broadcast %cst_96 : f32 to vector<18x128xf32>
    %309 = arith.mulf %308, %307 : vector<18x128xf32>
    %cst_97 = arith.constant 0.707106769 : f32
    %310 = vector.broadcast %cst_97 : f32 to vector<18x128xf32>
    %311 = arith.mulf %307, %310 : vector<18x128xf32>
    %312 = math.absf %311 : vector<18x128xf32>
    %cst_98 = arith.constant 0.327591091 : f32
    %313 = vector.broadcast %cst_98 : f32 to vector<18x128xf32>
    %314 = arith.mulf %313, %312 : vector<18x128xf32>
    %cst_99 = arith.constant 1.000000e+00 : f32
    %315 = vector.broadcast %cst_99 : f32 to vector<18x128xf32>
    %316 = arith.addf %315, %314 : vector<18x128xf32>
    %cst_100 = arith.constant 1.000000e+00 : f32
    %317 = vector.broadcast %cst_100 : f32 to vector<18x128xf32>
    %318 = arith.divf %317, %316 : vector<18x128xf32>
    %cst_101 = arith.constant 1.06140542 : f32
    %319 = vector.broadcast %cst_101 : f32 to vector<18x128xf32>
    %320 = arith.mulf %319, %318 : vector<18x128xf32>
    %cst_102 = arith.constant -1.45315206 : f32
    %321 = vector.broadcast %cst_102 : f32 to vector<18x128xf32>
    %322 = arith.addf %320, %321 : vector<18x128xf32>
    %323 = arith.mulf %322, %318 : vector<18x128xf32>
    %cst_103 = arith.constant 1.42141378 : f32
    %324 = vector.broadcast %cst_103 : f32 to vector<18x128xf32>
    %325 = arith.addf %323, %324 : vector<18x128xf32>
    %326 = arith.mulf %325, %318 : vector<18x128xf32>
    %cst_104 = arith.constant -0.284496725 : f32
    %327 = vector.broadcast %cst_104 : f32 to vector<18x128xf32>
    %328 = arith.addf %326, %327 : vector<18x128xf32>
    %329 = arith.mulf %328, %318 : vector<18x128xf32>
    %cst_105 = arith.constant 0.254829586 : f32
    %330 = vector.broadcast %cst_105 : f32 to vector<18x128xf32>
    %331 = arith.addf %329, %330 : vector<18x128xf32>
    %332 = arith.mulf %331, %318 : vector<18x128xf32>
    %cst_106 = arith.constant 0.000000e+00 : f32
    %333 = vector.broadcast %cst_106 : f32 to vector<18x128xf32>
    %334 = arith.subf %333, %312 : vector<18x128xf32>
    %335 = arith.mulf %334, %312 : vector<18x128xf32>
    %336 = math.exp %335 : vector<18x128xf32>
    %337 = arith.mulf %332, %336 : vector<18x128xf32>
    %cst_107 = arith.constant 1.000000e+00 : f32
    %338 = vector.broadcast %cst_107 : f32 to vector<18x128xf32>
    %339 = arith.subf %338, %337 : vector<18x128xf32>
    %cst_108 = arith.constant 0.000000e+00 : f32
    %340 = vector.broadcast %cst_108 : f32 to vector<18x128xf32>
    %341 = arith.cmpf oge, %311, %340 : vector<18x128xf32>
    %cst_109 = arith.constant 0.000000e+00 : f32
    %342 = vector.broadcast %cst_109 : f32 to vector<18x128xf32>
    %343 = arith.subf %342, %339 : vector<18x128xf32>
    %344 = arith.select %341, %339, %343 : vector<18x128xi1>, vector<18x128xf32>
    %cst_110 = arith.constant 1.000000e+00 : f32
    %345 = vector.broadcast %cst_110 : f32 to vector<18x128xf32>
    %346 = arith.addf %345, %344 : vector<18x128xf32>
    %347 = arith.mulf %309, %346 : vector<18x128xf32>
    %c1_111 = arith.constant 1 : index
    %c0_112 = arith.constant 0 : index
    %c0_113 = arith.constant 0 : index
    %348 = vector.load %arg11[%c1_111, %c0_112, %c0_113] : memref<2x128x64xbf16, #tpu.memory_space<vmem>>, vector<1x128x64xbf16>
    %349 = vector.shape_cast %348 : vector<1x128x64xbf16> to vector<128x64xbf16>
    %350 = arith.truncf %347 : vector<18x128xf32> to vector<18x128xbf16>
    %cst_114 = arith.constant dense<0.000000e+00> : vector<18x64xf32>
    %351 = tpu.matmul %350, %349, %cst_114 {dimension_numbers = #tpu.dot_dimension_numbers<[1], [0], [0], [1], [0, 0, 1, 1], [], []>} : vector<18x128xbf16>, vector<128x64xbf16>, vector<18x64xf32> -> vector<18x64xf32>
    %352 = vector.broadcast %214 : vector<1x64xf32> to vector<18x64xf32>
    %353 = arith.addf %351, %352 : vector<18x64xf32>
    %354 = arith.addf %301, %353 : vector<18x64xf32>
    %355 = vector.extract_strided_slice %354 {offsets = [0, 0], sizes = [18, 32], strides = [1, 1]} : vector<18x64xf32> to vector<18x32xf32>
    %356 = vector.extract_strided_slice %354 {offsets = [0, 32], sizes = [18, 32], strides = [1, 1]} : vector<18x64xf32> to vector<18x32xf32>
    %cst_115 = arith.constant dense<0.000000e+00> : vector<18xf32>
    %357 = vector.multi_reduction <add>, %355, %cst_115 [1] : vector<18x32xf32> to vector<18xf32>
    %358 = vector.shape_cast %357 : vector<18xf32> to vector<18x1xf32>
    %cst_116 = arith.constant 3.200000e+01 : f32
    %359 = vector.broadcast %cst_116 : f32 to vector<18x1xf32>
    %360 = arith.divf %358, %359 : vector<18x1xf32>
    %cst_117 = arith.constant dense<0.000000e+00> : vector<18xf32>
    %361 = vector.multi_reduction <add>, %356, %cst_117 [1] : vector<18x32xf32> to vector<18xf32>
    %362 = vector.shape_cast %361 : vector<18xf32> to vector<18x1xf32>
    %cst_118 = arith.constant 3.200000e+01 : f32
    %363 = vector.broadcast %cst_118 : f32 to vector<18x1xf32>
    %364 = arith.divf %362, %363 : vector<18x1xf32>
    %365 = vector.broadcast %360 : vector<18x1xf32> to vector<18x32xf32>
    %366 = arith.subf %355, %365 : vector<18x32xf32>
    %367 = arith.mulf %366, %366 : vector<18x32xf32>
    %cst_119 = arith.constant dense<0.000000e+00> : vector<18xf32>
    %368 = vector.multi_reduction <add>, %367, %cst_119 [1] : vector<18x32xf32> to vector<18xf32>
    %369 = vector.shape_cast %368 : vector<18xf32> to vector<18x1xf32>
    %cst_120 = arith.constant 3.200000e+01 : f32
    %370 = vector.broadcast %cst_120 : f32 to vector<18x1xf32>
    %371 = arith.divf %369, %370 : vector<18x1xf32>
    %372 = vector.broadcast %364 : vector<18x1xf32> to vector<18x32xf32>
    %373 = arith.subf %356, %372 : vector<18x32xf32>
    %374 = arith.mulf %373, %373 : vector<18x32xf32>
    %cst_121 = arith.constant dense<0.000000e+00> : vector<18xf32>
    %375 = vector.multi_reduction <add>, %374, %cst_121 [1] : vector<18x32xf32> to vector<18xf32>
    %376 = vector.shape_cast %375 : vector<18xf32> to vector<18x1xf32>
    %cst_122 = arith.constant 3.200000e+01 : f32
    %377 = vector.broadcast %cst_122 : f32 to vector<18x1xf32>
    %378 = arith.divf %376, %377 : vector<18x1xf32>
    %379 = vector.shape_cast %2 : vector<1x64xi1> to vector<1x64xi1>
    %380 = vector.broadcast %379 : vector<1x64xi1> to vector<18x64xi1>
    %381 = vector.shape_cast %360 : vector<18x1xf32> to vector<18x1xf32>
    %382 = vector.broadcast %381 : vector<18x1xf32> to vector<18x64xf32>
    %383 = vector.shape_cast %364 : vector<18x1xf32> to vector<18x1xf32>
    %384 = vector.broadcast %383 : vector<18x1xf32> to vector<18x64xf32>
    %385 = arith.select %380, %382, %384 : vector<18x64xi1>, vector<18x64xf32>
    %386 = vector.shape_cast %2 : vector<1x64xi1> to vector<1x64xi1>
    %387 = vector.broadcast %386 : vector<1x64xi1> to vector<18x64xi1>
    %388 = vector.shape_cast %371 : vector<18x1xf32> to vector<18x1xf32>
    %389 = vector.broadcast %388 : vector<18x1xf32> to vector<18x64xf32>
    %390 = vector.shape_cast %378 : vector<18x1xf32> to vector<18x1xf32>
    %391 = vector.broadcast %390 : vector<18x1xf32> to vector<18x64xf32>
    %392 = arith.select %387, %389, %391 : vector<18x64xi1>, vector<18x64xf32>
    %393 = arith.subf %354, %385 : vector<18x64xf32>
    %cst_123 = arith.constant 9.99999974E-6 : f32
    %394 = vector.broadcast %cst_123 : f32 to vector<18x64xf32>
    %395 = arith.addf %392, %394 : vector<18x64xf32>
    %396 = math.rsqrt %395 : vector<18x64xf32>
    %397 = arith.mulf %393, %396 : vector<18x64xf32>
    %398 = vector.broadcast %215 : vector<1x64xf32> to vector<18x64xf32>
    %399 = arith.mulf %397, %398 : vector<18x64xf32>
    %400 = vector.broadcast %216 : vector<1x64xf32> to vector<18x64xf32>
    %401 = arith.addf %399, %400 : vector<18x64xf32>
    %402 = vector.extract_strided_slice %401 {offsets = [0, 0], sizes = [1, 64], strides = [1, 1]} : vector<18x64xf32> to vector<1x64xf32>
    %403 = vector.extract_strided_slice %401 {offsets = [9, 0], sizes = [1, 64], strides = [1, 1]} : vector<18x64xf32> to vector<1x64xf32>
    %404 = tpu.concatenate %402, %403 in 0 : vector<1x64xf32>, vector<1x64xf32> -> vector<2x64xf32>
    %c0_124 = arith.constant 0 : index
    %c0_125 = arith.constant 0 : index
    %405 = vector.load %arg13[%c0_124, %c0_125] : memref<140x48xf32, #tpu.memory_space<vmem>>, vector<140x48xf32>
    %406 = vector.extract_strided_slice %405 {offsets = [0, 0], sizes = [12, 16], strides = [1, 1]} : vector<140x48xf32> to vector<12x16xf32>
    %407 = vector.extract_strided_slice %405 {offsets = [12, 0], sizes = [80, 48], strides = [1, 1]} : vector<140x48xf32> to vector<80x48xf32>
    %408 = vector.extract_strided_slice %405 {offsets = [92, 0], sizes = [48, 5], strides = [1, 1]} : vector<140x48xf32> to vector<48x5xf32>
    %c0_126 = arith.constant 0 : index
    %c0_127 = arith.constant 0 : index
    %409 = vector.load %arg14[%c0_126, %c0_127] : memref<5x128xf32, #tpu.memory_space<vmem>>, vector<1x80xf32>
    %c1_128 = arith.constant 1 : index
    %c0_129 = arith.constant 0 : index
    %410 = vector.load %arg14[%c1_128, %c0_129] : memref<5x128xf32, #tpu.memory_space<vmem>>, vector<1x80xf32>
    %c2 = arith.constant 2 : index
    %c0_130 = arith.constant 0 : index
    %411 = vector.load %arg14[%c2, %c0_130] : memref<5x128xf32, #tpu.memory_space<vmem>>, vector<1x48xf32>
    %c3 = arith.constant 3 : index
    %c0_131 = arith.constant 0 : index
    %412 = vector.load %arg14[%c3, %c0_131] : memref<5x128xf32, #tpu.memory_space<vmem>>, vector<1x5xf32>
    %c4 = arith.constant 4 : index
    %c0_132 = arith.constant 0 : index
    %413 = vector.load %arg14[%c4, %c0_132] : memref<5x128xf32, #tpu.memory_space<vmem>>, vector<1x16xf32>
    %c0_133 = arith.constant 0 : index
    %c0_134 = arith.constant 0 : index
    %414 = vector.load %arg2[%c0_133, %c0_134] : memref<2x12xf32, #tpu.memory_space<vmem>>, vector<2x12xf32>
    %cst_135 = arith.constant dense<0.000000e+00> : vector<2x16xf32>
    %415 = tpu.matmul %414, %406, %cst_135 {dimension_numbers = #tpu.dot_dimension_numbers<[1], [0], [0], [1], [0, 0, 1, 1], [], []>} : vector<2x12xf32>, vector<12x16xf32>, vector<2x16xf32> -> vector<2x16xf32>
    %416 = vector.broadcast %413 : vector<1x16xf32> to vector<2x16xf32>
    %417 = arith.addf %415, %416 : vector<2x16xf32>
    %cst_136 = arith.constant 0.000000e+00 : f32
    %418 = vector.broadcast %cst_136 : f32 to vector<2x16xf32>
    %419 = arith.maximumf %417, %418 : vector<2x16xf32>
    %420 = tpu.concatenate %404, %419 in 1 : vector<2x64xf32>, vector<2x16xf32> -> vector<2x80xf32>
    %cst_137 = arith.constant dense<0.000000e+00> : vector<2xf32>
    %421 = vector.multi_reduction <add>, %420, %cst_137 [1] : vector<2x80xf32> to vector<2xf32>
    %422 = vector.shape_cast %421 : vector<2xf32> to vector<2x1xf32>
    %cst_138 = arith.constant 8.000000e+01 : f32
    %423 = vector.broadcast %cst_138 : f32 to vector<2x1xf32>
    %424 = arith.divf %422, %423 : vector<2x1xf32>
    %425 = vector.broadcast %424 : vector<2x1xf32> to vector<2x80xf32>
    %426 = arith.subf %420, %425 : vector<2x80xf32>
    %427 = arith.mulf %426, %426 : vector<2x80xf32>
    %cst_139 = arith.constant dense<0.000000e+00> : vector<2xf32>
    %428 = vector.multi_reduction <add>, %427, %cst_139 [1] : vector<2x80xf32> to vector<2xf32>
    %429 = vector.shape_cast %428 : vector<2xf32> to vector<2x1xf32>
    %cst_140 = arith.constant 8.000000e+01 : f32
    %430 = vector.broadcast %cst_140 : f32 to vector<2x1xf32>
    %431 = arith.divf %429, %430 : vector<2x1xf32>
    %432 = vector.broadcast %424 : vector<2x1xf32> to vector<2x80xf32>
    %433 = arith.subf %420, %432 : vector<2x80xf32>
    %cst_141 = arith.constant 9.99999974E-6 : f32
    %434 = vector.broadcast %cst_141 : f32 to vector<2x1xf32>
    %435 = arith.addf %431, %434 : vector<2x1xf32>
    %436 = math.rsqrt %435 : vector<2x1xf32>
    %437 = vector.broadcast %436 : vector<2x1xf32> to vector<2x80xf32>
    %438 = arith.mulf %433, %437 : vector<2x80xf32>
    %439 = vector.broadcast %409 : vector<1x80xf32> to vector<2x80xf32>
    %440 = arith.mulf %438, %439 : vector<2x80xf32>
    %441 = vector.broadcast %410 : vector<1x80xf32> to vector<2x80xf32>
    %442 = arith.addf %440, %441 : vector<2x80xf32>
    %cst_142 = arith.constant dense<0.000000e+00> : vector<2x48xf32>
    %443 = tpu.matmul %442, %407, %cst_142 {dimension_numbers = #tpu.dot_dimension_numbers<[1], [0], [0], [1], [0, 0, 1, 1], [], []>} : vector<2x80xf32>, vector<80x48xf32>, vector<2x48xf32> -> vector<2x48xf32>
    %444 = vector.broadcast %411 : vector<1x48xf32> to vector<2x48xf32>
    %445 = arith.addf %443, %444 : vector<2x48xf32>
    %cst_143 = arith.constant 5.000000e-01 : f32
    %446 = vector.broadcast %cst_143 : f32 to vector<2x48xf32>
    %447 = arith.mulf %446, %445 : vector<2x48xf32>
    %cst_144 = arith.constant 0.707106769 : f32
    %448 = vector.broadcast %cst_144 : f32 to vector<2x48xf32>
    %449 = arith.mulf %445, %448 : vector<2x48xf32>
    %450 = math.absf %449 : vector<2x48xf32>
    %cst_145 = arith.constant 0.327591091 : f32
    %451 = vector.broadcast %cst_145 : f32 to vector<2x48xf32>
    %452 = arith.mulf %451, %450 : vector<2x48xf32>
    %cst_146 = arith.constant 1.000000e+00 : f32
    %453 = vector.broadcast %cst_146 : f32 to vector<2x48xf32>
    %454 = arith.addf %453, %452 : vector<2x48xf32>
    %cst_147 = arith.constant 1.000000e+00 : f32
    %455 = vector.broadcast %cst_147 : f32 to vector<2x48xf32>
    %456 = arith.divf %455, %454 : vector<2x48xf32>
    %cst_148 = arith.constant 1.06140542 : f32
    %457 = vector.broadcast %cst_148 : f32 to vector<2x48xf32>
    %458 = arith.mulf %457, %456 : vector<2x48xf32>
    %cst_149 = arith.constant -1.45315206 : f32
    %459 = vector.broadcast %cst_149 : f32 to vector<2x48xf32>
    %460 = arith.addf %458, %459 : vector<2x48xf32>
    %461 = arith.mulf %460, %456 : vector<2x48xf32>
    %cst_150 = arith.constant 1.42141378 : f32
    %462 = vector.broadcast %cst_150 : f32 to vector<2x48xf32>
    %463 = arith.addf %461, %462 : vector<2x48xf32>
    %464 = arith.mulf %463, %456 : vector<2x48xf32>
    %cst_151 = arith.constant -0.284496725 : f32
    %465 = vector.broadcast %cst_151 : f32 to vector<2x48xf32>
    %466 = arith.addf %464, %465 : vector<2x48xf32>
    %467 = arith.mulf %466, %456 : vector<2x48xf32>
    %cst_152 = arith.constant 0.254829586 : f32
    %468 = vector.broadcast %cst_152 : f32 to vector<2x48xf32>
    %469 = arith.addf %467, %468 : vector<2x48xf32>
    %470 = arith.mulf %469, %456 : vector<2x48xf32>
    %cst_153 = arith.constant 0.000000e+00 : f32
    %471 = vector.broadcast %cst_153 : f32 to vector<2x48xf32>
    %472 = arith.subf %471, %450 : vector<2x48xf32>
    %473 = arith.mulf %472, %450 : vector<2x48xf32>
    %474 = math.exp %473 : vector<2x48xf32>
    %475 = arith.mulf %470, %474 : vector<2x48xf32>
    %cst_154 = arith.constant 1.000000e+00 : f32
    %476 = vector.broadcast %cst_154 : f32 to vector<2x48xf32>
    %477 = arith.subf %476, %475 : vector<2x48xf32>
    %cst_155 = arith.constant 0.000000e+00 : f32
    %478 = vector.broadcast %cst_155 : f32 to vector<2x48xf32>
    %479 = arith.cmpf oge, %449, %478 : vector<2x48xf32>
    %cst_156 = arith.constant 0.000000e+00 : f32
    %480 = vector.broadcast %cst_156 : f32 to vector<2x48xf32>
    %481 = arith.subf %480, %477 : vector<2x48xf32>
    %482 = arith.select %479, %477, %481 : vector<2x48xi1>, vector<2x48xf32>
    %cst_157 = arith.constant 1.000000e+00 : f32
    %483 = vector.broadcast %cst_157 : f32 to vector<2x48xf32>
    %484 = arith.addf %483, %482 : vector<2x48xf32>
    %485 = arith.mulf %447, %484 : vector<2x48xf32>
    %cst_158 = arith.constant dense<0.000000e+00> : vector<2x5xf32>
    %486 = tpu.matmul %485, %408, %cst_158 {dimension_numbers = #tpu.dot_dimension_numbers<[1], [0], [0], [1], [0, 0, 1, 1], [], []>} : vector<2x48xf32>, vector<48x5xf32>, vector<2x5xf32> -> vector<2x5xf32>
    %487 = vector.broadcast %412 : vector<1x5xf32> to vector<2x5xf32>
    %488 = arith.addf %486, %487 : vector<2x5xf32>
    %c0_159 = arith.constant 0 : index
    %c0_160 = arith.constant 0 : index
    %489 = vector.load %arg15[%c0_159, %c0_160] : memref<2x5xf32, #tpu.memory_space<vmem>>, vector<2x5xf32>
    tpu.vector_store %arg15[%c0_159, %c0_160], %488 {strides = array<i32>} : memref<2x5xf32, #tpu.memory_space<vmem>>, vector<2x5xf32>,
    return
  }
  func.func @transform_0(%arg0: i32) -> (i32, i32) {
    %c0_i32 = arith.constant 0 : i32
    %c0_i32_0 = arith.constant 0 : i32
    %c0_i32_1 = arith.constant 0 : i32
    return %c0_i32, %c0_i32_0 : i32, i32
  }
  func.func @transform_1(%arg0: i32) -> (i32, i32) {
    %c0_i32 = arith.constant 0 : i32
    %c0_i32_0 = arith.constant 0 : i32
    %c0_i32_1 = arith.constant 0 : i32
    return %c0_i32, %c0_i32_0 : i32, i32
  }
  func.func @transform_2(%arg0: i32) -> (i32, i32) {
    %c0_i32 = arith.constant 0 : i32
    %c0_i32_0 = arith.constant 0 : i32
    %c0_i32_1 = arith.constant 0 : i32
    return %c0_i32, %c0_i32_0 : i32, i32
  }
  func.func @transform_3(%arg0: i32) -> (i32, i32) {
    %c0_i32 = arith.constant 0 : i32
    %c0_i32_0 = arith.constant 0 : i32
    %c0_i32_1 = arith.constant 0 : i32
    return %c0_i32, %c0_i32_0 : i32, i32
  }
  func.func @transform_4(%arg0: i32) -> (i32, i32) {
    %c0_i32 = arith.constant 0 : i32
    %c0_i32_0 = arith.constant 0 : i32
    %c0_i32_1 = arith.constant 0 : i32
    return %c0_i32, %c0_i32_0 : i32, i32
  }
  func.func @transform_5(%arg0: i32) -> (i32, i32) {
    %c0_i32 = arith.constant 0 : i32
    %c0_i32_0 = arith.constant 0 : i32
    %c0_i32_1 = arith.constant 0 : i32
    return %c0_i32, %c0_i32_0 : i32, i32
  }
  func.func @transform_6(%arg0: i32) -> (i32, i32) {
    %c0_i32 = arith.constant 0 : i32
    %c0_i32_0 = arith.constant 0 : i32
    %c0_i32_1 = arith.constant 0 : i32
    return %c0_i32, %c0_i32_0 : i32, i32
  }
  func.func @transform_7(%arg0: i32) -> (i32, i32, i32) {
    %c0_i32 = arith.constant 0 : i32
    %c0_i32_0 = arith.constant 0 : i32
    %c0_i32_1 = arith.constant 0 : i32
    %c0_i32_2 = arith.constant 0 : i32
    return %c0_i32, %c0_i32_0, %c0_i32_1 : i32, i32, i32
  }
  func.func @transform_8(%arg0: i32) -> (i32, i32, i32) {
    %c0_i32 = arith.constant 0 : i32
    %c0_i32_0 = arith.constant 0 : i32
    %c0_i32_1 = arith.constant 0 : i32
    %c0_i32_2 = arith.constant 0 : i32
    return %c0_i32, %c0_i32_0, %c0_i32_1 : i32, i32, i32
  }
  func.func @transform_9(%arg0: i32) -> (i32, i32, i32) {
    %c0_i32 = arith.constant 0 : i32
    %c0_i32_0 = arith.constant 0 : i32
    %c0_i32_1 = arith.constant 0 : i32
    %c0_i32_2 = arith.constant 0 : i32
    return %c0_i32, %c0_i32_0, %c0_i32_1 : i32, i32, i32
  }
  func.func @transform_10(%arg0: i32) -> (i32, i32, i32) {
    %c0_i32 = arith.constant 0 : i32
    %c0_i32_0 = arith.constant 0 : i32
    %c0_i32_1 = arith.constant 0 : i32
    %c0_i32_2 = arith.constant 0 : i32
    return %c0_i32, %c0_i32_0, %c0_i32_1 : i32, i32, i32
  }
  func.func @transform_11(%arg0: i32) -> (i32, i32, i32) {
    %c0_i32 = arith.constant 0 : i32
    %c0_i32_0 = arith.constant 0 : i32
    %c0_i32_1 = arith.constant 0 : i32
    %c0_i32_2 = arith.constant 0 : i32
    return %c0_i32, %c0_i32_0, %c0_i32_1 : i32, i32, i32
  }
  func.func @transform_12(%arg0: i32) -> (i32, i32) {
    %c0_i32 = arith.constant 0 : i32
    %c0_i32_0 = arith.constant 0 : i32
    %c0_i32_1 = arith.constant 0 : i32
    return %c0_i32, %c0_i32_0 : i32, i32
  }
  func.func @transform_13(%arg0: i32) -> (i32, i32) {
    %c0_i32 = arith.constant 0 : i32
    %c0_i32_0 = arith.constant 0 : i32
    %c0_i32_1 = arith.constant 0 : i32
    return %c0_i32, %c0_i32_0 : i32, i32
  }
  func.func @transform_14(%arg0: i32) -> (i32, i32) {
    %c0_i32 = arith.constant 0 : i32
    %c0_i32_0 = arith.constant 0 : i32
    %c0_i32_1 = arith.constant 0 : i32
    return %c0_i32, %c0_i32_0 : i32, i32
  }
}

</mosaic_0001>

<bundles_post_ra>
// kernel: eq.29
= control target key start
LH: loop header
LB: loop body
LE: loop exit
PB: predicated region body
PF: predicated region fallthrough
CT: control target
= control target key end

     0   :  { %vm9_vm0 = vcmask 15360   ;;  %s75_s12 = smov 126   ;;  %s76_s13 = smov 90   ;;  %vm3_vm1 = vcmask 146432   ;;  %vm13_vm2 = vcmask 130048   ;;  %vm16_vm3 = vcmask 1048560   ;;  %s122_s0 = inlined_call_operand.vmem [shape: s32[8,18], index: 0, kind: input, shape index: {}]   ;;  %s123_s1 = inlined_call_operand.vmem [shape: s32[144], index: 1, kind: output, shape index: {}]  }
   0x1   :  { %v60_v0 = vld [vmem:[%s122_s0 + $0x7] sm:$0x1]   ;;  %v63_v3 = vld [vmem:[%s122_s0 + $0x5] sm:$0x1]   ;;  %v65_v4 = vld [vmem:[%s122_s0 + $0x3] sm:$0x1]  }
   0x2   :  { %v61_v1 = vld [vmem:[%s122_s0 + $0x7] sm:$0x1]   ;;  %26 = vrot.lane.b32.xlu1 %v63_v3, %s76_s13  ;;  %s77_s16 = smov 54   ;;  %v62_v5 = vld [vmem:[%s122_s0 + $0x6] sm:$0x1]   ;;  %s78_s23 = smov 108  }
   0x3   :  { %v10_v2 = vsel %vm9_vm0, %v61_v1, %v60_v0  ;;  %38 = vrot.lane.b32.xlu2 %v65_v4, %s77_s16  ;;  %v64_v6 = vld [vmem:[%s122_s0 + $0x4] sm:$0x1]   ;;  %v66_v7 = vld [vmem:[%s122_s0 + $0x2] sm:$0x1]   ;;  %s79_s24 = smov 72   ;;  %s80_s25 = smov 36  }
   0x4   :  { %11 = vrot.lane.b32.xlu0 %v10_v2, %s75_s12  ;;  %v67_v8 = vld [vmem:[%s122_s0 + $0x1] sm:$0x1]   ;;  %s81_s28 = smov 18   ;;  %v2_v9 = vld [vmem:[%s122_s0] sm:$0x1]   ;;  %vm22_vm4 = vcmask 1032032  }
   0x5   :  { %4 = vst.msk [vmem:[#allocation0] sm:$0x1] %vm3_vm1, %v2_v9   ;;  %vm28_vm5 = vcmask 884432   ;;  %vm34_vm6 = vcmask 736832   ;;  %vm40_vm7 = vcmask 589232   ;;  %vm46_vm8 = vcmask 441632  }
   0x6   :  { %vm52_vm9 = vcmask 294032  }
   0xa   :  { %32 = vrot.lane.b32.xlu1 %v64_v6, %s79_s24 }
   0xb   :  { %44 = vrot.lane.b32.xlu2 %v66_v7, %s80_s25 }
   0xc   :  { %20 = vrot.lane.b32.xlu0 %v62_v5, %s78_s23 }
  0x14   :  { %50 = vrot.lane.b32.xlu0 %v67_v8, %s81_s28 }
  0x5d   :  { %v39_v10 = vpop.permute.xlu2 %38  }
  0x65   :  { %v45_v11 = vpop.permute.xlu2 %44  }
  0x74   :  { %v27_v13 = vpop.permute.xlu1 %26  }
  0x76   :  { %v12_v12 = vpop.permute.xlu0 %11  }
  0x77   :  { %15 = vst.msk [vmem:[#allocation0 + $0x1] sm:$0x1] %vm13_vm2, %v12_v12  }
  0x78   :  { %17 = vst.msk [vmem:[#allocation0] sm:$0x1] %vm16_vm3, %v12_v12  }
  0x7c   :  { %v33_v15 = vpop.permute.xlu1 %32  }
  0x7e   :  { %v21_v14 = vpop.permute.xlu0 %20  }
  0x7f   :  { %23 = vst.msk [vmem:[#allocation0] sm:$0x1] %vm22_vm4, %v21_v14  }
  0x80   :  { %29 = vst.msk [vmem:[#allocation0] sm:$0x1] %vm28_vm5, %v27_v13  }
  0x81   :  { %35 = vst.msk [vmem:[#allocation0] sm:$0x1] %vm34_vm6, %v33_v15  }
  0x82   :  { %41 = vst.msk [vmem:[#allocation0] sm:$0x1] %vm40_vm7, %v39_v10  }
  0x83   :  { %47 = vst.msk [vmem:[#allocation0] sm:$0x1] %vm46_vm8, %v45_v11  }
  0x86   :  { %v51_v16 = vpop.permute.xlu0 %50  }
  0x87   :  { %53 = vst.msk [vmem:[#allocation0] sm:$0x1] %vm52_vm9, %v51_v16  }
  0x8e   :  { %v56_v17 = vld [vmem:[#allocation0] sm:$0x3] }
  0x8f   :  { %59 = vst [vmem:[%s123_s1] sm:$0x3] %v56_v17 }

// kernel: tile.14
= control target key start
LH: loop header
LB: loop body
LE: loop exit
PB: predicated region body
PF: predicated region fallthrough
CT: control target
= control target key end

     0   :  { %vm3_vm0 = vcmask 523264   ;;  %s6_s6 = smov 3  ;;  %s48_s0 = inlined_call_operand.vmem [shape: f32[2,9,64], index: 0, kind: input, shape index: {}]   ;;  %s49_s1 = inlined_call_operand.vmem [shape: f32[18,64], index: 1, kind: output, shape index: {}]  }
   0x1   :  { %v2_v0 = vld [vmem:[%s48_s0] sm:$0xff]   ;;  %v18_v2 = vld [vmem:[%s48_s0 + $0x11] sm:$0xff]  }
   0x2   :  { %v16_v1 = vld [vmem:[%s48_s0 + $0x8] ss:$8 sm:%s6_s6]   ;;  %4 = vst.msk [vmem:[%s49_s1] sm:$0xff] %vm3_vm0, %v2_v0  }
   0x3   :  { %17 = vst.msk [vmem:[%s49_s1 + $0x8] sm:$0x3] %vm3_vm0, %v16_v1  }
   0x4   :  { %19 = vst.msk [vmem:[%s49_s1 + $0xa] sm:$0xff] %vm3_vm0, %v18_v2  }

// kernel: tile.19
= control target key start
LH: loop header
LB: loop body
LE: loop exit
PB: predicated region body
PF: predicated region fallthrough
CT: control target
= control target key end

     0   :  { %vm35_vm0 = vcmask 15360   ;;  %s83_s6 = smov 3  ;;  %vm4_vm1 = vcmask 1047556   ;;  %s86_s9 = smov 3  ;;  %vm49_vm2 = vcmask 1045506   ;;  %vm54_vm3 = vcmask 1047558   ;;  %s742_s0 = inlined_call_operand.vmem [shape: f32[18,8,18], index: 0, kind: input, shape index: {}]   ;;  %s743_s1 = inlined_call_operand.vmem [shape: f32[18,144], index: 1, kind: output, shape index: {}]  }
   0x1   :  { %v340_v0 = vld [vmem:[%s742_s0 + $0x77] ss:$8 sm:%s83_s6]   ;;  %s405_s20 = smov 126   ;;  %v344_v9 = vld [vmem:[%s742_s0 + $0x6] ss:$8 sm:$0xf]  }
   0x2   :  { %v325_v1 = vld [vmem:[%s742_s0 + $0x7] ss:$8 sm:$0xf]   ;;  %v345_v10 = vld [vmem:[%s742_s0 + $0x6] ss:$8 sm:$0xf0]  }
   0x3   :  { %v341_v2 = vld [vmem:[%s742_s0 + $0x77] ss:$8 sm:%s86_s9]   ;;  %s45_s25 = smov 3  ;;  %s52_s28 = smov 192  ;;  %v103_v21 = vsel %vm4_vm1, %v345_v10, %v344_v9  ;;  %vm6_vm4 = vcmask 146432   ;;  %vm39_vm5 = vcmask 130048  }
   0x4   :  { %v326_v3 = vld [vmem:[%s742_s0 + $0x7] ss:$8 sm:$0xf0]   ;;  %v89_v4 = vsel %vm35_vm0, %v341_v2, %v340_v0  ;;  %s57_s2 = smov 3  ;;  %s64_s9 = smov 192  ;;  %vm42_vm6 = vcmask 1048560  }
   0x5   :  { %v28_v5 = vsel %vm4_vm1, %v326_v3, %v325_v1  ;;  %v327_v6 = vld [vmem:[%s742_s0 + $0x7] ss:$8 sm:$0xf]   ;;  %90 = vrot.lane.b32.xlu1 %v89_v4, %s405_s20  ;;  %s146_s12 = smov 3  ;;  %s153_s17 = smov 192  ;;  %vm106_vm7 = vcmask 1032032  }
   0x6   :  { %v328_v7 = vld [vmem:[%s742_s0 + $0x7] ss:$8 sm:$0xf0]   ;;  %v356_v23 = vld [vmem:[%s742_s0 + $0x35] ss:$8 sm:$0x3c]  }
   0x7   :  { %v34_v8 = vsel %vm4_vm1, %v328_v7, %v327_v6  ;;  %v331_v12 = vld [vmem:[%s742_s0 + $0x37] ss:$8 sm:$0x3c]   ;;  %v355_v24 = vld [vmem:[%s742_s0 + $0x85] ss:$8 sm:%s146_s12]   ;;  %s109_s18 = smov 3 }
   0x8   :  { %v36_v11 = vsel %vm35_vm0, %v34_v8, %v28_v5  ;;  %v330_v13 = vld [vmem:[%s742_s0 + $0x87] ss:$8 sm:%s45_s25]   ;;  %v346_v26 = vld [vmem:[%s742_s0 + $0x86] ss:$8 sm:%s109_s18]   ;;  %s116_s24 = smov 192  ;;  %s406_s25 = smov 108   ;;  %v151_v31 = vsel %vm49_vm2, %v356_v23, %v355_v24 }
   0x9   :  { %37 = vrot.lane.b32.xlu0 %v36_v11, %s405_s20  ;;  %v334_v14 = vld [vmem:[%s742_s0 + $0x37] ss:$8 sm:$0x3c]   ;;  %v50_v15 = vsel %vm49_vm2, %v331_v12, %v330_v13  ;;  %v347_v27 = vld [vmem:[%s742_s0 + $0x36] ss:$8 sm:$0x3c]  }
   0xa   :  { %v332_v16 = vld [vmem:[%s742_s0 + $0x37] ss:$8 sm:%s52_s28]   ;;  %v114_v28 = vsel %vm49_vm2, %v347_v27, %v346_v26  ;;  %v348_v29 = vld [vmem:[%s742_s0 + $0x36] ss:$8 sm:%s116_s24]   ;;  %s128_s5 = smov 3  ;;  %s190_s10 = smov 192 }
   0xb   :  { %v333_v17 = vld [vmem:[%s742_s0 + $0x87] ss:$8 sm:%s57_s2]   ;;  %v55_v18 = vsel %vm54_vm3, %v332_v16, %v50_v15  ;;  %v119_v30 = vsel %vm54_vm3, %v348_v29, %v114_v28  ;;  %v357_v32 = vld [vmem:[%s742_s0 + $0x35] ss:$8 sm:%s153_s17]   ;;  %s183_s2 = smov 3  ;;  %s407_s13 = smov 90  }
   0xc   :  { %v62_v19 = vsel %vm49_vm2, %v334_v14, %v333_v17  ;;  %v335_v20 = vld [vmem:[%s742_s0 + $0x37] ss:$8 sm:%s64_s9]   ;;  %120 = vrot.lane.b32.xlu2 %v119_v30, %s406_s25  ;;  %v353_v33 = vld [vmem:[%s742_s0 + $0x5] ss:$8 sm:$0xf]   ;;  %v156_v35 = vsel %vm54_vm3, %v357_v32, %v151_v31  ;;  %s220_s21 = smov 3 }
   0xd   :  { %v67_v22 = vsel %vm54_vm3, %v335_v20, %v62_v19  ;;  %104 = vrot.lane.b32.xlu1 %v103_v21, %s406_s25  ;;  %v354_v34 = vld [vmem:[%s742_s0 + $0x5] ss:$8 sm:$0xf0]   ;;  %v364_v36 = vld [vmem:[%s742_s0 + $0x84] ss:$8 sm:%s183_s2]   ;;  %s165_s22 = smov 3 }
   0xe   :  { %v69_v25 = vsel %vm35_vm0, %v67_v22, %v55_v18  ;;  %v140_v37 = vsel %vm4_vm1, %v354_v34, %v353_v33  ;;  %v365_v38 = vld [vmem:[%s742_s0 + $0x34] ss:$8 sm:$0x3c]   ;;  %v351_v39 = vld [vmem:[%s742_s0 + $0x76] ss:$8 sm:%s128_s5]   ;;  %s227_s27 = smov 192 }
   0xf   :  { %v188_v40 = vsel %vm49_vm2, %v365_v38, %v364_v36  ;;  %v366_v41 = vld [vmem:[%s742_s0 + $0x34] ss:$8 sm:%s190_s10]   ;;  %v374_v45 = vld [vmem:[%s742_s0 + $0x33] ss:$8 sm:$0x3c]   ;;  %s408_s29 = smov 72  }
  0x10   :  { %v362_v42 = vld [vmem:[%s742_s0 + $0x4] ss:$8 sm:$0xf]   ;;  %v193_v44 = vsel %vm54_vm3, %v366_v41, %v188_v40  ;;  %v373_v47 = vld [vmem:[%s742_s0 + $0x83] ss:$8 sm:%s220_s21]   ;;  %s257_s5 = smov 3 }
  0x11   :  { %70 = vrot.lane.b32.xlu0 %v69_v25, %s405_s20  ;;  %v363_v43 = vld [vmem:[%s742_s0 + $0x4] ss:$8 sm:$0xf0]   ;;  %v360_v48 = vld [vmem:[%s742_s0 + $0x75] ss:$8 sm:%s165_s22]   ;;  %v225_v49 = vsel %vm49_vm2, %v374_v45, %v373_v47  ;;  %s202_s8 = smov 3 }
  0x12   :  { %v177_v46 = vsel %vm4_vm1, %v363_v43, %v362_v42  ;;  %v375_v50 = vld [vmem:[%s742_s0 + $0x33] ss:$8 sm:%s227_s27]   ;;  %v382_v54 = vld [vmem:[%s742_s0 + $0x82] ss:$8 sm:%s257_s5]   ;;  %s409_s16 = smov 54   ;;  %s294_s22 = smov 3 }
  0x13   :  { %v371_v51 = vld [vmem:[%s742_s0 + $0x3] ss:$8 sm:$0xf]   ;;  %v230_v53 = vsel %vm54_vm3, %v375_v50, %v225_v49  ;;  %v383_v56 = vld [vmem:[%s742_s0 + $0x32] ss:$8 sm:$0x3c]  }
  0x14   :  { %130 = vrot.lane.b32.xlu2 %v351_v39, %s406_s25  ;;  %v372_v52 = vld [vmem:[%s742_s0 + $0x3] ss:$8 sm:$0xf0]   ;;  %v369_v57 = vld [vmem:[%s742_s0 + $0x74] ss:$8 sm:%s202_s8]   ;;  %v262_v58 = vsel %vm49_vm2, %v383_v56, %v382_v54  ;;  %s239_s25 = smov 3 }
  0x15   :  { %157 = vrot.lane.b32.xlu1 %v156_v35, %s407_s13  ;;  %v214_v55 = vsel %vm4_vm1, %v372_v52, %v371_v51  ;;  %v380_v60 = vld [vmem:[%s742_s0 + $0x2] ss:$8 sm:$0xf]   ;;  %v391_v63 = vld [vmem:[%s742_s0 + $0x81] ss:$8 sm:%s294_s22]   ;;  %s410_s3 = smov 36  }
  0x16   :  { %v381_v61 = vld [vmem:[%s742_s0 + $0x2] ss:$8 sm:$0xf0]   ;;  %v392_v1 = vld [vmem:[%s742_s0 + $0x31] ss:$8 sm:$0x3c]  }
  0x17   :  { %v251_v0 = vsel %vm4_vm1, %v381_v61, %v380_v60  ;;  %v378_v2 = vld [vmem:[%s742_s0 + $0x73] ss:$8 sm:%s239_s25]   ;;  %v299_v3 = vsel %vm49_vm2, %v392_v1, %v391_v63  ;;  %s276_s6 = smov 3  ;;  %v389_v5 = vld [vmem:[%s742_s0 + $0x1] ss:$8 sm:$0xf]  }
  0x18   :  { %v390_v6 = vld [vmem:[%s742_s0 + $0x1] ss:$8 sm:$0xf0]   ;;  %v387_v9 = vld [vmem:[%s742_s0 + $0x72] ss:$8 sm:%s276_s6]   ;;  %s313_s14 = smov 3 }
  0x19   :  { %141 = vrot.lane.b32.xlu0 %v140_v37, %s407_s13  ;;  %v288_v8 = vsel %vm4_vm1, %v390_v6, %v389_v5  ;;  %v396_v10 = vld [vmem:[%s742_s0 + $0x71] ss:$8 sm:%s313_s14]   ;;  %v320_v11 = vld [vmem:[%s742_s0 + $0x40] ss:$8 sm:$0xf]   ;;  %vm143_vm8 = vcmask 884432  }
  0x1a   :  { %v321_v12 = vld [vmem:[%s742_s0 + $0x40] ss:$8 sm:$0xf0]   ;;  %vm180_vm9 = vcmask 736832   ;;  %vm217_vm10 = vcmask 589232   ;;  %vm254_vm11 = vcmask 441632  }
  0x1b   :  { %v13_v13 = vsel %vm4_vm1, %v321_v12, %v320_v11  ;;  %v2_v14 = vld [vmem:[%s742_s0] ss:$8 sm:$0xf]   ;;  %vm291_vm12 = vcmask 294032  }
  0x1c   :  { %167 = vrot.lane.b32.xlu2 %v360_v48, %s407_s13  ;;  %s264_s13 = smov 192  ;;  %v3_v15 = vld [vmem:[%s742_s0] ss:$8 sm:$0xf0]   ;;  %322 = vst.msk [vmem:[%s743_s1 + $0x10] sm:$0xff] %vm6_vm4, %v13_v13  }
  0x1d   :  { %194 = vrot.lane.b32.xlu1 %v193_v44, %s408_s29  ;;  %v384_v59 = vld [vmem:[%s742_s0 + $0x32] ss:$8 sm:%s264_s13]   ;;  %s411_s13 = smov 18   ;;  %v5_v16 = vsel %vm4_vm1, %v3_v15, %v2_v14 }
  0x1e   :  { %v267_v62 = vsel %vm54_vm3, %v384_v59, %v262_v58  ;;  %7 = vst.msk [vmem:[%s743_s1] sm:$0xff] %vm6_vm4, %v5_v16  }
  0x21   :  { %178 = vrot.lane.b32.xlu0 %v177_v46, %s408_s29 }
  0x24   :  { %204 = vrot.lane.b32.xlu2 %v369_v57, %s408_s29  ;;  %s301_s29 = smov 192 }
  0x25   :  { %231 = vrot.lane.b32.xlu1 %v230_v53, %s409_s16  ;;  %v393_v4 = vld [vmem:[%s742_s0 + $0x31] ss:$8 sm:%s301_s29]   ;;  %s18_s29 = smov 3 }
  0x26   :  { %v304_v7 = vsel %vm54_vm3, %v393_v4, %v299_v3  ;;  %v323_v17 = vld [vmem:[%s742_s0 + $0x80] ss:$8 sm:%s18_s29]  }
  0x27   :  { %324 = vst.msk [vmem:[%s743_s1 + $0x20] sm:$0x3] %vm6_vm4, %v323_v17  }
  0x29   :  { %215 = vrot.lane.b32.xlu0 %v214_v55, %s409_s16 }
  0x2c   :  { %241 = vrot.lane.b32.xlu2 %v378_v2, %s409_s16 }
  0x2d   :  { %268 = vrot.lane.b32.xlu1 %v267_v62, %s410_s3 }
  0x31   :  { %252 = vrot.lane.b32.xlu0 %v251_v0, %s410_s3 }
  0x34   :  { %278 = vrot.lane.b32.xlu2 %v387_v9, %s410_s3 }
  0x35   :  { %305 = vrot.lane.b32.xlu1 %v304_v7, %s411_s13 }
  0x39   :  { %289 = vrot.lane.b32.xlu0 %v288_v8, %s411_s13 }
  0x3c   :  { %315 = vrot.lane.b32.xlu2 %v396_v10, %s411_s13 }
  0x66   :  { %v121_v18 = vpop.permute.xlu2 %120  }
  0x6e   :  { %v131_v19 = vpop.permute.xlu2 %130  }
  0x76   :  { %v168_v22 = vpop.permute.xlu2 %167  }
  0x77   :  { %v91_v20 = vpop.permute.xlu1 %90  }
  0x78   :  { %342 = vst.msk [vmem:[%s743_s1 + $0x1e] sm:$0x3] %vm39_vm5, %v91_v20  }
  0x79   :  { %343 = vst.msk [vmem:[%s743_s1 + $0x16] sm:$0x3] %vm42_vm6, %v91_v20  }
  0x7a   :  { %352 = vst.msk [vmem:[%s743_s1 + $0x16] sm:$0x3] %vm106_vm7, %v131_v19  }
  0x7b   :  { %v38_v21 = vpop.permute.xlu0 %37   ;;  %361 = vst.msk [vmem:[%s743_s1 + $0x16] sm:$0x3] %vm143_vm8, %v168_v22  }
  0x7c   :  { %329 = vst.msk [vmem:[%s743_s1 + $0x8] sm:$0xff] %vm39_vm5, %v38_v21  }
  0x7d   :  { %43 = vst.msk [vmem:[%s743_s1] sm:$0xff] %vm42_vm6, %v38_v21  }
  0x7e   :  { %v205_v25 = vpop.permute.xlu2 %204  }
  0x7f   :  { %v105_v23 = vpop.permute.xlu1 %104   ;;  %370 = vst.msk [vmem:[%s743_s1 + $0x16] sm:$0x3] %vm180_vm9, %v205_v25  }
  0x80   :  { %107 = vst.msk [vmem:[%s743_s1] sm:$0xff] %vm106_vm7, %v105_v23  }
  0x83   :  { %v71_v24 = vpop.permute.xlu0 %70  }
  0x84   :  { %336 = vst.msk [vmem:[%s743_s1 + $0x28] sm:$0x3] %vm39_vm5, %v71_v24  }
  0x85   :  { %337 = vst.msk [vmem:[%s743_s1 + $0x16] sm:$0xfc] %vm39_vm5, %v71_v24  }
  0x86   :  { %338 = vst.msk [vmem:[%s743_s1 + $0x20] sm:$0x3] %vm42_vm6, %v71_v24   ;;  %v242_v28 = vpop.permute.xlu2 %241  }
  0x87   :  { %339 = vst.msk [vmem:[%s743_s1 + $0xe] sm:$0xfc] %vm42_vm6, %v71_v24   ;;  %v158_v26 = vpop.permute.xlu1 %157  }
  0x88   :  { %349 = vst.msk [vmem:[%s743_s1 + $0x20] sm:$0x3] %vm106_vm7, %v121_v18  }
  0x89   :  { %350 = vst.msk [vmem:[%s743_s1 + $0xe] sm:$0xfc] %vm106_vm7, %v121_v18  }
  0x8a   :  { %358 = vst.msk [vmem:[%s743_s1 + $0x20] sm:$0x3] %vm143_vm8, %v158_v26  }
  0x8b   :  { %359 = vst.msk [vmem:[%s743_s1 + $0xe] sm:$0xfc] %vm143_vm8, %v158_v26   ;;  %v142_v27 = vpop.permute.xlu0 %141  }
  0x8c   :  { %144 = vst.msk [vmem:[%s743_s1] sm:$0xff] %vm143_vm8, %v142_v27  }
  0x8d   :  { %379 = vst.msk [vmem:[%s743_s1 + $0x16] sm:$0x3] %vm217_vm10, %v242_v28  }
  0x8e   :  { %v279_v31 = vpop.permute.xlu2 %278  }
  0x8f   :  { %v195_v29 = vpop.permute.xlu1 %194   ;;  %388 = vst.msk [vmem:[%s743_s1 + $0x16] sm:$0x3] %vm254_vm11, %v279_v31  }
  0x90   :  { %367 = vst.msk [vmem:[%s743_s1 + $0x20] sm:$0x3] %vm180_vm9, %v195_v29  }
  0x91   :  { %368 = vst.msk [vmem:[%s743_s1 + $0xe] sm:$0xfc] %vm180_vm9, %v195_v29  }
  0x93   :  { %v179_v30 = vpop.permute.xlu0 %178  }
  0x94   :  { %181 = vst.msk [vmem:[%s743_s1] sm:$0xff] %vm180_vm9, %v179_v30  }
  0x96   :  { %v316_v34 = vpop.permute.xlu2 %315  }
  0x97   :  { %v232_v32 = vpop.permute.xlu1 %231   ;;  %397 = vst.msk [vmem:[%s743_s1 + $0x16] sm:$0x3] %vm291_vm12, %v316_v34  }
  0x98   :  { %376 = vst.msk [vmem:[%s743_s1 + $0x20] sm:$0x3] %vm217_vm10, %v232_v32  }
  0x99   :  { %377 = vst.msk [vmem:[%s743_s1 + $0xe] sm:$0xfc] %vm217_vm10, %v232_v32  }
  0x9b   :  { %v216_v33 = vpop.permute.xlu0 %215  }
  0x9c   :  { %218 = vst.msk [vmem:[%s743_s1] sm:$0xff] %vm217_vm10, %v216_v33  }
  0x9f   :  { %v269_v35 = vpop.permute.xlu1 %268  }
  0xa0   :  { %385 = vst.msk [vmem:[%s743_s1 + $0x20] sm:$0x3] %vm254_vm11, %v269_v35  }
  0xa1   :  { %386 = vst.msk [vmem:[%s743_s1 + $0xe] sm:$0xfc] %vm254_vm11, %v269_v35  }
  0xa3   :  { %v253_v36 = vpop.permute.xlu0 %252  }
  0xa4   :  { %255 = vst.msk [vmem:[%s743_s1] sm:$0xff] %vm254_vm11, %v253_v36  }
  0xa7   :  { %v306_v37 = vpop.permute.xlu1 %305  }
  0xa8   :  { %394 = vst.msk [vmem:[%s743_s1 + $0x20] sm:$0x3] %vm291_vm12, %v306_v37  }
  0xa9   :  { %395 = vst.msk [vmem:[%s743_s1 + $0xe] sm:$0xfc] %vm291_vm12, %v306_v37  }
  0xab   :  { %v290_v38 = vpop.permute.xlu0 %289  }
  0xac   :  { %292 = vst.msk [vmem:[%s743_s1] sm:$0xff] %vm291_vm12, %v290_v38  }

// kernel: model_forward.1
= control target key start
LH: loop header
LB: loop body
LE: loop exit
PB: predicated region body
PF: predicated region fallthrough
CT: control target
= control target key end

     0   :  { %vm132_vm0 = vcmask 1045504   ;;  %s3343_s19 = smov 64   ;;  %s4957_s0 = inlined_call_operand.vmem [shape: f32[18,44], index: 0, kind: input, shape index: {}]   ;;  %s4958_s1 = inlined_call_operand.vmem [shape: f32[2,12], index: 1, kind: input, shape index: {}]   ;;  %s4959_s2 = inlined_call_operand.vmem [shape: f32[18,64], index: 2, kind: input, shape index: {}]   ;;  %s4960_s3 = inlined_call_operand.vmem [shape: f32[18,144], index: 3, kind: input, shape index: {}]   ;;  %s4961_s4 = inlined_call_operand.vmem [shape: f32[144,64], index: 4, kind: input, shape index: {}]   ;;  %s4962_s5 = inlined_call_operand.vmem [shape: bf16[144,144], index: 5, kind: input, shape index: {}]   ;;  %s4963_s6 = inlined_call_operand.vmem [shape: bf16[44,64], index: 6, kind: input, shape index: {}]   ;;  %s4964_s7 = inlined_call_operand.vmem [shape: bf16[2,64,192], index: 7, kind: input, shape index: {}]   ;;  %s4965_s8 = inlined_call_operand.vmem [shape: bf16[2,64,64], index: 8, kind: input, shape index: {}]   ;;  %s4966_s9 = inlined_call_operand.vmem [shape: bf16[2,64,128], index: 9, kind: input, shape index: {}]   ;;  %s4967_s10 = inlined_call_operand.vmem [shape: bf16[2,128,64], index: 10, kind: input, shape index: {}]   ;;  %s4968_s11 = inlined_call_operand.vmem [shape: f32[2,8,192], index: 11, kind: input, shape index: {}]   ;;  %s4969_s12 = inlined_call_operand.vmem [shape: f32[140,48], index: 12, kind: input, shape index: {}]   ;;  %s4970_s13 = inlined_call_operand.vmem [shape: f32[5,128], index: 13, kind: input, shape index: {}]   ;;  %s4971_s14 = inlined_call_operand.hbm [shape: f32[2,5], index: 14, kind: output, shape index: {}]  }
   0x1   :  { %v2755_v0 = vld [vmem:[%s4963_s6 + $0x10] sm:$0xf]  ;;  %v3125_v1 = vld [vmem:[%s4963_s6 + $0x10] sm:$0x30]  ;;  %v3432_v3 = vld [vmem:[%s4961_s4 + $0x60] sm:$0xff] }
   0x2   :  { %v2756_v2 = vor.u32 %v3125_v1, %v2755_v0  ;;  %325 = vrot.lane.b32.xlu1 %v3432_v3, %s3343_s19  ;;  %v2785_v5 = vld [vmem:[%s4964_s7 + $0x30] sm:$0xf]  ;;  %v3133_v6 = vld [vmem:[%s4964_s7 + $0x34] sm:$0xf0]  ;;  %v3124_v7 = vld [vmem:[%s4963_s6 + $0x8] sm:$0xff] }
   0x3   :  { %v2786_v8 = vor.u32 %v3133_v6, %v2785_v5  ;;  %v3132_v9 = vld [vmem:[%s4964_s7 + $0x34] sm:$0xf]  ;;  %v2787_v10 = vld [vmem:[%s4964_s7 + $0x38] sm:$0xf0] }
   0x4   :  { %v134_v4 = vsel %vm132_vm0, %v2756_v2, 0 }
   0x5   :  { %141 = vmatpush.bf16.msra.mxu0 %v134_v4  ;;  %3174 = vmatpush.bf16.msra.mxu2 %v134_v4 }
   0x6   :  { %219 = vmatpush.bf16.msra.mxu1 %v2786_v8 }
   0x7   :  { %19 = vsyncpa [#allocation3], 0  ;;  %v3123_v11 = vld [vmem:[%s4963_s6] sm:$0xff]  ;;  %v95_v13 = vld [vmem:[%s4957_s0 + $0x8] sm:$0xff]  ;;  %v2790_v16 = vor.u32 %v3132_v9, %v2787_v10  ;;  %vm125_vm1 = vcmask 359424   ;;  %vm208_vm2 = vcmask 523264  }
   0x8   :  { %v94_v12 = vld [vmem:[%s4957_s0] sm:$0xff]  ;;  %v96_v14 = vld [vmem:[%s4957_s0 + $0x10] sm:$0x3]  ;;  %v3467_v15 = vld [vmem:[%s4961_s4 + $0x68] sm:$0xff]  ;;  %vm263_vm3 = vcmask 1043456   ;;  %vm254_vm4 = vcmask 1041408  }
   0x9   :  { %142 = vmatpush.bf16.msra.mxu0 %v3124_v7  ;;  %3175 = vmatpush.bf16.msra.mxu2 %v3124_v7  ;;  %v103_v17 = vpack.c.bf16 %v95_v13, %v94_v12  ;;  %v104_v18 = vpack.c.bf16 %v96_v14, %v96_v14  ;;  %v2777_v19 = vld [vmem:[%s4964_s7 + $0x20] sm:$0xf]  ;;  %v3131_v20 = vld [vmem:[%s4964_s7 + $0x24] sm:$0xf0]  ;;  %v3130_v21 = vld [vmem:[%s4964_s7 + $0x24] sm:$0xf] }
   0xa   :  { %327 = vrot.lane.b32.xlu1 %v3467_v15, %s3343_s19  ;;  %v2778_v22 = vor.u32 %v3131_v20, %v2777_v19  ;;  %v2779_v23 = vld [vmem:[%s4964_s7 + $0x28] sm:$0xf0]  ;;  %v2769_v26 = vld [vmem:[%s4964_s7 + $0x10] sm:$0xf]  ;;  %v3129_v27 = vld [vmem:[%s4964_s7 + $0x14] sm:$0xf0] }
   0xb   :  { %v2782_v24 = vor.u32 %v3130_v21, %v2779_v23  ;;  %v3486_v25 = vld [vmem:[%s4961_s4 + $0x48] sm:$0xff]  ;;  %v2770_v28 = vor.u32 %v3129_v27, %v2769_v26  ;;  %v3128_v29 = vld [vmem:[%s4964_s7 + $0x14] sm:$0xf]  ;;  %v2771_v30 = vld [vmem:[%s4964_s7 + $0x18] sm:$0xf0]  ;;  %vm549_vm5 = vcmask 130048  }
   0xc   :  { %220 = vmatpush.bf16.msra.mxu1 %v2778_v22  ;;  %v2774_v31 = vor.u32 %v3128_v29, %v2771_v30  ;;  %v2761_v32 = vld [vmem:[%s4964_s7] sm:$0xf]  ;;  %v3127_v33 = vld [vmem:[%s4964_s7 + $0x4] sm:$0xf0]  ;;  %v3126_v34 = vld [vmem:[%s4964_s7 + $0x4] sm:$0xf] }
   0xd   :  { %143 = vmatpush.bf16.msra.mxu0 %v3123_v11  ;;  %3176 = vmatpush.bf16.msra.mxu2 %v3123_v11  ;;  %v2762_v35 = vor.u32 %v3127_v33, %v2761_v32  ;;  %v2763_v36 = vld [vmem:[%s4964_s7 + $0x8] sm:$0xf0]  ;;  %v3517_v38 = vld [vmem:[%s4961_s4 + $0x20] sm:$0xff]  ;;  %v3524_v39 = vld [vmem:[%s4961_s4 + $0x70] sm:$0xff]  ;;  %vm559_vm6 = vcmask 123904   ;;  %s3344_s23 = smov 96  }
   0xe   :  { %v2766_v37 = vor.u32 %v3126_v34, %v2763_v36  ;;  %329 = vrot.lane.b32.xlu0 %v3524_v39, %s3343_s19  ;;  %v3531_v40 = vld [vmem:[%s4961_s4 + $0x50] sm:$0xff]  ;;  %v3545_v42 = vld [vmem:[%s4961_s4 + $0x78] sm:$0xff]  ;;  %v3559_v44 = vld [vmem:[%s4961_s4] sm:$0xff]  ;;  %vm874_vm7 = vcmask 261120   ;;  %vm881_vm8 = vcmask 254976   ;;  %s3347_s22 = smov [#allocation2]  }
   0xf   :  { %321 = vrot.lane.b32.xlu2 %v3531_v40, %s3343_s19  ;;  %v3538_v41 = vld [vmem:[%s4961_s4 + $0x10] sm:$0xff]  ;;  %v3550_v43 = vld [vmem:[%s4961_s4 + $0x58] sm:$0xff]  ;;  %v3566_v45 = vld [vmem:[%s4961_s4 + $0x40] sm:$0xff]  ;;  %s2734_s24 = sshll.u32 %s3347_s22, 4  ;;  %s2736_s0 = sshll.u32 %s4971_s14, 4  ;;  %s2735_s24 = int_to_ptr.vmem [resolvable:$true] %s2734_s24  ;;  %s2737_s0 = int_to_ptr.hbm [resolvable:$true] %s2736_s0 }
  0x10   :  { %2757 = vmatmul.msk.bf16.vlgmr.msra.gmra.mxu0 %vm125_vm1, %v103_v17  ;;  %2758 = vmatmul.msk.bf16.vlgmr.msra.gmra.mxu2 %vm125_vm1, %v104_v18  ;;  %v3573_v46 = vld [vmem:[%s4961_s4 + $0x30] sm:$0xff]  ;;  %v3580_v47 = vld [vmem:[%s4961_s4 + $0x80] sm:$0xff]  ;;  %v3585_v49 = vld [vmem:[%s4961_s4 + $0x38] sm:$0xff] }
  0x11   :  { %237 = vmatpush.bf16.msrb.mxu2 %v2790_v16  ;;  %221 = vmatpush.bf16.msra.mxu1 %v2770_v28  ;;  %v3592_v50 = vld [vmem:[%s4961_s4 + $0x28] sm:$0xff]  ;;  %v105_v51 = vld [vmem:[%s4959_s2] sm:$0xff]  ;;  %v3613_v58 = vld [vmem:[%s4961_s4 + $0x18] sm:$0xff] }
  0x12   :  { %319 = vrot.lane.b32.xlu1 %v3486_v25, %s3343_s19  ;;  %v106_v52 = vld [vmem:[%s4959_s2 + $0x8] sm:$0xff]  ;;  %v107_v60 = vld [vmem:[%s4959_s2 + $0x10] sm:$0x3]  ;;  %v2865_v9 = vld [vmem:[%s4962_s5 + $0x80] sm:$0xf] }
  0x13   :  { %v3625_v61 = vld [vmem:[%s4961_s4 + $0x8] sm:$0xff]  ;;  %v3674_v17 = vld [vmem:[%s4968_s11] sm:$0xff] }
  0x14   :  { %v3636_v0 = vld [vmem:[%s4961_s4 + $0x88] sm:$0xff]  ;;  %4995 = vst [vmem:[#allocation12_spill] sm:$0xff] %v3674_v17  ;;  %v166_v18 = vperm.slane %v3674_v17, 0 }
  0x15   :  { %238 = vmatpush.bf16.msrb.mxu2 %v2782_v24  ;;  %222 = vmatpush.bf16.msra.mxu1 %v2762_v35  ;;  %v3122_v10 = vld [vmem:[%s4962_s5 + $0x84] sm:$0xf0] }
  0x16   :  { %331 = vrot.lane.b32.xlu0 %v3545_v42, %s3343_s19  ;;  %v3664_v12 = vor.u32 %v3122_v10, %v2865_v9  ;;  %v155_v22 = vld [vmem:[%s4968_s11 + $0x8] sm:$0xff] }
  0x17   :  { %323 = vrot.lane.b32.xlu2 %v3550_v43, %s3343_s19  ;;  %v167_v28 = vperm.slane %v155_v22, 0 }
  0x18   :  { %4993 = vst [vmem:[#allocation10_spill] sm:$0xff] %v3664_v12 }
  0x19   :  { %239 = vmatpush.bf16.msrb.mxu2 %v2774_v31 }
  0x1a   :  { %309 = vrot.lane.b32.xlu1 %v3517_v38, %s3343_s19 }
  0x1d   :  { %240 = vmatpush.bf16.msrb.mxu2 %v2766_v37 }
  0x1e   :  { %317 = vrot.lane.b32.xlu0 %v3566_v45, %s3343_s19 }
  0x1f   :  { %313 = vrot.lane.b32.xlu2 %v3573_v46, %s3343_s19 }
  0x21   :  { %707 = vmatpush.bf16.msra.mxu2 %v3664_v12 }
  0x22   :  { %305 = vrot.lane.b32.xlu1 %v3538_v41, %s3343_s19 }
  0x26   :  { %315 = vrot.lane.b32.xlu0 %v3585_v49, %s3343_s19 }
  0x27   :  { %311 = vrot.lane.b32.xlu2 %v3592_v50, %s3343_s19 }
  0x2a   :  { %301 = vrot.lane.b32.xlu1 %v3559_v44, %s3343_s19 }
  0x2f   :  { %307 = vrot.lane.b32.xlu2 %v3613_v58, %s3343_s19 }
  0x32   :  { %333 = vrot.lane.b32.xlu1 %v3580_v47, %s3343_s19 }
  0x37   :  { %303 = vrot.lane.b32.xlu2 %v3625_v61, %s3343_s19 }
  0x3f   :  { %335 = vrot.lane.b32.xlu2 %v3636_v0, %s3343_s19 }
  0x69   :  { %v3642_v1 = vpop.permute.xlu2 %321 }
  0x71   :  { %v3646_v4 = vpop.permute.xlu2 %323 }
  0x74   :  { %v3644_v2 = vpop.permute.xlu1 %325 }
  0x79   :  { %v3650_v6 = vpop.permute.xlu2 %313 }
  0x7a   :  { %4991 = vst [vmem:[#allocation8_spill] sm:$0xff] %v3650_v6 }
  0x7c   :  { %v3648_v5 = vpop.permute.xlu1 %327 }
  0x80   :  { %v3654_v8 = vpop.permute.xlu0 %329 }
  0x81   :  { %4992 = vst [vmem:[#allocation9_spill] sm:$0xff] %v3654_v8  ;;  %v3662_v11 = vpop.permute.xlu2 %311 }
  0x84   :  { %v3652_v7 = vpop.permute.xlu1 %319 }
  0x88   :  { %v3668_v16 = vpop.permute.xlu0 %331 }
  0x89   :  { %v3677_v21 = vpop.permute.xlu2 %307 }
  0x8c   :  { %v3666_v14 = vpop.permute.xlu1 %309 }
  0x8d   :  { %v145_v48 = vpop.f32.mrf.mxu0  ;;  %4994 = vst [vmem:[#allocation11_spill] sm:$0xff] %v3666_v14 }
  0x8e   :  { %v3604_v55 = vadd.f32 %v145_v48, %v105_v51 }
  0x90   :  { %4988 = vst [vmem:[#allocation5_spill] sm:$0xff] %v3604_v55  ;;  %v3688_v27 = vpop.permute.xlu0 %317 }
  0x91   :  { %v3704_v51 = vpop.permute.xlu2 %303 }
  0x93   :  { %v150_v53 = vpop.f32.mrf.mxu2 }
  0x94   :  { %v3627_v62 = vadd.f32 %v150_v53, %v107_v60  ;;  %v3686_v26 = vpop.permute.xlu1 %305 }
  0x95   :  { %v147_v54 = vpop.f32.mrf.mxu0 }
  0x96   :  { %v3606_v56 = vadd.f32 %v147_v54, %v106_v52  ;;  %4990 = vst [vmem:[#allocation7_spill] sm:$0xff] %v3627_v62  ;;  %v165_v63 = vpack.c.bf16 %v3627_v62, %v3627_v62 }
  0x98   :  { %4989 = vst [vmem:[#allocation6_spill] sm:$0xff] %v3606_v56  ;;  %v164_v57 = vpack.c.bf16 %v3606_v56, %v3604_v55  ;;  %v3715_v10 = vpop.permute.xlu0 %315 }
  0x9a   :  { %2791 = vmatmul.msk.bf16.vlgmr.msra.gmra.mxu1 %vm208_vm2, %v164_v57  ;;  %2793 = vmatmul.msk.bf16.vlgmr.msrb.gmra.mxu2 %vm208_vm2, %v164_v57 }
  0x9b   :  { %v152_v59 = vpop.f32.mrf.mxu2 }
  0xaa   :  { %2792 = vmatmul.msk.bf16.gmra.mxu1 %vm208_vm2, %v165_v63  ;;  %2794 = vmatmul.msk.bf16.gmra.mxu2 %vm208_vm2, %v165_v63  ;;  %v3712_v63 = vpop.permute.xlu1 %301 }
 0x117   :  { %v224_v13 = vpop.f32.mrf.mxu1 }
 0x118   :  { %v3684_v24 = vadd.f32 %v224_v13, %v166_v18 }
 0x11a   :  { %v264_v34 = vrot.slane %v3684_v24, 4  ;;  %v272_v52 = vrot.slane %v3684_v24, 2 }
 0x11d   :  { %v242_v19 = vpop.f32.mrf.mxu2 }
 0x11e   :  { %v3695_v32 = vadd.f32 %v242_v19, %v167_v28 }
 0x11f   :  { %v226_v20 = vpop.f32.mrf.mxu1 }
 0x120   :  { %v3682_v23 = vadd.f32 %v226_v20, %v166_v18  ;;  %v393_v59 = vrot.slane %v3695_v32, 4 }
 0x122   :  { %v3692_v29 = vpack.c.bf16 %v3682_v23, %v3684_v24  ;;  %v265_v31 = vrot.slane %v3682_v23, 4  ;;  %v273_v35 = vrot.slane %v3682_v23, 2  ;;  %v256_v57 = vrot.slane %v3682_v23, 6 }
 0x124   :  { %4996 = vst [vmem:[#allocation13_spill] sm:$0xff] %v3692_v29  ;;  %v266_v48 = vsel %vm263_vm3, %v264_v34, %v265_v31  ;;  %v274_v9 = vsel %vm132_vm0, %v272_v52, %v273_v35 }
 0x125   :  { %v244_v30 = vpop.f32.mrf.mxu2  ;;  %v360_v55 = vmul.f32 %v3662_v11, %v266_v48 }
 0x126   :  { %v3701_v37 = vadd.f32 %v244_v30, %v167_v28 }
 0x127   :  { %v229_v33 = vpop.f32.mrf.mxu1 }
 0x128   :  { %v3699_v36 = vadd.f32 %v229_v33, %v166_v18  ;;  %v369_v18 = vmul.f32 %v3654_v8, %v266_v48  ;;  %v394_v20 = vrot.slane %v3701_v37, 4  ;;  %v386_v17 = vrot.slane %v3701_v37, 6 }
 0x12a   :  { %v258_v53 = vrot.slane %v3699_v36, 6  ;;  %v267_v54 = vrot.slane %v3699_v36, 4  ;;  %v275_v22 = vrot.slane %v3699_v36, 2 }
 0x12c   :  { %v268_v13 = vsel %vm263_vm3, %v265_v31, %v267_v54  ;;  %v259_v19 = vsel %vm254_vm4, %v256_v57, %v258_v53  ;;  %v401_v54 = vrot.slane %v3695_v32, 2  ;;  %v362_v53 = vmul.f32 %v3715_v10, %v274_v9 }
 0x12d   :  { %v247_v30 = vpop.f32.mrf.mxu2  ;;  %v282_v33 = vsel %vm132_vm0, %v268_v13, %v272_v52  ;;  %v281_v60 = vsel %vm263_vm3, %v259_v19, %v264_v34 }
 0x12e   :  { %v248_v12 = vadd.f32 %v247_v30, %v167_v28  ;;  %v370_v62 = vmul.f32 %v3668_v16, %v282_v33  ;;  %v359_v56 = vmul.f32 %v3666_v14, %v281_v60  ;;  %v361_v31 = vmul.f32 %v3650_v6, %v282_v33  ;;  %v3734_v6 = vpop.permute.xlu2 %335 }
 0x12f   :  { %v231_v8 = vpop.f32.mrf.mxu1  ;;  %v402_v28 = vrot.slane %v3701_v37, 2  ;;  %v395_v14 = vsel %vm263_vm3, %v393_v59, %v394_v20  ;;  %v276_v33 = vsel %vm132_vm0, %v273_v35, %v275_v22  ;;  %v385_v35 = vrot.slane %v3695_v32, 6 }
 0x130   :  { %v388_v29 = vrot.slane %v248_v12, 6  ;;  %v396_v52 = vrot.slane %v248_v12, 4  ;;  %v380_v13 = vpack.c.bf16 %v370_v62, %v369_v18  ;;  %v404_v34 = vrot.slane %v248_v12, 2 }
 0x131   :  { %v375_v19 = vpack.c.bf16 %v360_v55, %v359_v56  ;;  %v376_v30 = vpack.c.bf16 %v362_v53, %v361_v31  ;;  %v4997_v55 = vrot.slane %v3684_v24, 6  ;;  %v356_v22 = vmul.f32 %v3704_v51, %v3682_v23 }
 0x132   :  { %464 = vrot.lane.b32.xlu0 %v380_v13, %s3343_s19  ;;  %v397_v8 = vsel %vm263_vm3, %v394_v20, %v396_v52  ;;  %v389_v48 = vsel %vm254_vm4, %v386_v17, %v388_v29  ;;  %v3749_v20 = vpop.permute.xlu1 %333  ;;  %v426_v29 = vmul.f32 %v395_v14, %v3524_v39  ;;  %v368_v53 = vmul.f32 %v3648_v5, %v281_v60 }
 0x133   :  { %454 = vrot.lane.b32.xlu2 %v375_v19, %s3343_s19  ;;  %456 = vrot.lane.b32.xlu1 %v376_v30, %s3343_s19  ;;  %v411_v62 = vsel %vm132_vm0, %v397_v8, %v401_v54  ;;  %v257_v56 = vsel %vm254_vm4, %v4997_v55, %v256_v57  ;;  %v410_v18 = vsel %vm263_vm3, %v389_v48, %v393_v59 }
 0x134   :  { %v427_v31 = vmul.f32 %v411_v62, %v3545_v42  ;;  %v372_v52 = vmul.f32 %v3734_v6, %v276_v33  ;;  %v387_v57 = vsel %vm254_vm4, %v385_v35, %v386_v17  ;;  %v405_v19 = vsel %vm132_vm0, %v402_v28, %v404_v34 }
 0x135   :  { %v249_v13 = vpop.f32.mrf.mxu2  ;;  %v403_v59 = vsel %vm132_vm0, %v401_v54, %v402_v28  ;;  %v367_v8 = vmul.f32 %v3644_v2, %v257_v56  ;;  %v425_v48 = vmul.f32 %v410_v18, %v3467_v15  ;;  %v355_v39 = vmul.f32 %v3712_v63, %v3684_v24 }
 0x136   :  { %v437_v30 = vpack.c.bf16 %v427_v31, %v426_v29  ;;  %v371_v42 = vmul.f32 %v3749_v20, %v274_v9  ;;  %v409_v60 = vsel %vm254_vm4, %v248_v12, %v385_v35  ;;  %v424_v17 = vmul.f32 %v387_v57, %v3432_v3 }
 0x137   :  { %v379_v55 = vpack.c.bf16 %v368_v53, %v367_v8  ;;  %v3766_v34 = vmul.f32 %v403_v59, %v3580_v47  ;;  %v3769_v54 = vmul.f32 %v405_v19, %v3636_v0  ;;  %v373_v28 = vpack.c.bf16 %v356_v22, %v355_v39 }
 0x138   :  { %776 = vmatpush.bf16.msrb.mxu2 %v437_v30  ;;  %v381_v29 = vpack.c.bf16 %v372_v52, %v371_v42  ;;  %v4998_v15 = vrot.slane %v3684_v24, 6  ;;  %v436_v12 = vpack.c.bf16 %v425_v48, %v424_v17  ;;  %v423_v9 = vmul.f32 %v409_v60, %v3550_v43 }
 0x139   :  { %v438_v3 = vpack.c.bf16 %v3769_v54, %v3766_v34  ;;  %v422_v47 = vmul.f32 %v3701_v37, %v3531_v40  ;;  %v365_v22 = vmul.f32 %v3642_v1, %v3682_v23  ;;  %v420_v53 = vmul.f32 %v405_v19, %v3566_v45  ;;  %v3119_v34 = vld [vmem:[%s4962_s5 + $0x74] sm:$0xf] }
 0x13a   :  { %v280_v31 = vsel %vm254_vm4, %v3699_v36, %v4998_v15  ;;  %462 = vrot.lane.b32.xlu0 %v379_v55, %s3343_s19  ;;  %v421_v52 = vmul.f32 %v3695_v32, %v3486_v25  ;;  %v418_v30 = vmul.f32 %v411_v62, %v3573_v46  ;;  %v363_v40 = vmul.f32 %v3688_v27, %v276_v33 }
 0x13b   :  { %450 = vrot.lane.b32.xlu1 %v373_v28, %s3343_s19  ;;  %466 = vrot.lane.b32.xlu2 %v381_v29, %s3343_s19  ;;  %v366_v0 = vmul.f32 %v3646_v4, %v280_v31  ;;  %v435_v35 = vpack.c.bf16 %v423_v9, %v422_v47  ;;  %v419_v8 = vmul.f32 %v403_v59, %v3585_v49 }
 0x13c   :  { %777 = vmatpush.bf16.msrb.mxu2 %v436_v12  ;;  %v434_v13 = vpack.c.bf16 %v421_v52, %v420_v53  ;;  %v364_v23 = vmul.f32 %v3652_v7, %v3684_v24  ;;  %v416_v45 = vmul.f32 %v410_v18, %v3517_v38  ;;  %v417_v25 = vmul.f32 %v395_v14, %v3592_v50  ;;  %v2857_v53 = vld [vmem:[%s4962_s5 + $0x70] sm:$0xf]  ;;  %v2849_v52 = vld [vmem:[%s4962_s5 + $0x60] sm:$0xf] }
 0x13d   :  { %v378_v43 = vpack.c.bf16 %v366_v0, %v365_v22  ;;  %v433_v48 = vpack.c.bf16 %v419_v8, %v418_v30  ;;  %v414_v46 = vmul.f32 %v409_v60, %v3538_v41  ;;  %v415_v33 = vmul.f32 %v387_v57, %v3613_v58  ;;  %v4999_v57 = vld [vmem:[#allocation13_spill] sm:$0xff]  ;;  %v2851_v8 = vld [vmem:[%s4962_s5 + $0x68] sm:$0xf0] }
 0x13e   :  { %v377_v19 = vpack.c.bf16 %v364_v23, %v363_v40  ;;  %v432_v39 = vpack.c.bf16 %v417_v25, %v416_v45  ;;  %v357_v49 = vmul.f32 %v3686_v26, %v280_v31  ;;  %v358_v59 = vmul.f32 %v3677_v21, %v257_v56  ;;  %v3117_v40 = vld [vmem:[%s4962_s5 + $0x64] sm:$0xf]  ;;  %v3116_v25 = vld [vmem:[%s4962_s5 + $0x54] sm:$0xf0] }
 0x13f   :  { %v431_v62 = vpack.c.bf16 %v415_v33, %v414_v46  ;;  %v413_v38 = vmul.f32 %v3701_v37, %v3625_v61  ;;  %v412_v50 = vmul.f32 %v3695_v32, %v3559_v44  ;;  %v440_v44 = vpack.c.bf16 %v3699_v36, %v3699_v36  ;;  %v3115_v46 = vld [vmem:[%s4962_s5 + $0x54] sm:$0xf]  ;;  %v2843_v33 = vld [vmem:[%s4962_s5 + $0x58] sm:$0xf0] }
 0x140   :  { %778 = vmatpush.bf16.msrb.mxu2 %v435_v35  ;;  %v374_v24 = vpack.c.bf16 %v358_v59, %v357_v49  ;;  %v3859_v45 = vor.u32 %v3117_v40, %v2851_v8  ;;  %v70_v59 = vld [vmem:[%s4960_s3] sm:$0xff]  ;;  %v3111_v40 = vld [vmem:[%s4962_s5 + $0x34] sm:$0xf]  ;;  %v2827_v8 = vld [vmem:[%s4962_s5 + $0x38] sm:$0xf0] }
 0x141   :  { %v430_v14 = vpack.c.bf16 %v413_v38, %v412_v50 }
 0x142   :  { %460 = vrot.lane.b32.xlu0 %v378_v43, %s3343_s19  ;;  %v3120_v43 = vld [vmem:[%s4962_s5 + $0x74] sm:$0xf0]  ;;  %5000 = vst [vmem:[#allocation13_spill] sm:$0xff] %v3859_v45 }
 0x143   :  { %v3836_v54 = vor.u32 %v3120_v43, %v2857_v53  ;;  %v3113_v53 = vld [vmem:[%s4962_s5 + $0x44] sm:$0xf] }
 0x144   :  { %779 = vmatpush.bf16.msrb.mxu2 %v434_v13  ;;  %v3118_v13 = vld [vmem:[%s4962_s5 + $0x64] sm:$0xf0] }
 0x145   :  { %682 = vmatpush.bf16.msrb.mxu1 %v3836_v54 }
 0x148   :  { %780 = vmatpush.bf16.msrb.mxu2 %v433_v48  ;;  %v3856_v48 = vor.u32 %v3118_v13, %v2849_v52  ;;  %v3112_v52 = vld [vmem:[%s4962_s5 + $0x34] sm:$0xf0] }
 0x14a   :  { %458 = vrot.lane.b32.xlu0 %v377_v19, %s3343_s19  ;;  %v2841_v19 = vld [vmem:[%s4962_s5 + $0x50] sm:$0xf]  ;;  %683 = vmatpush.bf16.msrb.mxu1 %v3856_v48 }
 0x14b   :  { %v3877_v49 = vor.u32 %v3116_v25, %v2841_v19  ;;  %v3953_v19 = vor.u32 %v3111_v40, %v2827_v8  ;;  %v2817_v25 = vld [vmem:[%s4962_s5 + $0x20] sm:$0xf] }
 0x14c   :  { %781 = vmatpush.bf16.msrb.mxu2 %v432_v39  ;;  %v71_v39 = vld [vmem:[%s4960_s3 + $0x8] sm:$0xff] }
 0x14d   :  { %5003 = vst [vmem:[#allocation16_spill] sm:$0xff] %v3953_v19 }
 0x14e   :  { %684 = vmatpush.bf16.msrb.mxu1 %v3877_v49 }
 0x150   :  { %782 = vmatpush.bf16.msrb.mxu2 %v431_v62 }
 0x152   :  { %452 = vrot.lane.b32.xlu0 %v374_v24, %s3343_s19  ;;  %v3885_v24 = vor.u32 %v3115_v46, %v2843_v33  ;;  %v3109_v46 = vld [vmem:[%s4962_s5 + $0x24] sm:$0xf] }
 0x154   :  { %783 = vmatpush.bf16.msrb.mxu2 %v430_v14  ;;  %5001 = vst [vmem:[#allocation14_spill] sm:$0xff] %v3885_v24 }
 0x18d   :  { %v455_v41 = vpop.permute.xlu2 %454 }
 0x18e   :  { %v481_v15 = vsel %vm208_vm2, %v455_v41, 0 }
 0x195   :  { %v467_v18 = vpop.permute.xlu2 %466 }
 0x196   :  { %v499_v58 = vsel %vm208_vm2, %v467_v18, 0 }
 0x197   :  { %526 = vmatpush.bf16.xpose.msrb.mxu0 %v499_v58  ;;  %v73_v58 = vld [vmem:[%s4960_s3 + $0x18] sm:$0xff] }
 0x19e   :  { %2797 = vmatmul.msk.bf16.vlgmr.msrb.gmra.mxu0 %vm208_vm2, %v4999_v57 }
 0x1a4   :  { %v465_v56 = vpop.permute.xlu0 %464 }
 0x1a5   :  { %v496_v61 = vsel %vm208_vm2, %v465_v56, 0  ;;  %v457_v28 = vpop.permute.xlu1 %456 }
 0x1a6   :  { %501 = vmatpush.bf16.xpose.msra.mxu3 %v496_v61  ;;  %v484_v29 = vsel %vm208_vm2, %v457_v28, 0  ;;  %v72_v61 = vld [vmem:[%s4960_s3 + $0x10] sm:$0xff]  ;;  %v74_v28 = vld [vmem:[%s4960_s3 + $0x20] sm:$0x3] }
 0x1ac   :  { %v463_v37 = vpop.permute.xlu0 %462 }
 0x1ad   :  { %v493_v32 = vsel %vm208_vm2, %v463_v37, 0  ;;  %v451_v12 = vpop.permute.xlu1 %450 }
 0x1ae   :  { %2798 = vmatmul.msk.bf16.gmra.mxu0 %vm208_vm2, %v440_v44  ;;  %502 = vmatpush.bf16.xpose.msra.mxu3 %v493_v32  ;;  %v475_v9 = vsel %vm208_vm2, %v451_v12, 0 }
 0x1b4   :  { %v461_v42 = vpop.permute.xlu0 %460 }
 0x1b5   :  { %v490_v60 = vsel %vm208_vm2, %v461_v42, 0 }
 0x1b6   :  { %503 = vmatpush.bf16.xpose.msra.mxu3 %v490_v60 }
 0x1bc   :  { %v459_v55 = vpop.permute.xlu0 %458 }
 0x1bd   :  { %v487_v17 = vsel %vm208_vm2, %v459_v55, 0 }
 0x1be   :  { %504 = vmatpush.bf16.xpose.msra.mxu3 %v487_v17  ;;  %v75_v17 = vld [vmem:[%s4960_s3 + $0x28] sm:$0x3] }
 0x1c4   :  { %v453_v36 = vpop.permute.xlu0 %452 }
 0x1c5   :  { %v478_v31 = vsel %vm208_vm2, %v453_v36, 0 }
 0x1c6   :  { %505 = vmatpush.bf16.xpose.msra.mxu3 %v484_v29 }
 0x1ce   :  { %506 = vmatpush.bf16.xpose.msra.mxu3 %v481_v15 }
 0x1d6   :  { %507 = vmatpush.bf16.xpose.msra.mxu3 %v478_v31 }
 0x1de   :  { %508 = vmatpush.bf16.xpose.msra.mxu3 %v475_v9 }
 0x1e5   :  { %2795 = vmatmul.msk.bf16.vlgmr.msra.gmra.mxu3 %vm208_vm2, %v4999_v57 }
 0x1e6   :  { %801 = vmatpush.bf16.msrb.mxu3 %v438_v3  ;;  %v2859_v3 = vld [vmem:[%s4962_s5 + $0x78] sm:$0xf0] }
 0x1e7   :  { %v3847_v30 = vor.u32 %v3119_v34, %v2859_v3  ;;  %v2835_v34 = vld [vmem:[%s4962_s5 + $0x48] sm:$0xf0]  ;;  %v2825_v3 = vld [vmem:[%s4962_s5 + $0x30] sm:$0xf] }
 0x1e8   :  { %v3941_v13 = vor.u32 %v3113_v53, %v2835_v34 }
 0x1e9   :  { %718 = vmatpush.bf16.msra.mxu0 %v3847_v30 }
 0x1ea   :  { %5002 = vst [vmem:[#allocation15_spill] sm:$0xff] %v3941_v13 }
 0x1ed   :  { %719 = vmatpush.bf16.msra.mxu0 %v3859_v45 }
 0x1f1   :  { %720 = vmatpush.bf16.msra.mxu0 %v3885_v24 }
 0x1f5   :  { %2796 = vmatmul.msk.bf16.gmra.mxu3 %vm208_vm2, %v440_v44  ;;  %721 = vmatpush.bf16.msra.mxu0 %v3941_v13 }
 0x1f9   :  { %722 = vmatpush.bf16.msra.mxu0 %v3953_v19 }
 0x21b   :  { %v528_v47 = vpop.f32.mrf.mxu0 }
 0x21c   :  { %v538_v23 = vmul.f32 0.35355338, %v528_v47 }
 0x21e   :  { %v3879_v62 = vadd.f32 %v538_v23, %v71_v39  ;;  %v3950_v23 = vor.u32 %v3112_v52, %v2825_v3  ;;  %v3110_v39 = vld [vmem:[%s4962_s5 + $0x24] sm:$0xf0] }
 0x21f   :  { %v3966_v33 = vor.u32 %v3110_v39, %v2817_v25 }
 0x220   :  { %v550_v18 = vsel %vm549_vm5, %v3879_v62, -inf }
 0x223   :  { %v530_v0 = vpop.f32.mrf.mxu0 }
 0x224   :  { %v540_v41 = vmul.f32 0.35355338, %v530_v0 }
 0x226   :  { %v3897_v56 = vadd.f32 %v540_v41, %v73_v58  ;;  %v2811_v58 = vld [vmem:[%s4962_s5 + $0x18] sm:$0xf0] }
 0x228   :  { %v554_v42 = vsel %vm549_vm5, %v3897_v56, -inf }
 0x22b   :  { %v533_v35 = vpop.f32.mrf.mxu0 }
 0x22c   :  { %v542_v60 = vmul.f32 0.35355338, %v533_v35  ;;  %v2833_v35 = vld [vmem:[%s4962_s5 + $0x40] sm:$0xf] }
 0x22e   :  { %v3913_v15 = vadd.f32 %v542_v60, %v75_v17  ;;  %v2803_v60 = vld [vmem:[%s4962_s5 + $0x8] sm:$0xf0] }
 0x22f   :  { %v2867_v17 = vld [vmem:[%s4962_s5 + $0x88] sm:$0xf0] }
 0x230   :  { %v560_v9 = vsel %vm559_vm6, %v3913_v15, -inf }
 0x233   :  { %v535_v22 = vpop.f32.mrf.mxu0 }
 0x234   :  { %v3114_v22 = vld [vmem:[%s4962_s5 + $0x44] sm:$0xf0] }
 0x235   :  { %v3930_v43 = vor.u32 %v3114_v22, %v2833_v35 }
 0x237   :  { %685 = vmatpush.bf16.msrb.mxu1 %v3930_v43 }
 0x23b   :  { %686 = vmatpush.bf16.msrb.mxu1 %v3950_v23 }
 0x23f   :  { %687 = vmatpush.bf16.msrb.mxu1 %v3966_v33 }
 0x268   :  { %v510_v38 = vpop.f32.mrf.mxu3 }
 0x269   :  { %v537_v50 = vmul.f32 0.35355338, %v510_v38  ;;  %v2809_v38 = vld [vmem:[%s4962_s5 + $0x10] sm:$0xf] }
 0x26b   :  { %v3887_v14 = vadd.f32 %v537_v50, %v70_v59  ;;  %v2819_v59 = vld [vmem:[%s4962_s5 + $0x28] sm:$0xf0]  ;;  %v3108_v50 = vld [vmem:[%s4962_s5 + $0x14] sm:$0xf0] }
 0x26c   :  { %v3977_v41 = vor.u32 %v3109_v46, %v2819_v59 }
 0x26d   :  { %v551_v57 = vmax.f32 %v3887_v14, %v550_v18  ;;  %v3107_v18 = vld [vmem:[%s4962_s5 + $0x14] sm:$0xf] }
 0x26e   :  { %5004 = vst [vmem:[#allocation17_spill] sm:$0xff] %v3977_v41  ;;  %723 = vmatpush.bf16.msra.mxu0 %v3977_v41 }
 0x26f   :  { %552 = vmax.xlane.f32.xlu0 %v551_v57  ;;  %v3986_v57 = vor.u32 %v3108_v50, %v2809_v38 }
 0x270   :  { %v512_v37 = vpop.f32.mrf.mxu3 }
 0x271   :  { %v539_v44 = vmul.f32 0.35355338, %v512_v37  ;;  %v2801_v37 = vld [vmem:[%s4962_s5] sm:$0xf]  ;;  %688 = vmatpush.bf16.msrb.mxu1 %v3986_v57 }
 0x273   :  { %v3902_v32 = vadd.f32 %v539_v44, %v72_v61  ;;  %v3989_v61 = vor.u32 %v3107_v18, %v2811_v58  ;;  %v3106_v44 = vld [vmem:[%s4962_s5 + $0x4] sm:$0xf0] }
 0x275   :  { %v555_v55 = vmax.f32 %v3902_v32, %v554_v42  ;;  %5005 = vst [vmem:[#allocation18_spill] sm:$0xff] %v3989_v61  ;;  %v3105_v42 = vld [vmem:[%s4962_s5 + $0x4] sm:$0xf]  ;;  %724 = vmatpush.bf16.msra.mxu0 %v3989_v61 }
 0x277   :  { %556 = vmax.xlane.f32.xlu1 %v555_v55  ;;  %v3121_v55 = vld [vmem:[%s4962_s5 + $0x84] sm:$0xf] }
 0x278   :  { %v515_v29 = vpop.f32.mrf.mxu3 }
 0x279   :  { %v541_v36 = vmul.f32 0.35355338, %v515_v29  ;;  %v4013_v29 = vor.u32 %v3105_v42, %v2803_v60 }
 0x27b   :  { %v3915_v31 = vadd.f32 %v541_v36, %v74_v28  ;;  %v4010_v28 = vor.u32 %v3106_v44, %v2801_v37  ;;  %5006 = vst [vmem:[#allocation19_spill] sm:$0xff] %v4013_v29  ;;  %v4015_v36 = vor.u32 %v3121_v55, %v2867_v17  ;;  %725 = vmatpush.bf16.msra.mxu0 %v4013_v29 }
 0x27d   :  { %v558_v12 = vsel %vm254_vm4, %v3915_v31, -inf  ;;  %689 = vmatpush.bf16.msrb.mxu1 %v4010_v28 }
 0x27e   :  { %v561_v47 = vmax.f32 %v558_v12, %v560_v9 }
 0x280   :  { %562 = vmax.xlane.f32.xlu2 %v561_v47  ;;  %v517_v0 = vpop.f32.mrf.mxu3 }
 0x281   :  { %743 = vmatpush.bf16.msra.mxu1 %v4015_v36 }
 0x2e2   :  { %v553_v12 = vpop.xlane.xlu0 %552 }
 0x2e3   :  { %v564_v9 = vsub.f32 %v3887_v14, %v553_v12  ;;  %v565_v47 = vsub.f32 %v3879_v62, %v553_v12 }
 0x2e5   :  { %v570_v0 = vmul.f32 1.442695, %v564_v9  ;;  %v572_v35 = vmul.f32 1.442695, %v565_v47 }
 0x2e7   :  { %3187 = vpow2.f32 %v570_v0 }
 0x2e8   :  { %3189 = vpow2.f32 %v572_v35 }
 0x2ea   :  { %v557_v22 = vpop.xlane.xlu1 %556 }
 0x2eb   :  { %v566_v53 = vsub.f32 %v3902_v32, %v557_v22  ;;  %v567_v34 = vsub.f32 %v3897_v56, %v557_v22 }
 0x2ed   :  { %v574_v3 = vmul.f32 1.442695, %v566_v53  ;;  %v576_v52 = vmul.f32 1.442695, %v567_v34  ;;  %v3188_v40 = vpop.eup %3187 }
 0x2ee   :  { %v3190_v25 = vpop.eup %3189 }
 0x2ef   :  { %3191 = vpow2.f32 %v574_v3 }
 0x2f0   :  { %3193 = vpow2.f32 %v576_v52 }
 0x2f3   :  { %v563_v8 = vpop.xlane.xlu2 %562 }
 0x2f4   :  { %v568_v14 = vsub.f32 %v3915_v31, %v563_v8  ;;  %v569_v46 = vsub.f32 %v3913_v15, %v563_v8 }
 0x2f5   :  { %v3192_v39 = vpop.eup %3191 }
 0x2f6   :  { %v3194_v62 = vpop.eup %3193  ;;  %v582_v59 = vpack.c.bf16 %v3192_v39, %v3188_v40  ;;  %v578_v56 = vmul.f32 1.442695, %v568_v14  ;;  %v580_v32 = vmul.f32 1.442695, %v569_v46 }
 0x2f7   :  { %v583_v38 = vpack.c.bf16 %v3194_v62, %v3190_v25 }
 0x2f8   :  { %690 = vmatmul.bf16.vlgmr.msrb.gmra.mxu1 %v582_v59  ;;  %726 = vmatmul.bf16.vlgmr.msra.gmra.mxu0 %v582_v59  ;;  %3195 = vpow2.f32 %v578_v56 }
 0x2f9   :  { %2871 = vmatmul.msk.bf16.vlgmr.msra.gmra.mxu2 %vm549_vm5, %v583_v38  ;;  %3197 = vpow2.f32 %v580_v32 }
 0x2fe   :  { %v3196_v50 = vpop.eup %3195 }
 0x2ff   :  { %v3198_v18 = vpop.eup %3197  ;;  %v584_v58 = vpack.c.bf16 %v3196_v50, %v3196_v50 }
 0x300   :  { %v585_v37 = vpack.c.bf16 %v3198_v18, %v3198_v18 }
 0x308   :  { %695 = vmatmul.bf16.gmra.mxu1 %v584_v58  ;;  %731 = vmatmul.bf16.gmra.mxu0 %v584_v58 }
 0x309   :  { %2872 = vmatmul.msk.bf16.gmra.mxu2 %vm549_vm5, %v585_v37 }
 0x318   :  { %2873 = vmatmul.msk.bf16.vlgmr.msra.gmra.mxu1 %vm549_vm5, %v583_v38 }
 0x328   :  { %2874 = vmatmul.msk.bf16.gmra.mxu1 %vm549_vm5, %v585_v37 }
 0x375   :  { %v691_v15 = vpop.f32.mrf.mxu1  ;;  %v727_v31 = vpop.f32.mrf.mxu0 }
 0x37c   :  { %v709_v44 = vpop.f32.mrf.mxu2 }
 0x37d   :  { %v693_v42 = vpop.f32.mrf.mxu1  ;;  %v729_v60 = vpop.f32.mrf.mxu0  ;;  %v710_v55 = vadd.f32 %v709_v44, %v691_v15 }
 0x37f   :  { %3199 = vrcp.f32 %v710_v55 }
 0x384   :  { %v711_v17 = vpop.f32.mrf.mxu2 }
 0x385   :  { %v712_v12 = vadd.f32 %v711_v17, %v693_v42  ;;  %v696_v9 = vpop.f32.mrf.mxu1  ;;  %v732_v47 = vpop.f32.mrf.mxu0 }
 0x386   :  { %v3200_v0 = vpop.eup %3199 }
 0x387   :  { %3201 = vrcp.f32 %v712_v12  ;;  %v760_v3 = vmul.f32 %v3200_v0, %v3188_v40 }
 0x38c   :  { %v714_v35 = vpop.f32.mrf.mxu2 }
 0x38d   :  { %v3202_v22 = vpop.eup %3201  ;;  %v698_v53 = vpop.f32.mrf.mxu1  ;;  %v715_v8 = vadd.f32 %v714_v35, %v696_v9 }
 0x38e   :  { %v734_v34 = vpop.f32.mrf.mxu0  ;;  %v762_v52 = vmul.f32 %v3202_v22, %v3192_v39 }
 0x38f   :  { %3203 = vrcp.f32 %v715_v8 }
 0x390   :  { %v766_v14 = vpack.c.bf16 %v762_v52, %v760_v3 }
 0x392   :  { %784 = vmatmul.bf16.vlgmr.msrb.gmra.mxu2 %v766_v14 }
 0x394   :  { %v716_v46 = vpop.f32.mrf.mxu2 }
 0x395   :  { %v745_v59 = vpop.f32.mrf.mxu1  ;;  %v3204_v38 = vpop.eup %3203 }
 0x396   :  { %v746_v56 = vadd.f32 %v745_v59, %v727_v31  ;;  %v764_v32 = vmul.f32 %v3204_v38, %v3196_v50 }
 0x398   :  { %3205 = vrcp.f32 %v746_v56  ;;  %v768_v15 = vpack.c.bf16 %v764_v32, %v764_v32  ;;  %v5007_v32 = vld [vmem:[#allocation12_spill] sm:$0xff] }
 0x39d   :  { %v747_v58 = vpop.f32.mrf.mxu1 }
 0x39e   :  { %v748_v37 = vadd.f32 %v747_v58, %v729_v60  ;;  %v3206_v44 = vpop.eup %3205  ;;  %v3137_v60 = vld [vmem:[%s4965_s8 + $0x18] sm:$0xff]  ;;  %v822_v58 = vperm.slane %v5007_v32, 1  ;;  %v49_v32 = vlaneseq }
 0x39f   :  { %v761_v40 = vmul.f32 %v3206_v44, %v3190_v25  ;;  %857 = vmatpush.bf16.msrb.mxu0 %v3137_v60  ;;  %v3136_v25 = vld [vmem:[%s4965_s8 + $0x10] sm:$0xff]  ;;  %v5008_v44 = vld [vmem:[#allocation5_spill] sm:$0xff] }
 0x3a0   :  { %3207 = vrcp.f32 %v748_v37 }
 0x3a2   :  { %789 = vmatmul.bf16.gmra.mxu2 %v768_v15 }
 0x3a3   :  { %858 = vmatpush.bf16.msrb.mxu0 %v3136_v25 }
 0x3a5   :  { %v750_v42 = vpop.f32.mrf.mxu1 }
 0x3a6   :  { %v3208_v55 = vpop.eup %3207  ;;  %v751_v17 = vadd.f32 %v750_v42, %v732_v47 }
 0x3a7   :  { %v763_v39 = vmul.f32 %v3208_v55, %v3194_v62  ;;  %v3135_v62 = vld [vmem:[%s4965_s8 + $0x8] sm:$0xff] }
 0x3a8   :  { %3209 = vrcp.f32 %v751_v17  ;;  %859 = vmatpush.bf16.msrb.mxu0 %v3135_v62 }
 0x3a9   :  { %v767_v12 = vpack.c.bf16 %v763_v39, %v761_v40  ;;  %v5009_v39 = vld [vmem:[#allocation6_spill] sm:$0xff] }
 0x3ab   :  { %2875 = vmatmul.msk.bf16.vlgmr.msrb.gmra.mxu3 %vm549_vm5, %v767_v12 }
 0x3ad   :  { %v752_v9 = vpop.f32.mrf.mxu1 }
 0x3ae   :  { %v3210_v0 = vpop.eup %3209 }
 0x3af   :  { %v765_v31 = vmul.f32 %v3210_v0, %v3198_v18  ;;  %v3134_v18 = vld [vmem:[%s4965_s8] sm:$0xff]  ;;  %v5010_v0 = vld [vmem:[#allocation7_spill] sm:$0xff] }
 0x3b0   :  { %860 = vmatpush.bf16.msrb.mxu0 %v3134_v18 }
 0x3b1   :  { %v769_v50 = vpack.c.bf16 %v765_v31, %v765_v31 }
 0x3bb   :  { %2876 = vmatmul.msk.bf16.gmra.mxu3 %vm549_vm5, %v769_v50 }
 0x415   :  { %v785_v47 = vpop.f32.mrf.mxu2 }
 0x41d   :  { %v787_v35 = vpop.f32.mrf.mxu2 }
 0x425   :  { %v790_v22 = vpop.f32.mrf.mxu2 }
 0x42d   :  { %v792_v53 = vpop.f32.mrf.mxu2 }
 0x42e   :  { %v803_v34 = vpop.f32.mrf.mxu3 }
 0x42f   :  { %v804_v52 = vadd.f32 %v803_v34, %v785_v47 }
 0x436   :  { %v805_v3 = vpop.f32.mrf.mxu3 }
 0x437   :  { %v806_v8 = vadd.f32 %v805_v3, %v787_v35  ;;  %v3345_v3 = vmov 32.0  }
 0x438   :  { %3211 = vrcp.f32 %v3345_v3 }
 0x439   :  { %v820_v14 = vpack.c.bf16 %v806_v8, %v804_v52 }
 0x43b   :  { %2893 = vmatmul.msk.bf16.vlgmr.msrb.gmra.mxu0 %vm208_vm2, %v820_v14 }
 0x43e   :  { %v808_v46 = vpop.f32.mrf.mxu3  ;;  %v3212_v52 = vpop.eup %3211 }
 0x43f   :  { %v809_v59 = vadd.f32 %v808_v46, %v790_v22  ;;  %v886_v8 = vmul.f32 32.0, %v3212_v52  ;;  %vm890_vm9 = vweird.f32 %v3212_v52 }
 0x441   :  { %v821_v56 = vpack.c.bf16 %v809_v59, %v809_v59  ;;  %v887_v14 = vsub.f32 1.0, %v886_v8 }
 0x443   :  { %v888_v46 = vmul.f32 %v3212_v52, %v887_v14 }
 0x445   :  { %v889_v59 = vadd.f32 %v3212_v52, %v888_v46 }
 0x446   :  { %v810_v38 = vpop.f32.mrf.mxu3 }
 0x447   :  { %v4071_v38 = vsel %vm890_vm9, %v3212_v52, %v889_v59 }
 0x44b   :  { %2894 = vmatmul.msk.bf16.gmra.mxu0 %vm208_vm2, %v821_v56 }
 0x4b8   :  { %v862_v37 = vpop.f32.mrf.mxu0 }
 0x4b9   :  { %v863_v15 = vadd.f32 %v862_v37, %v822_v58 }
 0x4bb   :  { %v4048_v42 = vadd.f32 %v863_v15, %v5008_v44  ;;  %v4075_v15 = vand.u32 127, %v49_v32 }
 0x4bd   :  { %898 = vrot.lane.b32.xlu2 %v4048_v42, %s3344_s23  ;;  %v875_v62 = vsel %vm874_vm7, %v4048_v42, 0.0  ;;  %vm51_vm10 = vcmp.lt.s32.totalorder %v4075_v15, 32  ;;  %v2487_v15 = vld [vmem:[%s4969_s12 + $0x38] sm:$0xff] }
 0x4c0   :  { %v864_v55 = vpop.f32.mrf.mxu0 }
 0x4c1   :  { %v865_v40 = vadd.f32 %v864_v55, %v822_v58 }
 0x4c3   :  { %v4053_v17 = vadd.f32 %v865_v40, %v5009_v39 }
 0x4c5   :  { %900 = vrot.lane.b32.xlu0 %v4053_v17, %s3344_s23  ;;  %v878_v22 = vsel %vm874_vm7, %v4053_v17, 0.0 }
 0x4c8   :  { %v867_v12 = vpop.f32.mrf.mxu0 }
 0x4c9   :  { %v868_v9 = vadd.f32 %v867_v12, %v822_v58 }
 0x4cb   :  { %v4058_v31 = vadd.f32 %v868_v9, %v5010_v0 }
 0x4cd   :  { %902 = vrot.lane.b32.xlu1 %v4058_v31, %s3344_s23  ;;  %v882_v34 = vsel %vm881_vm8, %v4058_v31, 0.0 }
 0x4d0   :  { %v869_v50 = vpop.f32.mrf.mxu0 }
 0x517   :  { %v899_v60 = vpop.permute.xlu2 %898 }
 0x518   :  { %v907_v25 = vsel %vm874_vm7, %v899_v60, 0.0 }
 0x519   :  { %908 = vadd.xlane.f32.xlu0 %v907_v25 }
 0x521   :  { %876 = vadd.xlane.f32.xlu0 %v875_v62 }
 0x537   :  { %v901_v18 = vpop.permute.xlu0 %900 }
 0x538   :  { %v910_v47 = vsel %vm874_vm7, %v901_v18, 0.0 }
 0x539   :  { %911 = vadd.xlane.f32.xlu2 %v910_v47 }
 0x53f   :  { %v903_v35 = vpop.permute.xlu1 %902 }
 0x540   :  { %v913_v53 = vsel %vm881_vm8, %v903_v35, 0.0 }
 0x541   :  { %879 = vadd.xlane.f32.xlu2 %v878_v22  ;;  %914 = vadd.xlane.f32.xlu1 %v913_v53 }
 0x549   :  { %883 = vadd.xlane.f32.xlu2 %v882_v34 }
 0x58c   :  { %v909_v56 = vpop.xlane.xlu0 %908 }
 0x58d   :  { %v916_v58 = vmul.f32 %v909_v56, %v4071_v38 }
 0x58f   :  { %v937_v37 = vsub.f32 %v4048_v42, %v916_v58 }
 0x591   :  { %v940_v44 = vmul.f32 %v937_v37, %v937_v37 }
 0x593   :  { %946 = vrot.lane.b32.xlu1 %v940_v44, %s3344_s23 }
 0x594   :  { %v877_v55 = vpop.xlane.xlu0 %876 }
 0x595   :  { %v892_v40 = vmul.f32 %v4071_v38, %v877_v55 }
 0x597   :  { %v4082_v39 = vsel %vm51_vm10, %v892_v40, %v916_v58  ;;  %v919_v32 = vsub.f32 %v4048_v42, %v892_v40  ;;  %v3141_v40 = vld [vmem:[%s4966_s9 + $0x18] sm:$0xff] }
 0x598   :  { %1067 = vmatpush.bf16.msrb.mxu1 %v3141_v40 }
 0x599   :  { %v922_v58 = vmul.f32 %v919_v32, %v919_v32 }
 0x59b   :  { %v925_v37 = vsel %vm874_vm7, %v922_v58, 0.0 }
 0x5ac   :  { %v912_v12 = vpop.xlane.xlu2 %911 }
 0x5ad   :  { %v917_v9 = vmul.f32 %v912_v12, %v4071_v38 }
 0x5af   :  { %v938_v0 = vsub.f32 %v4053_v17, %v917_v9 }
 0x5b1   :  { %v941_v50 = vmul.f32 %v938_v0, %v938_v0 }
 0x5b3   :  { %948 = vrot.lane.b32.xlu0 %v941_v50, %s3344_s23 }
 0x5b4   :  { %v880_v60 = vpop.xlane.xlu2 %879  ;;  %v915_v25 = vpop.xlane.xlu1 %914 }
 0x5b5   :  { %v893_v62 = vmul.f32 %v4071_v38, %v880_v60  ;;  %v918_v18 = vmul.f32 %v915_v25, %v4071_v38 }
 0x5b7   :  { %v920_v47 = vsub.f32 %v4053_v17, %v893_v62  ;;  %v4092_v35 = vsel %vm51_vm10, %v893_v62, %v917_v9  ;;  %v939_v22 = vsub.f32 %v4058_v31, %v918_v18 }
 0x5b9   :  { %v942_v53 = vmul.f32 %v939_v22, %v939_v22  ;;  %v923_v34 = vmul.f32 %v920_v47, %v920_v47 }
 0x5bb   :  { %950 = vrot.lane.b32.xlu2 %v942_v53, %s3344_s23  ;;  %v928_v3 = vsel %vm874_vm7, %v923_v34, 0.0  ;;  %v3140_v53 = vld [vmem:[%s4966_s9 + $0x10] sm:$0xff] }
 0x5bc   :  { %v884_v52 = vpop.xlane.xlu2 %883  ;;  %1068 = vmatpush.bf16.msrb.mxu1 %v3140_v53 }
 0x5bd   :  { %v894_v8 = vmul.f32 %v4071_v38, %v884_v52  ;;  %929 = vadd.xlane.f32.xlu1 %v928_v3 }
 0x5bf   :  { %v921_v14 = vsub.f32 %v4058_v31, %v894_v8  ;;  %v4101_v46 = vsel %vm51_vm10, %v894_v8, %v918_v18  ;;  %v3139_v8 = vld [vmem:[%s4966_s9 + $0x8] sm:$0xff] }
 0x5c0   :  { %1069 = vmatpush.bf16.msrb.mxu1 %v3139_v8  ;;  %v975_v8 = vsub.f32 %v4048_v42, %v4082_v39 }
 0x5c1   :  { %v924_v59 = vmul.f32 %v921_v14, %v921_v14  ;;  %v3138_v14 = vld [vmem:[%s4966_s9] sm:$0xff] }
 0x5c3   :  { %v931_v56 = vsel %vm881_vm8, %v924_v59, 0.0 }
 0x5c4   :  { %1070 = vmatpush.bf16.msrb.mxu1 %v3138_v14 }
 0x5c5   :  { %932 = vadd.xlane.f32.xlu1 %v931_v56 }
 0x5dd   :  { %926 = vadd.xlane.f32.xlu0 %v925_v37 }
 0x605   :  { %v947_v44 = vpop.permute.xlu1 %946 }
 0x606   :  { %v955_v55 = vsel %vm874_vm7, %v947_v44, 0.0 }
 0x607   :  { %956 = vadd.xlane.f32.xlu2 %v955_v55 }
 0x615   :  { %v951_v0 = vpop.permute.xlu2 %950 }
 0x616   :  { %v961_v50 = vsel %vm881_vm8, %v951_v0, 0.0 }
 0x625   :  { %v949_v12 = vpop.permute.xlu0 %948 }
 0x626   :  { %v958_v9 = vsel %vm874_vm7, %v949_v12, 0.0 }
 0x627   :  { %959 = vadd.xlane.f32.xlu0 %v958_v9 }
 0x62f   :  { %962 = vadd.xlane.f32.xlu0 %v961_v50 }
 0x630   :  { %v930_v3 = vpop.xlane.xlu1 %929 }
 0x631   :  { %v935_v56 = vmul.f32 %v930_v3, %v4071_v38 }
 0x638   :  { %v933_v12 = vpop.xlane.xlu1 %932 }
 0x639   :  { %v936_v0 = vmul.f32 %v933_v12, %v4071_v38 }
 0x650   :  { %v927_v25 = vpop.xlane.xlu0 %926 }
 0x651   :  { %v934_v18 = vmul.f32 %v927_v25, %v4071_v38 }
 0x67a   :  { %v957_v60 = vpop.xlane.xlu2 %956 }
 0x67b   :  { %v964_v62 = vmul.f32 %v957_v60, %v4071_v38 }
 0x67d   :  { %v972_v47 = vsel %vm51_vm10, %v934_v18, %v964_v62 }
 0x67e   :  { %v978_v22 = vadd.f32 1e-05, %v972_v47 }
 0x680   :  { %3213 = vrsqrt.f32 %v978_v22  ;;  %vm987_vm12 = vweird.f32 %v978_v22 }
 0x686   :  { %v3214_v34 = vpop.eup %3213 }
 0x687   :  { %v982_v52 = vmul.f32 %v3214_v34, %v978_v22  ;;  %vm988_vm11 = vweird.f32 %v3214_v34 }
 0x688   :  { %vm989_vm13 = vmor %vm987_vm12, %vm988_vm11 }
 0x689   :  { %v983_v32 = vmul.f32 %v3214_v34, %v982_v52 }
 0x68b   :  { %v984_v55 = vmul.f32 0.5, %v983_v32  ;;  %v4138_v32 = vld [vmem:[%s4968_s11] sm:$0xff] }
 0x68d   :  { %v985_v50 = vsub.f32 1.5, %v984_v55 }
 0x68f   :  { %v986_v18 = vmul.f32 %v3214_v34, %v985_v50 }
 0x691   :  { %v990_v3 = vsel %vm989_vm13, %v3214_v34, %v986_v18  ;;  %v976_v34 = vsub.f32 %v4053_v17, %v4092_v35 }
 0x69a   :  { %v960_v59 = vpop.xlane.xlu0 %959 }
 0x69b   :  { %v965_v58 = vmul.f32 %v960_v59, %v4071_v38 }
 0x69d   :  { %v973_v37 = vsel %vm51_vm10, %v935_v56, %v965_v58  ;;  %v1011_v56 = vmul.f32 %v990_v3, %v975_v8  ;;  %v1014_v58 = vperm.slane %v4138_v32, 2 }
 0x69e   :  { %v979_v44 = vadd.f32 1e-05, %v973_v37 }
 0x69f   :  { %v1015_v12 = vmul.f32 %v1014_v58, %v1011_v56 }
 0x6a0   :  { %3215 = vrsqrt.f32 %v979_v44  ;;  %vm997_vm15 = vweird.f32 %v979_v44 }
 0x6a2   :  { %v963_v9 = vpop.xlane.xlu0 %962 }
 0x6a3   :  { %v966_v40 = vmul.f32 %v963_v9, %v4071_v38  ;;  %v1018_v9 = vperm.slane %v4138_v32, 3 }
 0x6a5   :  { %v974_v60 = vsel %vm51_vm10, %v936_v0, %v966_v40 }
 0x6a6   :  { %v3216_v25 = vpop.eup %3215  ;;  %v980_v62 = vadd.f32 1e-05, %v974_v60  ;;  %v4144_v60 = vadd.f32 %v1018_v9, %v1015_v12 }
 0x6a7   :  { %v992_v47 = vmul.f32 %v3216_v25, %v979_v44  ;;  %vm998_vm14 = vweird.f32 %v3216_v25 }
 0x6a8   :  { %3217 = vrsqrt.f32 %v980_v62  ;;  %vm999_vm1 = vmor %vm997_vm15, %vm998_vm14  ;;  %vm1007_vm11 = vweird.f32 %v980_v62 }
 0x6a9   :  { %v993_v53 = vmul.f32 %v3216_v25, %v992_v47 }
 0x6ab   :  { %v994_v52 = vmul.f32 0.5, %v993_v53 }
 0x6ad   :  { %v995_v14 = vsub.f32 1.5, %v994_v52 }
 0x6ae   :  { %v3218_v59 = vpop.eup %3217 }
 0x6af   :  { %v996_v37 = vmul.f32 %v3216_v25, %v995_v14  ;;  %v1002_v22 = vmul.f32 %v3218_v59, %v980_v62  ;;  %vm1008_vm9 = vweird.f32 %v3218_v59  ;;  %v1032_v62 = vperm.slane %v4138_v32, 4 }
 0x6b0   :  { %vm1009_vm12 = vmor %vm1007_vm11, %vm1008_vm9 }
 0x6b1   :  { %v1000_v55 = vsel %vm999_vm1, %v3216_v25, %v996_v37  ;;  %v1003_v42 = vmul.f32 %v3218_v59, %v1002_v22  ;;  %v977_v25 = vsub.f32 %v4058_v31, %v4101_v46 }
 0x6b2   :  { %v1012_v39 = vmul.f32 %v1000_v55, %v976_v34 }
 0x6b3   :  { %v1004_v0 = vmul.f32 0.5, %v1003_v42 }
 0x6b4   :  { %v1016_v50 = vmul.f32 %v1014_v58, %v1012_v39  ;;  %v3149_v39 = vld [vmem:[%s4967_s10 + $0x38] sm:$0xff] }
 0x6b5   :  { %v1005_v40 = vsub.f32 1.5, %v1004_v0  ;;  %1268 = vmatpush.bf16.msra.mxu2 %v3149_v39 }
 0x6b6   :  { %v4146_v18 = vadd.f32 %v1018_v9, %v1016_v50 }
 0x6b7   :  { %v1006_v44 = vmul.f32 %v3218_v59, %v1005_v40 }
 0x6b8   :  { %v1030_v17 = vpack.c.bf16 %v4146_v18, %v4144_v60 }
 0x6b9   :  { %v1010_v35 = vsel %vm1009_vm12, %v3218_v59, %v1006_v44 }
 0x6ba   :  { %2911 = vmatmul.msk.bf16.vlgmr.msrb.gmra.mxu1 %vm208_vm2, %v1030_v17  ;;  %v1013_v47 = vmul.f32 %v1010_v35, %v977_v25  ;;  %v3148_v17 = vld [vmem:[%s4967_s10 + $0x30] sm:$0xff] }
 0x6bb   :  { %1269 = vmatpush.bf16.msra.mxu2 %v3148_v17 }
 0x6bc   :  { %v1017_v53 = vmul.f32 %v1014_v58, %v1013_v47 }
 0x6be   :  { %v4153_v3 = vadd.f32 %v1018_v9, %v1017_v53 }
 0x6c0   :  { %v1031_v52 = vpack.c.bf16 %v4153_v3, %v4153_v3 }
 0x6ca   :  { %2912 = vmatmul.msk.bf16.gmra.mxu1 %vm208_vm2, %v1031_v52 }
 0x737   :  { %v1072_v8 = vpop.f32.mrf.mxu1 }
 0x738   :  { %v4159_v14 = vadd.f32 %v1072_v8, %v1032_v62 }
 0x73a   :  { %v4162_v59 = vmul.f32 0.70710677, %v4159_v14 }
 0x73c   :  { %v1087_v31 = vand.u32 2147483647, %v4162_v59 }
 0x73e   :  { %v1090_v46 = vmul.f32 0.3275911, %v1087_v31 }
 0x73f   :  { %v1074_v56 = vpop.f32.mrf.mxu1 }
 0x740   :  { %v1093_v58 = vadd.f32 1.0, %v1090_v46  ;;  %v4165_v37 = vadd.f32 %v1074_v56, %v1032_v62  ;;  %v3147_v46 = vld [vmem:[%s4967_s10 + $0x28] sm:$0xff] }
 0x741   :  { %1270 = vmatpush.bf16.msra.mxu2 %v3147_v46 }
 0x742   :  { %3219 = vrcp.f32 %v1093_v58  ;;  %v4168_v22 = vmul.f32 0.70710677, %v4165_v37  ;;  %v1107_v35 = vand.u32 2147483648, %v1093_v58  ;;  %v1105_v53 = vand.u32 2147483647, %v1093_v58 }
 0x743   :  { %vm1101_vm14 = vweird.f32 %v1093_v58 }
 0x744   :  { %v4171_v34 = vand.u32 2147483647, %v4168_v22  ;;  %v1108_v56 = vor.u32 1.1754944e-38, %v1107_v35  ;;  %vm1106_vm1 = vcmp.eq.f32.partialorder %v1105_v53, 8.507059e+37  ;;  %v3145_v53 = vld [vmem:[%s4967_s10 + $0x18] sm:$0xff] }
 0x746   :  { %v1091_v55 = vmul.f32 0.3275911, %v4171_v34 }
 0x747   :  { %v1077_v42 = vpop.f32.mrf.mxu1 }
 0x748   :  { %v3220_v12 = vpop.eup %3219  ;;  %v4177_v9 = vadd.f32 %v1077_v42, %v1032_v62  ;;  %v1094_v50 = vadd.f32 1.0, %v1091_v55 }
 0x749   :  { %v1097_v0 = vmul.f32 %v3220_v12, %v1093_v58  ;;  %vm1102_vm13 = vweird.f32 %v3220_v12  ;;  %v3146_v58 = vld [vmem:[%s4967_s10 + $0x20] sm:$0xff] }
 0x74a   :  { %v4180_v40 = vmul.f32 0.70710677, %v4177_v9  ;;  %3221 = vrcp.f32 %v1094_v50  ;;  %vm1103_vm15 = vmor %vm1101_vm14, %vm1102_vm13  ;;  %v1122_v61 = vand.u32 2147483648, %v1094_v50  ;;  %1271 = vmatpush.bf16.msra.mxu2 %v3146_v58  ;;  %vm1116_vm11 = vweird.f32 %v1094_v50 }
 0x74b   :  { %v1098_v44 = vsub.f32 1.0, %v1097_v0 }
 0x74c   :  { %v4186_v25 = vand.u32 2147483647, %v4180_v40 }
 0x74d   :  { %v1099_v47 = vmul.f32 %v3220_v12, %v1098_v44  ;;  %v1168_v44 = vsub.f32 0.0, %v1087_v31 }
 0x74e   :  { %v1092_v52 = vmul.f32 0.3275911, %v4186_v25  ;;  %1272 = vmatpush.bf16.msra.mxu2 %v3145_v53 }
 0x74f   :  { %v1100_v62 = vadd.f32 %v3220_v12, %v1099_v47  ;;  %v1079_v8 = vpop.f32.mrf.mxu1  ;;  %v1171_v41 = vmul.f32 %v1168_v44, %v1087_v31 }
 0x750   :  { %v1095_v55 = vadd.f32 1.0, %v1092_v52  ;;  %v3222_v42 = vpop.eup %3221  ;;  %v1120_v52 = vand.u32 2147483647, %v1094_v50 }
 0x751   :  { %v1104_v39 = vsel %vm1103_vm15, %v3220_v12, %v1100_v62  ;;  %v1112_v29 = vmul.f32 %v3222_v42, %v1094_v50  ;;  %vm1117_vm9 = vweird.f32 %v3222_v42  ;;  %v1174_v31 = vmul.f32 1.442695, %v1171_v41 }
 0x752   :  { %v1109_v0 = vsel %vm1106_vm1, %v1108_v56, %v1104_v39  ;;  %3223 = vrcp.f32 %v1095_v55  ;;  %vm1118_vm12 = vmor %vm1116_vm11, %vm1117_vm9  ;;  %v1123_v39 = vor.u32 1.1754944e-38, %v1122_v61  ;;  %vm1121_vm13 = vcmp.eq.f32.partialorder %v1120_v52, 8.507059e+37  ;;  %v3143_v61 = vld [vmem:[%s4967_s10 + $0x8] sm:$0xff] }
 0x753   :  { %v1141_v17 = vmul.f32 1.0614054, %v1109_v0  ;;  %v1113_v47 = vsub.f32 1.0, %v1112_v29  ;;  %v3144_v29 = vld [vmem:[%s4967_s10 + $0x10] sm:$0xff]  ;;  %v1135_v53 = vand.u32 2147483647, %v1095_v55  ;;  %3225 = vpow2.f32 %v1174_v31 }
 0x754   :  { %1273 = vmatpush.bf16.msra.mxu2 %v3144_v29  ;;  %vm1131_vm15 = vweird.f32 %v1095_v55  ;;  %v3142_v29 = vld [vmem:[%s4967_s10] sm:$0xff]  ;;  %v1170_v31 = vsub.f32 0.0, %v4186_v25  ;;  %vm1186_vm11 = vcmp.ge.f32.partialorder %v4162_v59, 0.0 }
 0x755   :  { %v1144_v8 = vadd.f32 -1.4531521, %v1141_v17  ;;  %v1114_v35 = vmul.f32 %v3222_v42, %v1113_v47  ;;  %v1169_v47 = vsub.f32 0.0, %v4171_v34  ;;  %vm1136_vm9 = vcmp.eq.f32.partialorder %v1135_v53, 8.507059e+37 }
 0x757   :  { %v1147_v12 = vmul.f32 %v1144_v8, %v1109_v0  ;;  %v1115_v46 = vadd.f32 %v3222_v42, %v1114_v35  ;;  %v1137_v35 = vand.u32 2147483648, %v1095_v55  ;;  %v1172_v52 = vmul.f32 %v1169_v47, %v4171_v34 }
 0x758   :  { %v3224_v62 = vpop.eup %3223  ;;  %1274 = vmatpush.bf16.msra.mxu2 %v3143_v61  ;;  %v1173_v61 = vmul.f32 %v1170_v31, %v4186_v25 }
 0x759   :  { %v1150_v56 = vadd.f32 1.4214138, %v1147_v12  ;;  %v1127_v19 = vmul.f32 %v3224_v62, %v1095_v55  ;;  %v1119_v44 = vsel %vm1118_vm12, %v3222_v42, %v1115_v46  ;;  %vm1132_vm14 = vweird.f32 %v3224_v62  ;;  %v3226_v55 = vpop.eup %3225 }
 0x75a   :  { %v1124_v58 = vsel %vm1121_vm13, %v1123_v39, %v1119_v44  ;;  %vm1133_vm1 = vmor %vm1131_vm15, %vm1132_vm14  ;;  %vm1187_vm12 = vcmp.ge.f32.partialorder %v4168_v22, 0.0  ;;  %vm1188_vm13 = vcmp.ge.f32.partialorder %v4180_v40, 0.0  ;;  %v1083_v22 = vmul.f32 0.5, %v4177_v9 }
 0x75b   :  { %v1153_v17 = vmul.f32 %v1150_v56, %v1109_v0  ;;  %v1128_v8 = vsub.f32 1.0, %v1127_v19  ;;  %v1142_v13 = vmul.f32 1.0614054, %v1124_v58  ;;  %v1138_v19 = vor.u32 1.1754944e-38, %v1137_v35 }
 0x75c   :  { %1275 = vmatpush.bf16.msra.mxu2 %v3142_v29 }
 0x75d   :  { %v1156_v50 = vadd.f32 -0.28449672, %v1153_v17  ;;  %v1129_v12 = vmul.f32 %v3224_v62, %v1128_v8  ;;  %v1145_v41 = vadd.f32 -1.4531521, %v1142_v13 }
 0x75f   :  { %v1159_v42 = vmul.f32 %v1156_v50, %v1109_v0  ;;  %v1130_v46 = vadd.f32 %v3224_v62, %v1129_v12  ;;  %v1148_v56 = vmul.f32 %v1145_v41, %v1124_v58  ;;  %v1176_v50 = vmul.f32 1.442695, %v1172_v52 }
 0x761   :  { %v1162_v39 = vadd.f32 0.2548296, %v1159_v42  ;;  %v1134_v44 = vsel %vm1133_vm1, %v3224_v62, %v1130_v46  ;;  %v1151_v17 = vadd.f32 1.4214138, %v1148_v56  ;;  %3227 = vpow2.f32 %v1176_v50 }
 0x762   :  { %v1139_v13 = vsel %vm1136_vm9, %v1138_v19, %v1134_v44  ;;  %v1178_v56 = vmul.f32 1.442695, %v1173_v61 }
 0x763   :  { %v1165_v8 = vmul.f32 %v1162_v39, %v1109_v0  ;;  %v1143_v34 = vmul.f32 1.0614054, %v1139_v13  ;;  %v1154_v47 = vmul.f32 %v1151_v17, %v1124_v58 }
 0x764   :  { %3229 = vpow2.f32 %v1178_v56 }
 0x765   :  { %v1180_v12 = vmul.f32 %v3226_v55, %v1165_v8  ;;  %v1146_v35 = vadd.f32 -1.4531521, %v1143_v34  ;;  %v1157_v41 = vadd.f32 -0.28449672, %v1154_v47 }
 0x767   :  { %v1149_v42 = vmul.f32 %v1146_v35, %v1139_v13  ;;  %v1183_v24 = vsub.f32 1.0, %v1180_v12  ;;  %v1160_v62 = vmul.f32 %v1157_v41, %v1124_v58  ;;  %v3228_v52 = vpop.eup %3227  ;;  %v1081_v12 = vmul.f32 0.5, %v4159_v14 }
 0x768   :  { %v1219_v14 = vperm.slane %v4138_v32, 5 }
 0x769   :  { %v1152_v53 = vadd.f32 1.4214138, %v1149_v42  ;;  %v1163_v46 = vadd.f32 0.2548296, %v1160_v62  ;;  %v1189_v19 = vsub.f32 0.0, %v1183_v24 }
 0x76a   :  { %v3230_v55 = vpop.eup %3229 }
 0x76b   :  { %v1155_v45 = vmul.f32 %v1152_v53, %v1139_v13  ;;  %v1166_v0 = vmul.f32 %v1163_v46, %v1124_v58  ;;  %v1192_v17 = vsel %vm1186_vm11, %v1183_v24, %v1189_v19  ;;  %v1082_v58 = vmul.f32 0.5, %v4165_v37 }
 0x76c   :  { %v1195_v50 = vadd.f32 1.0, %v1192_v17 }
 0x76d   :  { %v1158_v39 = vadd.f32 -0.28449672, %v1155_v45  ;;  %v1181_v44 = vmul.f32 %v3228_v52, %v1166_v0 }
 0x76e   :  { %v1198_v41 = vmul.f32 %v1195_v50, %v1081_v12 }
 0x76f   :  { %v1161_v29 = vmul.f32 %v1158_v39, %v1139_v13  ;;  %v1184_v8 = vsub.f32 1.0, %v1181_v44 }
 0x771   :  { %v1164_v25 = vadd.f32 0.2548296, %v1161_v29  ;;  %v1190_v31 = vsub.f32 0.0, %v1184_v8 }
 0x773   :  { %v1167_v34 = vmul.f32 %v1164_v25, %v1139_v13  ;;  %v1193_v47 = vsel %vm1187_vm12, %v1184_v8, %v1190_v31 }
 0x774   :  { %v1196_v45 = vadd.f32 1.0, %v1193_v47 }
 0x775   :  { %v1182_v35 = vmul.f32 %v3230_v55, %v1167_v34 }
 0x776   :  { %v1199_v61 = vmul.f32 %v1196_v45, %v1082_v58 }
 0x777   :  { %v1185_v59 = vsub.f32 1.0, %v1182_v35 }
 0x778   :  { %v1217_v42 = vpack.c.bf16 %v1199_v61, %v1198_v41 }
 0x779   :  { %v1191_v24 = vsub.f32 0.0, %v1185_v59 }
 0x77a   :  { %1276 = vmatmul.bf16.vlgmr.msra.gmra.mxu2 %v1217_v42 }
 0x77b   :  { %v1194_v62 = vsel %vm1188_vm13, %v1185_v59, %v1191_v24 }
 0x77c   :  { %v1197_v53 = vadd.f32 1.0, %v1194_v62 }
 0x77e   :  { %v1200_v13 = vmul.f32 %v1197_v53, %v1083_v22 }
 0x780   :  { %v1218_v46 = vpack.c.bf16 %v1200_v13, %v1200_v13 }
 0x78a   :  { %1281 = vmatmul.bf16.gmra.mxu2 %v1218_v46 }
 0x7fd   :  { %v1277_v37 = vpop.f32.mrf.mxu2 }
 0x7fe   :  { %v1278_v56 = vadd.f32 %v1277_v37, %v1219_v14 }
 0x800   :  { %v4219_v19 = vadd.f32 %v1278_v56, %v4144_v60 }
 0x802   :  { %1304 = vrot.lane.b32.xlu1 %v4219_v19, %s3344_s23 }
 0x805   :  { %v1279_v0 = vpop.f32.mrf.mxu2 }
 0x806   :  { %v1280_v52 = vadd.f32 %v1279_v0, %v1219_v14 }
 0x808   :  { %v4224_v40 = vadd.f32 %v1280_v52, %v4146_v18 }
 0x80a   :  { %1306 = vrot.lane.b32.xlu2 %v4224_v40, %s3344_s23  ;;  %v1292_v18 = vsel %vm874_vm7, %v4224_v40, 0.0 }
 0x80d   :  { %v1282_v9 = vpop.f32.mrf.mxu2 }
 0x80e   :  { %v1283_v39 = vadd.f32 %v1282_v9, %v1219_v14 }
 0x810   :  { %v4229_v44 = vadd.f32 %v1283_v39, %v4153_v3  ;;  %v1289_v3 = vsel %vm874_vm7, %v4219_v19, 0.0 }
 0x812   :  { %1308 = vrot.lane.b32.xlu0 %v4229_v44, %s3344_s23  ;;  %v1295_v25 = vsel %vm881_vm8, %v4229_v44, 0.0 }
 0x815   :  { %v1284_v60 = vpop.f32.mrf.mxu2 }
 0x864   :  { %v1307_v29 = vpop.permute.xlu2 %1306 }
 0x865   :  { %v1316_v17 = vsel %vm874_vm7, %v1307_v29, 0.0 }
 0x866   :  { %1317 = vadd.xlane.f32.xlu0 %v1316_v17 }
 0x86e   :  { %1293 = vadd.xlane.f32.xlu0 %v1292_v18 }
 0x874   :  { %v1305_v8 = vpop.permute.xlu1 %1304 }
 0x875   :  { %v1313_v31 = vsel %vm874_vm7, %v1305_v8, 0.0 }
 0x876   :  { %1296 = vadd.xlane.f32.xlu0 %v1295_v25  ;;  %1314 = vadd.xlane.f32.xlu1 %v1313_v31 }
 0x87e   :  { %1290 = vadd.xlane.f32.xlu1 %v1289_v3 }
 0x884   :  { %v1309_v50 = vpop.permute.xlu0 %1308 }
 0x885   :  { %v1319_v34 = vsel %vm881_vm8, %v1309_v50, 0.0 }
 0x886   :  { %1320 = vadd.xlane.f32.xlu2 %v1319_v34 }
 0x8d9   :  { %v1318_v55 = vpop.xlane.xlu0 %1317 }
 0x8da   :  { %v1323_v47 = vmul.f32 %v1318_v55, %v4071_v38 }
 0x8dc   :  { %v1344_v12 = vsub.f32 %v4224_v40, %v1323_v47 }
 0x8de   :  { %v1347_v58 = vmul.f32 %v1344_v12, %v1344_v12 }
 0x8e0   :  { %1354 = vrot.lane.b32.xlu1 %v1347_v58, %s3344_s23 }
 0x8e1   :  { %v1294_v45 = vpop.xlane.xlu0 %1293 }
 0x8e2   :  { %v1299_v35 = vmul.f32 %v1294_v45, %v4071_v38 }
 0x8e4   :  { %v4248_v41 = vsel %vm51_vm10, %v1299_v35, %v1323_v47  ;;  %v1326_v9 = vsub.f32 %v4224_v40, %v1299_v35  ;;  %v2981_v35 = vld [vmem:[%s4964_s7 + $0x70] sm:$0xf] }
 0x8e6   :  { %v1329_v39 = vmul.f32 %v1326_v9, %v1326_v9 }
 0x8e8   :  { %v1334_v60 = vsel %vm874_vm7, %v1329_v39, 0.0 }
 0x8e9   :  { %v1315_v61 = vpop.xlane.xlu1 %1314  ;;  %v1297_v13 = vpop.xlane.xlu0 %1296 }
 0x8ea   :  { %v1322_v59 = vmul.f32 %v1315_v61, %v4071_v38  ;;  %v1300_v14 = vmul.f32 %v1297_v13, %v4071_v38  ;;  %v3157_v61 = vld [vmem:[%s4964_s7 + $0x74] sm:$0xf0]  ;;  %v2973_v13 = vld [vmem:[%s4964_s7 + $0x60] sm:$0xf] }
 0x8ec   :  { %v1343_v42 = vsub.f32 %v4219_v19, %v1322_v59  ;;  %v1327_v3 = vsub.f32 %v4229_v44, %v1300_v14 }
 0x8ee   :  { %v1346_v24 = vmul.f32 %v1343_v42, %v1343_v42  ;;  %v1330_v34 = vmul.f32 %v1327_v3, %v1327_v3 }
 0x8f0   :  { %1352 = vrot.lane.b32.xlu2 %v1346_v24, %s3344_s23  ;;  %v1337_v55 = vsel %vm881_vm8, %v1330_v34, 0.0  ;;  %v2957_v34 = vld [vmem:[%s4964_s7 + $0x40] sm:$0xf] }
 0x8f1   :  { %v1291_v62 = vpop.xlane.xlu1 %1290 }
 0x8f2   :  { %v1298_v53 = vmul.f32 %v1291_v62, %v4071_v38  ;;  %v2982_v62 = vor.u32 %v3157_v61, %v2981_v35 }
 0x8f4   :  { %v4256_v22 = vsel %vm51_vm10, %v1298_v53, %v1322_v59  ;;  %v1325_v29 = vsub.f32 %v4219_v19, %v1298_v53  ;;  %v3156_v59 = vld [vmem:[%s4964_s7 + $0x74] sm:$0xf]  ;;  %v2983_v53 = vld [vmem:[%s4964_s7 + $0x78] sm:$0xf0]  ;;  %1492 = vmatpush.bf16.msra.mxu3 %v2982_v62 }
 0x8f6   :  { %v1328_v17 = vmul.f32 %v1325_v29, %v1325_v29  ;;  %v2965_v29 = vld [vmem:[%s4964_s7 + $0x50] sm:$0xf] }
 0x8f8   :  { %v1331_v18 = vsel %vm874_vm7, %v1328_v17, 0.0  ;;  %v3153_v17 = vld [vmem:[%s4964_s7 + $0x54] sm:$0xf0] }
 0x8f9   :  { %v1321_v46 = vpop.xlane.xlu2 %1320 }
 0x8fa   :  { %v1324_v37 = vmul.f32 %v1321_v46, %v4071_v38  ;;  %v3155_v46 = vld [vmem:[%s4964_s7 + $0x64] sm:$0xf0] }
 0x8fb   :  { %v2974_v9 = vor.u32 %v3155_v46, %v2973_v13  ;;  %v5011_v46 = vld [vmem:[#allocation10_spill] sm:$0xff] }
 0x8fc   :  { %v1345_v56 = vsub.f32 %v4229_v44, %v1324_v37  ;;  %v4263_v0 = vsel %vm51_vm10, %v1300_v14, %v1324_v37  ;;  %v2986_v14 = vor.u32 %v3156_v59, %v2983_v53  ;;  %v3154_v37 = vld [vmem:[%s4964_s7 + $0x64] sm:$0xf] }
 0x8fd   :  { %1493 = vmatpush.bf16.msra.mxu3 %v2974_v9 }
 0x8fe   :  { %v1348_v52 = vmul.f32 %v1345_v56, %v1345_v56  ;;  %v2975_v56 = vld [vmem:[%s4964_s7 + $0x68] sm:$0xf0]  ;;  %1510 = vmatpush.bf16.msra.mxu0 %v2986_v14 }
 0x900   :  { %1356 = vrot.lane.b32.xlu0 %v1348_v52, %s3344_s23 }
 0x90a   :  { %1335 = vadd.xlane.f32.xlu1 %v1334_v60  ;;  %v2978_v60 = vor.u32 %v3154_v37, %v2975_v56 }
 0x90c   :  { %1511 = vmatpush.bf16.msra.mxu0 %v2978_v60 }
 0x919   :  { %1332 = vadd.xlane.f32.xlu2 %v1331_v18  ;;  %v3152_v18 = vld [vmem:[%s4964_s7 + $0x54] sm:$0xf] }
 0x94a   :  { %v1353_v8 = vpop.permute.xlu2 %1352 }
 0x94b   :  { %v1361_v25 = vsel %vm874_vm7, %v1353_v8, 0.0  ;;  %v2967_v8 = vld [vmem:[%s4964_s7 + $0x58] sm:$0xf0] }
 0x94c   :  { %1362 = vadd.xlane.f32.xlu0 %v1361_v25 }
 0x952   :  { %v1355_v31 = vpop.permute.xlu1 %1354 }
 0x953   :  { %v1364_v50 = vsel %vm874_vm7, %v1355_v31, 0.0  ;;  %v2966_v31 = vor.u32 %v3153_v17, %v2965_v29 }
 0x954   :  { %1365 = vadd.xlane.f32.xlu2 %v1364_v50  ;;  %v2970_v50 = vor.u32 %v3152_v18, %v2967_v8  ;;  %v1418_v8 = vperm.slane %v4138_v32, 6 }
 0x955   :  { %1494 = vmatpush.bf16.msra.mxu3 %v2966_v31 }
 0x956   :  { %1512 = vmatpush.bf16.msra.mxu0 %v2970_v50 }
 0x95c   :  { %1338 = vadd.xlane.f32.xlu2 %v1337_v55  ;;  %v3151_v55 = vld [vmem:[%s4964_s7 + $0x44] sm:$0xf0] }
 0x95d   :  { %v2958_v61 = vor.u32 %v3151_v55, %v2957_v34 }
 0x95f   :  { %1495 = vmatpush.bf16.msra.mxu3 %v2958_v61 }
 0x963   :  { %1789 = vmatpush.bf16.msrb.mxu3 %v3836_v54  ;;  %v1379_v54 = vsub.f32 %v4219_v19, %v4256_v22 }
 0x967   :  { %1790 = vmatpush.bf16.msrb.mxu3 %v3856_v48 }
 0x96b   :  { %1791 = vmatpush.bf16.msrb.mxu3 %v3877_v49 }
 0x96f   :  { %1792 = vmatpush.bf16.msrb.mxu3 %v3930_v43 }
 0x972   :  { %v1357_v47 = vpop.permute.xlu0 %1356 }
 0x973   :  { %v1367_v12 = vsel %vm881_vm8, %v1357_v47, 0.0  ;;  %1793 = vmatpush.bf16.msrb.mxu3 %v3950_v23 }
 0x974   :  { %1368 = vadd.xlane.f32.xlu1 %v1367_v12 }
 0x977   :  { %1794 = vmatpush.bf16.msrb.mxu3 %v3966_v33 }
 0x97b   :  { %1795 = vmatpush.bf16.msrb.mxu3 %v3986_v57  ;;  %v1381_v57 = vsub.f32 %v4229_v44, %v4263_v0 }
 0x97d   :  { %v1336_v25 = vpop.xlane.xlu1 %1335 }
 0x97e   :  { %v1341_v47 = vmul.f32 %v1336_v25, %v4071_v38 }
 0x97f   :  { %1796 = vmatpush.bf16.msrb.mxu3 %v4010_v28 }
 0x98c   :  { %v1333_v58 = vpop.xlane.xlu2 %1332 }
 0x98d   :  { %v1340_v42 = vmul.f32 %v1333_v58, %v4071_v38  ;;  %v3150_v58 = vld [vmem:[%s4964_s7 + $0x44] sm:$0xf] }
 0x9bf   :  { %v1363_v45 = vpop.xlane.xlu0 %1362 }
 0x9c0   :  { %v1370_v24 = vmul.f32 %v1363_v45, %v4071_v38  ;;  %v2959_v45 = vld [vmem:[%s4964_s7 + $0x48] sm:$0xf0] }
 0x9c2   :  { %v1376_v52 = vsel %vm51_vm10, %v1340_v42, %v1370_v24  ;;  %v2962_v24 = vor.u32 %v3150_v58, %v2959_v45 }
 0x9c3   :  { %v1382_v39 = vadd.f32 1e-05, %v1376_v52 }
 0x9c4   :  { %1513 = vmatpush.bf16.msra.mxu0 %v2962_v24 }
 0x9c5   :  { %3231 = vrsqrt.f32 %v1382_v39  ;;  %vm1391_vm15 = vweird.f32 %v1382_v39 }
 0x9c7   :  { %v1366_v3 = vpop.xlane.xlu2 %1365 }
 0x9c8   :  { %v1371_v12 = vmul.f32 %v1366_v3, %v4071_v38  ;;  %1814 = vmatpush.bf16.msrb.mxu0 %v5011_v46  ;;  %v1422_v3 = vperm.slane %v4138_v32, 7 }
 0x9ca   :  { %v1377_v35 = vsel %vm51_vm10, %v1341_v47, %v1371_v12 }
 0x9cb   :  { %v3232_v59 = vpop.eup %3231  ;;  %v1383_v42 = vadd.f32 1e-05, %v1377_v35 }
 0x9cc   :  { %v1386_v62 = vmul.f32 %v3232_v59, %v1382_v39  ;;  %vm1392_vm14 = vweird.f32 %v3232_v59  ;;  %v1380_v39 = vsub.f32 %v4224_v40, %v4248_v41 }
 0x9cd   :  { %3233 = vrsqrt.f32 %v1383_v42  ;;  %vm1393_vm1 = vmor %vm1391_vm15, %vm1392_vm14  ;;  %vm1401_vm11 = vweird.f32 %v1383_v42 }
 0x9ce   :  { %v1387_v53 = vmul.f32 %v3232_v59, %v1386_v62  ;;  %v4370_v62 = vld [vmem:[%s4968_s11 + $0x10] sm:$0xff] }
 0x9cf   :  { %v1339_v43 = vpop.xlane.xlu2 %1338  ;;  %v1440_v44 = vperm.slane %v4370_v62, 0 }
 0x9d0   :  { %v1388_v13 = vmul.f32 0.5, %v1387_v53  ;;  %v1342_v32 = vmul.f32 %v1339_v43, %v4071_v38 }
 0x9d2   :  { %v1389_v14 = vsub.f32 1.5, %v1388_v13 }
 0x9d3   :  { %v3234_v37 = vpop.eup %3233 }
 0x9d4   :  { %v1390_v56 = vmul.f32 %v3232_v59, %v1389_v14  ;;  %v1396_v52 = vmul.f32 %v3234_v37, %v1383_v42  ;;  %vm1402_vm9 = vweird.f32 %v3234_v37 }
 0x9d5   :  { %vm1403_vm12 = vmor %vm1401_vm11, %vm1402_vm9 }
 0x9d6   :  { %v1397_v9 = vmul.f32 %v3234_v37, %v1396_v52  ;;  %v1394_v60 = vsel %vm1393_vm1, %v3232_v59, %v1390_v56 }
 0x9d7   :  { %v1415_v18 = vmul.f32 %v1394_v60, %v1379_v54 }
 0x9d8   :  { %v1398_v29 = vmul.f32 0.5, %v1397_v9 }
 0x9d9   :  { %v1419_v31 = vmul.f32 %v1418_v8, %v1415_v18 }
 0x9da   :  { %v1399_v17 = vsub.f32 1.5, %v1398_v29 }
 0x9db   :  { %v4343_v22 = vadd.f32 %v1422_v3, %v1419_v31 }
 0x9dc   :  { %v1400_v48 = vmul.f32 %v3234_v37, %v1399_v17 }
 0x9de   :  { %v1404_v25 = vsel %vm1403_vm12, %v3234_v37, %v1400_v48  ;;  %v2946_v37 = vld [vmem:[%s4968_s11 + $0x18] sm:$0xff] }
 0x9df   :  { %v1416_v49 = vmul.f32 %v1404_v25, %v1380_v39  ;;  %v1441_v52 = vperm.slane %v2946_v37, 0 }
 0x9e1   :  { %v1420_v19 = vmul.f32 %v1418_v8, %v1416_v49 }
 0x9e3   :  { %v4345_v50 = vadd.f32 %v1422_v3, %v1420_v19 }
 0x9e5   :  { %v1438_v34 = vpack.c.bf16 %v4345_v50, %v4343_v22 }
 0x9e7   :  { %2987 = vmatmul.msk.bf16.vlgmr.msra.gmra.mxu3 %vm208_vm2, %v1438_v34  ;;  %2989 = vmatmul.msk.bf16.vlgmr.msra.gmra.mxu0 %vm208_vm2, %v1438_v34  ;;  %v1369_v40 = vpop.xlane.xlu1 %1368 }
 0x9e8   :  { %v1372_v23 = vmul.f32 %v1369_v40, %v4071_v38  ;;  %1850 = vmatpush.bf16.msra.mxu3 %v4015_v36 }
 0x9ea   :  { %v1378_v41 = vsel %vm51_vm10, %v1342_v32, %v1372_v23 }
 0x9eb   :  { %v1384_v55 = vadd.f32 1e-05, %v1378_v41 }
 0x9ed   :  { %3235 = vrsqrt.f32 %v1384_v55  ;;  %vm1411_vm14 = vweird.f32 %v1384_v55 }
 0x9f3   :  { %v3236_v33 = vpop.eup %3235 }
 0x9f4   :  { %v1406_v47 = vmul.f32 %v3236_v33, %v1384_v55  ;;  %vm1412_vm13 = vweird.f32 %v3236_v33 }
 0x9f5   :  { %vm1413_vm15 = vmor %vm1411_vm14, %vm1412_vm13 }
 0x9f6   :  { %v1407_v12 = vmul.f32 %v3236_v33, %v1406_v47 }
 0x9f8   :  { %v1408_v58 = vmul.f32 0.5, %v1407_v12 }
 0x9fa   :  { %v1409_v45 = vsub.f32 1.5, %v1408_v58  ;;  %v3292_v58 = vld [vmem:[%s4961_s4 + $0x70] sm:$0xff] }
 0x9fc   :  { %v1410_v35 = vmul.f32 %v3236_v33, %v1409_v45 }
 0x9fe   :  { %v1414_v61 = vsel %vm1413_vm15, %v3236_v33, %v1410_v35 }
 0x9ff   :  { %v1417_v59 = vmul.f32 %v1414_v61, %v1381_v57 }
 0xa01   :  { %v1421_v42 = vmul.f32 %v1418_v8, %v1417_v59  ;;  %v3293_v59 = vld [vmem:[%s4961_s4 + $0x78] sm:$0xff] }
 0xa03   :  { %v4361_v24 = vadd.f32 %v1422_v3, %v1421_v42 }
 0xa05   :  { %v1439_v28 = vpack.c.bf16 %v4361_v24, %v4361_v24 }
 0xa07   :  { %2988 = vmatmul.msk.bf16.gmra.mxu3 %vm208_vm2, %v1439_v28  ;;  %2990 = vmatmul.msk.bf16.gmra.mxu0 %vm208_vm2, %v1439_v28  ;;  %v3294_v28 = vld [vmem:[%s4961_s4 + $0x60] sm:$0xff] }
 0xa64   :  { %v1515_v0 = vpop.f32.mrf.mxu0 }
 0xa65   :  { %v4386_v60 = vadd.f32 %v1515_v0, %v1441_v52 }
 0xa67   :  { %v1592_v18 = vrot.slane %v4386_v60, 4  ;;  %v1600_v39 = vrot.slane %v4386_v60, 2  ;;  %v1584_v25 = vrot.slane %v4386_v60, 6 }
 0xa6a   :  { %v1497_v36 = vpop.f32.mrf.mxu3 }
 0xa6b   :  { %v4375_v46 = vadd.f32 %v1497_v36, %v1440_v44 }
 0xa6c   :  { %v1517_v56 = vpop.f32.mrf.mxu0 }
 0xa6d   :  { %v4384_v9 = vadd.f32 %v1517_v56, %v1441_v52  ;;  %v1527_v34 = vrot.slane %v4375_v46, 6  ;;  %v1535_v55 = vrot.slane %v4375_v46, 4  ;;  %v1543_v57 = vrot.slane %v4375_v46, 2 }
 0xa6f   :  { %v1593_v29 = vrot.slane %v4384_v9, 4  ;;  %v1585_v17 = vrot.slane %v4384_v9, 6  ;;  %v1601_v48 = vrot.slane %v4384_v9, 2 }
 0xa71   :  { %v4395_v3 = vsel %vm263_vm3, %v1592_v18, %v1593_v29  ;;  %v4400_v40 = vsel %vm254_vm4, %v1584_v25, %v1585_v17  ;;  %v4407_v33 = vsel %vm132_vm0, %v1600_v39, %v1601_v48 }
 0xa72   :  { %v1499_v53 = vpop.f32.mrf.mxu3  ;;  %v1625_v45 = vmul.f32 %v3292_v58, %v4395_v3  ;;  %v1623_v36 = vmul.f32 %v3294_v28, %v4400_v40 }
 0xa73   :  { %v4373_v13 = vadd.f32 %v1499_v53, %v1440_v44 }
 0xa75   :  { %v4379_v14 = vpack.c.bf16 %v4373_v13, %v4375_v46  ;;  %v1536_v19 = vrot.slane %v4373_v13, 4  ;;  %v1528_v32 = vrot.slane %v4373_v13, 6 }
 0xa77   :  { %v4431_v0 = vsel %vm263_vm3, %v1535_v55, %v1536_v19  ;;  %v1529_v56 = vsel %vm254_vm4, %v1527_v34, %v1528_v32 }
 0xa84   :  { %v1520_v54 = vpop.f32.mrf.mxu0 }
 0xa85   :  { %v1521_v8 = vadd.f32 %v1520_v54, %v1441_v52 }
 0xa87   :  { %v1587_v49 = vrot.slane %v1521_v8, 6  ;;  %v1595_v31 = vrot.slane %v1521_v8, 4  ;;  %v1603_v43 = vrot.slane %v1521_v8, 2 }
 0xa89   :  { %v1596_v23 = vsel %vm263_vm3, %v1593_v29, %v1595_v31  ;;  %v1588_v41 = vsel %vm254_vm4, %v1585_v17, %v1587_v49  ;;  %v1604_v52 = vsel %vm132_vm0, %v1601_v48, %v1603_v43  ;;  %v3296_v29 = vld [vmem:[%s4961_s4 + $0x80] sm:$0xff]  ;;  %v1564_v31 = vmul.f32 %v4373_v13, %v3642_v1 }
 0xa8a   :  { %v1502_v47 = vpop.f32.mrf.mxu3  ;;  %v4410_v12 = vsel %vm132_vm0, %v1596_v23, %v1600_v39  ;;  %v4417_v35 = vsel %vm263_vm3, %v1588_v41, %v1592_v18  ;;  %v4443_v54 = vmul.f32 %v3296_v29, %v4407_v33  ;;  %v5012_v43 = vld [vmem:[#allocation9_spill] sm:$0xff]  ;;  %v4455_v41 = vsel %vm254_vm4, %v1521_v8, %v1584_v25 }
 0xa8b   :  { %v4420_v61 = vadd.f32 %v1502_v47, %v1440_v44  ;;  %v1626_v42 = vmul.f32 %v3293_v59, %v4410_v12  ;;  %v3295_v44 = vld [vmem:[%s4961_s4 + $0x68] sm:$0xff]  ;;  %v1568_v23 = vmul.f32 %v4431_v0, %v5012_v43 }
 0xa8c   :  { %v1522_v53 = vpop.f32.mrf.mxu0  ;;  %v1624_v37 = vmul.f32 %v3295_v44, %v4417_v35  ;;  %v1544_v44 = vrot.slane %v4373_v13, 2 }
 0xa8d   :  { %v1530_v17 = vrot.slane %v4420_v61, 6  ;;  %v1538_v18 = vrot.slane %v4420_v61, 4  ;;  %v1636_v39 = vpack.c.bf16 %v1626_v42, %v1625_v45  ;;  %v1551_v49 = vsel %vm254_vm4, %v4420_v61, %v1527_v34  ;;  %v3297_v34 = vld [vmem:[%s4961_s4 + $0x88] sm:$0xff] }
 0xa8e   :  { %v1565_v48 = vmul.f32 %v1551_v49, %v3646_v4  ;;  %v1566_v45 = vmul.f32 %v1529_v56, %v3644_v2  ;;  %v4463_v1 = vmul.f32 %v3297_v34, %v1604_v52  ;;  %v1546_v8 = vrot.slane %v4420_v61, 2  ;;  %v3298_v2 = vld [vmem:[%s4961_s4 + $0x58] sm:$0xff] }
 0xa8f   :  { %1883 = vmatpush.bf16.msra.mxu0 %v1636_v39  ;;  %v1539_v47 = vsel %vm263_vm3, %v1536_v19, %v1538_v18  ;;  %v1531_v58 = vsel %vm254_vm4, %v1528_v32, %v1530_v17  ;;  %v1635_v25 = vpack.c.bf16 %v1624_v37, %v1623_v36  ;;  %v1622_v28 = vmul.f32 %v3298_v2, %v4455_v41  ;;  %v3300_v39 = vld [vmem:[%s4961_s4 + $0x40] sm:$0xff] }
 0xa90   :  { %v1577_v4 = vpack.c.bf16 %v1565_v48, %v1564_v31  ;;  %v1553_v59 = vsel %vm132_vm0, %v1539_v47, %v1543_v57  ;;  %v1552_v42 = vsel %vm263_vm3, %v1531_v58, %v1535_v55  ;;  %v1637_v36 = vpack.c.bf16 %v4463_v1, %v4443_v54  ;;  %v5013_v47 = vld [vmem:[#allocation8_spill] sm:$0xff] }
 0xa91   :  { %v1569_v19 = vmul.f32 %v1553_v59, %v3668_v16  ;;  %v1567_v32 = vmul.f32 %v1552_v42, %v3648_v5  ;;  %v3299_v16 = vld [vmem:[%s4961_s4 + $0x50] sm:$0xff]  ;;  %v1556_v37 = vmul.f32 %v1551_v49, %v3686_v26  ;;  %v1547_v17 = vsel %vm132_vm0, %v1544_v44, %v1546_v8  ;;  %v3301_v26 = vld [vmem:[%s4961_s4 + $0x48] sm:$0xff]  ;;  %v3311_v54 = vld [vmem:[%s4960_s3] sm:$0xff] }
 0xa92   :  { %v1504_v53 = vpop.f32.mrf.mxu3  ;;  %1659 = vrot.lane.b32.xlu1 %v1577_v4, %s3343_s19  ;;  %v1621_v5 = vmul.f32 %v3299_v16, %v4384_v9  ;;  %v1619_v31 = vmul.f32 %v3300_v39, %v1604_v52  ;;  %v1557_v48 = vmul.f32 %v1529_v56, %v3677_v21  ;;  %v1545_v43 = vsel %vm132_vm0, %v1543_v57, %v1544_v44  ;;  %v3302_v57 = vld [vmem:[%s4961_s4 + $0x30] sm:$0xff] }
 0xa93   :  { %1884 = vmatpush.bf16.msra.mxu0 %v1635_v25  ;;  %v1579_v55 = vpack.c.bf16 %v1569_v19, %v1568_v23  ;;  %v1578_v29 = vpack.c.bf16 %v1567_v32, %v1566_v45  ;;  %v1620_v49 = vmul.f32 %v3301_v26, %v4386_v60  ;;  %v1562_v23 = vmul.f32 %v1547_v17, %v3688_v27  ;;  %v3305_v25 = vld [vmem:[%s4961_s4 + $0x28] sm:$0xff]  ;;  %v5014_v32 = vld [vmem:[#allocation11_spill] sm:$0xff] }
 0xa94   :  { %v1634_v18 = vpack.c.bf16 %v1622_v28, %v1621_v5  ;;  %v1560_v58 = vmul.f32 %v1553_v59, %v5013_v47  ;;  %v1573_v45 = vpack.c.bf16 %v1557_v48, %v1556_v37  ;;  %v1563_v52 = vmul.f32 %v4375_v46, %v3652_v7  ;;  %v3303_v59 = vld [vmem:[%s4961_s4 + $0x38] sm:$0xff]  ;;  %v5020_v47 = vld [vmem:[#allocation18_spill] sm:$0xff] }
 0xa95   :  { %1663 = vrot.lane.b32.xlu0 %v1579_v55, %s3343_s19  ;;  %1661 = vrot.lane.b32.xlu2 %v1578_v29, %s3343_s19  ;;  %v1633_v34 = vpack.c.bf16 %v1620_v49, %v1619_v31  ;;  %v1561_v21 = vmul.f32 %v1545_v43, %v3715_v10  ;;  %v1617_v56 = vmul.f32 %v3302_v57, %v4410_v12  ;;  %v3304_v10 = vld [vmem:[%s4961_s4 + $0x20] sm:$0xff] }
 0xa96   :  { %v1576_v4 = vpack.c.bf16 %v1563_v52, %v1562_v23  ;;  %v1618_v8 = vmul.f32 %v3303_v59, %v4407_v33  ;;  %v1615_v12 = vmul.f32 %v3304_v10, %v4417_v35  ;;  %v1616_v19 = vmul.f32 %v3305_v25, %v4395_v3  ;;  %v3306_v35 = vld [vmem:[%s4961_s4 + $0x10] sm:$0xff]  ;;  %v5019_v49 = vld [vmem:[#allocation17_spill] sm:$0xff] }
 0xa97   :  { %1885 = vmatpush.bf16.msra.mxu0 %v1634_v18  ;;  %v1575_v27 = vpack.c.bf16 %v1561_v21, %v1560_v58  ;;  %v1571_v33 = vmul.f32 %v1547_v17, %v3734_v6  ;;  %v1558_v2 = vmul.f32 %v1552_v42, %v5014_v32  ;;  %v1570_v53 = vmul.f32 %v1545_v43, %v3749_v20  ;;  %v3307_v6 = vld [vmem:[%s4961_s4 + $0x18] sm:$0xff]  ;;  %v3308_v20 = vld [vmem:[%s4961_s4 + $0x8] sm:$0xff] }
 0xa98   :  { %v1632_v7 = vpack.c.bf16 %v1618_v8, %v1617_v56  ;;  %v1631_v28 = vpack.c.bf16 %v1616_v19, %v1615_v12  ;;  %v1559_v44 = vmul.f32 %v4431_v0, %v3662_v11  ;;  %v1613_v55 = vmul.f32 %v3306_v35, %v4455_v41  ;;  %v3309_v41 = vld [vmem:[%s4961_s4] sm:$0xff]  ;;  %v3310_v25 = vld [vmem:[%s4960_s3 + $0x8] sm:$0xff] }
 0xa99   :  { %v1580_v29 = vpack.c.bf16 %v1571_v33, %v1570_v53  ;;  %v1614_v3 = vmul.f32 %v3307_v6, %v4400_v40  ;;  %v1612_v0 = vmul.f32 %v3308_v20, %v4384_v9  ;;  %v1611_v42 = vmul.f32 %v3309_v41, %v4386_v60  ;;  %v5015_v60 = vld [vmem:[#allocation13_spill] sm:$0xff]  ;;  %v5018_v43 = vld [vmem:[#allocation16_spill] sm:$0xff] }
 0xa9a   :  { %1651 = vrot.lane.b32.xlu1 %v1573_v45, %s3343_s19  ;;  %v1574_v16 = vpack.c.bf16 %v1559_v44, %v1558_v2  ;;  %v1555_v40 = vmul.f32 %v4373_v13, %v3704_v51  ;;  %v1554_v37 = vmul.f32 %v4375_v46, %v3712_v63  ;;  %v5016_v63 = vld [vmem:[#allocation14_spill] sm:$0xff]  ;;  %v5017_v13 = vld [vmem:[#allocation15_spill] sm:$0xff]  ;;  %v3314_v20 = vld [vmem:[%s4960_s3 + $0x28] sm:$0x3] }
 0xa9b   :  { %1886 = vmatpush.bf16.msra.mxu0 %v1633_v34  ;;  %v1630_v11 = vpack.c.bf16 %v1614_v3, %v1613_v55  ;;  %v1629_v5 = vpack.c.bf16 %v1612_v0, %v1611_v42  ;;  %v5021_v45 = vld [vmem:[#allocation19_spill] sm:$0xff]  ;;  %v3315_v42 = vld [vmem:[%s4960_s3 + $0x20] sm:$0x3] }
 0xa9c   :  { %v1572_v17 = vpack.c.bf16 %v1555_v40, %v1554_v37  ;;  %v3313_v55 = vld [vmem:[%s4960_s3 + $0x10] sm:$0xff] }
 0xa9d   :  { %1657 = vrot.lane.b32.xlu0 %v1576_v4, %s3343_s19  ;;  %1655 = vrot.lane.b32.xlu2 %v1575_v27, %s3343_s19 }
 0xa9f   :  { %1887 = vmatpush.bf16.msra.mxu0 %v1632_v7 }
 0xaa3   :  { %1888 = vmatpush.bf16.msra.mxu0 %v1631_v28  ;;  %v3312_v28 = vld [vmem:[%s4960_s3 + $0x18] sm:$0xff] }
 0xaa5   :  { %1665 = vrot.lane.b32.xlu2 %v1580_v29, %s3343_s19  ;;  %1653 = vrot.lane.b32.xlu0 %v1574_v16, %s3343_s19 }
 0xaa7   :  { %1889 = vmatpush.bf16.msra.mxu0 %v1630_v11 }
 0xaab   :  { %1890 = vmatpush.bf16.msra.mxu0 %v1629_v5 }
 0xaad   :  { %1649 = vrot.lane.b32.xlu0 %v1572_v17, %s3343_s19 }
 0xaef   :  { %v1662_v18 = vpop.permute.xlu2 %1661 }
 0xaf0   :  { %v1692_v46 = vsel %vm208_vm2, %v1662_v18, 0 }
 0xaf7   :  { %v1656_v9 = vpop.permute.xlu2 %1655 }
 0xaf8   :  { %v1683_v52 = vsel %vm208_vm2, %v1656_v9, 0 }
 0xaff   :  { %v1666_v39 = vpop.permute.xlu2 %1665 }
 0xb00   :  { %v1698_v31 = vsel %vm208_vm2, %v1666_v39, 0 }
 0xb01   :  { %1725 = vmatpush.bf16.xpose.msrb.mxu2 %v1698_v31 }
 0xb04   :  { %v1660_v26 = vpop.permute.xlu1 %1659 }
 0xb05   :  { %v1689_v23 = vsel %vm208_vm2, %v1660_v26, 0 }
 0xb07   :  { %v1664_v48 = vpop.permute.xlu0 %1663 }
 0xb08   :  { %v1695_v51 = vsel %vm208_vm2, %v1664_v48, 0  ;;  %2993 = vmatmul.msk.bf16.vlgmr.msrb.gmra.mxu2 %vm208_vm2, %v4379_v14 }
 0xb09   :  { %1825 = vmatpush.bf16.msra.mxu2 %v3847_v30  ;;  %1700 = vmatpush.bf16.xpose.msra.mxu1 %v1695_v51  ;;  %v1639_v30 = vpack.c.bf16 %v4420_v61, %v4420_v61 }
 0xb0c   :  { %v1652_v57 = vpop.permute.xlu1 %1651 }
 0xb0d   :  { %1826 = vmatpush.bf16.msra.mxu2 %v5015_v60  ;;  %v1677_v56 = vsel %vm208_vm2, %v1652_v57, 0 }
 0xb0f   :  { %v1658_v58 = vpop.permute.xlu0 %1657 }
 0xb10   :  { %v1686_v34 = vsel %vm208_vm2, %v1658_v58, 0 }
 0xb11   :  { %1827 = vmatpush.bf16.msra.mxu2 %v5016_v63  ;;  %1701 = vmatpush.bf16.xpose.msra.mxu1 %v1692_v46 }
 0xb15   :  { %1828 = vmatpush.bf16.msra.mxu2 %v5017_v13 }
 0xb17   :  { %v1654_v21 = vpop.permute.xlu0 %1653 }
 0xb18   :  { %2994 = vmatmul.msk.bf16.gmra.mxu2 %vm208_vm2, %v1639_v30  ;;  %v1680_v61 = vsel %vm208_vm2, %v1654_v21, 0 }
 0xb19   :  { %1829 = vmatpush.bf16.msra.mxu2 %v5018_v43  ;;  %1702 = vmatpush.bf16.xpose.msra.mxu1 %v1689_v23 }
 0xb1d   :  { %1830 = vmatpush.bf16.msra.mxu2 %v5019_v49 }
 0xb1f   :  { %v1650_v4 = vpop.permute.xlu0 %1649 }
 0xb20   :  { %v1674_v27 = vsel %vm208_vm2, %v1650_v4, 0 }
 0xb21   :  { %1831 = vmatpush.bf16.msra.mxu2 %v5020_v47  ;;  %1703 = vmatpush.bf16.xpose.msra.mxu1 %v1686_v34 }
 0xb25   :  { %1832 = vmatpush.bf16.msra.mxu2 %v5021_v45 }
 0xb29   :  { %1704 = vmatpush.bf16.xpose.msra.mxu1 %v1683_v52 }
 0xb31   :  { %1705 = vmatpush.bf16.xpose.msra.mxu1 %v1680_v61 }
 0xb39   :  { %1706 = vmatpush.bf16.xpose.msra.mxu1 %v1677_v56 }
 0xb41   :  { %1707 = vmatpush.bf16.xpose.msra.mxu1 %v1674_v27 }
 0xb48   :  { %2991 = vmatmul.msk.bf16.vlgmr.msra.gmra.mxu1 %vm208_vm2, %v4379_v14 }
 0xb49   :  { %1908 = vmatpush.bf16.msrb.mxu1 %v1637_v36 }
 0xb58   :  { %2992 = vmatmul.msk.bf16.gmra.mxu1 %vm208_vm2, %v1639_v30 }
 0xb8b   :  { %v1727_v59 = vpop.f32.mrf.mxu2 }
 0xb8c   :  { %v1737_v12 = vmul.f32 0.35355338, %v1727_v59 }
 0xb8e   :  { %v1743_v19 = vadd.f32 %v3310_v25, %v1737_v12 }
 0xb90   :  { %v1748_v36 = vsel %vm549_vm5, %v1743_v19, -inf }
 0xb93   :  { %v1729_v8 = vpop.f32.mrf.mxu2 }
 0xb94   :  { %v1739_v14 = vmul.f32 0.35355338, %v1729_v8 }
 0xb96   :  { %v1745_v53 = vadd.f32 %v3312_v28, %v1739_v14 }
 0xb98   :  { %v1752_v16 = vsel %vm549_vm5, %v1745_v53, -inf }
 0xb9b   :  { %v1732_v7 = vpop.f32.mrf.mxu2 }
 0xb9c   :  { %v1741_v6 = vmul.f32 0.35355338, %v1732_v7 }
 0xb9e   :  { %v1747_v0 = vadd.f32 %v3314_v20, %v1741_v6 }
 0xba0   :  { %v1757_v37 = vsel %vm559_vm6, %v1747_v0, -inf }
 0xba3   :  { %v1734_v10 = vpop.f32.mrf.mxu2 }
 0xbc5   :  { %v1709_v33 = vpop.f32.mrf.mxu1 }
 0xbc6   :  { %v1736_v32 = vmul.f32 0.35355338, %v1709_v33 }
 0xbc8   :  { %v1742_v1 = vadd.f32 %v3311_v54, %v1736_v32 }
 0xbca   :  { %v1749_v2 = vmax.f32 %v1742_v1, %v1748_v36 }
 0xbcc   :  { %1750 = vmax.xlane.f32.xlu1 %v1749_v2 }
 0xbcd   :  { %v1711_v44 = vpop.f32.mrf.mxu1 }
 0xbce   :  { %v1738_v35 = vmul.f32 0.35355338, %v1711_v44 }
 0xbd0   :  { %v1744_v29 = vadd.f32 %v3313_v55, %v1738_v35 }
 0xbd2   :  { %v1753_v3 = vmax.f32 %v1744_v29, %v1752_v16 }
 0xbd4   :  { %1754 = vmax.xlane.f32.xlu2 %v1753_v3 }
 0xbd5   :  { %v1714_v11 = vpop.f32.mrf.mxu1 }
 0xbd6   :  { %v1740_v41 = vmul.f32 0.35355338, %v1714_v11 }
 0xbd8   :  { %v1746_v40 = vadd.f32 %v3315_v42, %v1740_v41 }
 0xbda   :  { %v1756_v5 = vsel %vm254_vm4, %v1746_v40, -inf }
 0xbdb   :  { %v1758_v17 = vmax.f32 %v1756_v5, %v1757_v37 }
 0xbdd   :  { %1759 = vmax.xlane.f32.xlu0 %v1758_v17  ;;  %v1716_v18 = vpop.f32.mrf.mxu1 }
 0xc3f   :  { %v1751_v9 = vpop.xlane.xlu1 %1750 }
 0xc40   :  { %v1761_v39 = vsub.f32 %v1742_v1, %v1751_v9  ;;  %v1762_v31 = vsub.f32 %v1743_v19, %v1751_v9 }
 0xc42   :  { %v1767_v60 = vmul.f32 1.442695, %v1761_v39  ;;  %v1769_v48 = vmul.f32 1.442695, %v1762_v31 }
 0xc44   :  { %3237 = vpow2.f32 %v1767_v60 }
 0xc45   :  { %3239 = vpow2.f32 %v1769_v48 }
 0xc47   :  { %v1755_v51 = vpop.xlane.xlu2 %1754 }
 0xc48   :  { %v1763_v63 = vsub.f32 %v1744_v29, %v1755_v51  ;;  %v1764_v13 = vsub.f32 %v1745_v53, %v1755_v51  ;;  %v3161_v51 = vld [vmem:[%s4965_s8 + $0x38] sm:$0xff] }
 0xc49   :  { %1965 = vmatpush.bf16.msrb.mxu2 %v3161_v51 }
 0xc4a   :  { %v1771_v46 = vmul.f32 1.442695, %v1763_v63  ;;  %v1773_v43 = vmul.f32 1.442695, %v1764_v13  ;;  %v3238_v26 = vpop.eup %3237  ;;  %v3160_v63 = vld [vmem:[%s4965_s8 + $0x30] sm:$0xff]  ;;  %v3159_v13 = vld [vmem:[%s4965_s8 + $0x28] sm:$0xff] }
 0xc4b   :  { %v3240_v49 = vpop.eup %3239 }
 0xc4c   :  { %3241 = vpow2.f32 %v1771_v46 }
 0xc4d   :  { %3243 = vpow2.f32 %v1773_v43  ;;  %1966 = vmatpush.bf16.msrb.mxu2 %v3160_v63  ;;  %v3158_v43 = vld [vmem:[%s4965_s8 + $0x20] sm:$0xff] }
 0xc50   :  { %v1760_v30 = vpop.xlane.xlu0 %1759 }
 0xc51   :  { %v1765_v47 = vsub.f32 %v1746_v40, %v1760_v30  ;;  %v1766_v45 = vsub.f32 %v1747_v0, %v1760_v30  ;;  %1967 = vmatpush.bf16.msrb.mxu2 %v3159_v13 }
 0xc52   :  { %v3242_v23 = vpop.eup %3241 }
 0xc53   :  { %v3244_v58 = vpop.eup %3243  ;;  %v1779_v34 = vpack.c.bf16 %v3242_v23, %v3238_v26  ;;  %v1775_v21 = vmul.f32 1.442695, %v1765_v47  ;;  %v1777_v61 = vmul.f32 1.442695, %v1766_v45 }
 0xc54   :  { %v1780_v52 = vpack.c.bf16 %v3244_v58, %v3240_v49 }
 0xc55   :  { %1797 = vmatmul.bf16.vlgmr.msrb.gmra.mxu3 %v1779_v34  ;;  %1833 = vmatmul.bf16.vlgmr.msra.gmra.mxu2 %v1779_v34  ;;  %3245 = vpow2.f32 %v1775_v21 }
 0xc56   :  { %2995 = vmatmul.msk.bf16.vlgmr.msrb.gmra.mxu0 %vm549_vm5, %v1780_v52  ;;  %3247 = vpow2.f32 %v1777_v61  ;;  %1968 = vmatpush.bf16.msrb.mxu2 %v3158_v43 }
 0xc5b   :  { %v3246_v57 = vpop.eup %3245 }
 0xc5c   :  { %v3248_v56 = vpop.eup %3247  ;;  %v1781_v4 = vpack.c.bf16 %v3246_v57, %v3246_v57 }
 0xc5d   :  { %v1782_v27 = vpack.c.bf16 %v3248_v56, %v3248_v56 }
 0xc65   :  { %1802 = vmatmul.bf16.gmra.mxu3 %v1781_v4  ;;  %1838 = vmatmul.bf16.gmra.mxu2 %v1781_v4 }
 0xc66   :  { %2996 = vmatmul.msk.bf16.gmra.mxu0 %vm549_vm5, %v1782_v27 }
 0xc75   :  { %2997 = vmatmul.msk.bf16.vlgmr.msra.gmra.mxu3 %vm549_vm5, %v1780_v52 }
 0xc85   :  { %2998 = vmatmul.msk.bf16.gmra.mxu3 %vm549_vm5, %v1782_v27 }
 0xcd3   :  { %v1816_v59 = vpop.f32.mrf.mxu0 }
 0xcd8   :  { %v1798_v8 = vpop.f32.mrf.mxu3  ;;  %v1834_v7 = vpop.f32.mrf.mxu2 }
 0xcd9   :  { %v1817_v12 = vadd.f32 %v1816_v59, %v1798_v8 }
 0xcdb   :  { %v1818_v10 = vpop.f32.mrf.mxu0  ;;  %3249 = vrcp.f32 %v1817_v12 }
 0xce0   :  { %v1800_v25 = vpop.f32.mrf.mxu3  ;;  %v1836_v19 = vpop.f32.mrf.mxu2 }
 0xce1   :  { %v1819_v33 = vadd.f32 %v1818_v10, %v1800_v25  ;;  %v3250_v54 = vpop.eup %3249 }
 0xce2   :  { %v1867_v2 = vmul.f32 %v3250_v54, %v3238_v26 }
 0xce3   :  { %3251 = vrcp.f32 %v1819_v33  ;;  %v1821_v32 = vpop.f32.mrf.mxu0 }
 0xce8   :  { %v1803_v1 = vpop.f32.mrf.mxu3  ;;  %v1839_v14 = vpop.f32.mrf.mxu2 }
 0xce9   :  { %v3252_v36 = vpop.eup %3251  ;;  %v1822_v53 = vadd.f32 %v1821_v32, %v1803_v1 }
 0xcea   :  { %v1869_v28 = vmul.f32 %v3252_v36, %v3242_v23 }
 0xceb   :  { %v1823_v44 = vpop.f32.mrf.mxu0  ;;  %3253 = vrcp.f32 %v1822_v53 }
 0xcec   :  { %v1873_v35 = vpack.c.bf16 %v1869_v28, %v1867_v2 }
 0xcee   :  { %1891 = vmatmul.bf16.vlgmr.msra.gmra.mxu0 %v1873_v35 }
 0xcf0   :  { %v1805_v55 = vpop.f32.mrf.mxu3  ;;  %v1841_v29 = vpop.f32.mrf.mxu2 }
 0xcf1   :  { %v3254_v16 = vpop.eup %3253 }
 0xcf2   :  { %v1871_v3 = vmul.f32 %v3254_v16, %v3246_v57 }
 0xcf4   :  { %v1875_v11 = vpack.c.bf16 %v1871_v3, %v1871_v3 }
 0xcf8   :  { %v1852_v6 = vpop.f32.mrf.mxu3 }
 0xcf9   :  { %v1853_v20 = vadd.f32 %v1852_v6, %v1834_v7 }
 0xcfb   :  { %3255 = vrcp.f32 %v1853_v20 }
 0xcfe   :  { %1896 = vmatmul.bf16.gmra.mxu0 %v1875_v11 }
 0xd00   :  { %v1854_v0 = vpop.f32.mrf.mxu3 }
 0xd01   :  { %v1855_v41 = vadd.f32 %v1854_v0, %v1836_v19  ;;  %v3256_v42 = vpop.eup %3255 }
 0xd02   :  { %v1868_v37 = vmul.f32 %v3256_v42, %v3240_v49 }
 0xd03   :  { %3257 = vrcp.f32 %v1855_v41 }
 0xd08   :  { %v1857_v40 = vpop.f32.mrf.mxu3 }
 0xd09   :  { %v3258_v5 = vpop.eup %3257  ;;  %v1858_v18 = vadd.f32 %v1857_v40, %v1839_v14 }
 0xd0a   :  { %v1870_v17 = vmul.f32 %v3258_v5, %v3244_v58 }
 0xd0b   :  { %3259 = vrcp.f32 %v1858_v18 }
 0xd0c   :  { %v1874_v9 = vpack.c.bf16 %v1870_v17, %v1868_v37 }
 0xd0e   :  { %2999 = vmatmul.msk.bf16.vlgmr.msrb.gmra.mxu1 %vm549_vm5, %v1874_v9 }
 0xd10   :  { %v1859_v39 = vpop.f32.mrf.mxu3 }
 0xd11   :  { %v3260_v31 = vpop.eup %3259  ;;  %v3165_v39 = vld [vmem:[%s4966_s9 + $0x38] sm:$0xff] }
 0xd12   :  { %v1872_v60 = vmul.f32 %v3260_v31, %v3248_v56  ;;  %v1930_v56 = vperm.slane %v4370_v62, 1  ;;  %2165 = vmatpush.bf16.msrb.mxu3 %v3165_v39 }
 0xd14   :  { %v1876_v48 = vpack.c.bf16 %v1872_v60, %v1872_v60 }
 0xd1e   :  { %3000 = vmatmul.msk.bf16.gmra.mxu1 %vm549_vm5, %v1876_v48 }
 0xd6b   :  { %v1892_v46 = vpop.f32.mrf.mxu0 }
 0xd73   :  { %v1894_v26 = vpop.f32.mrf.mxu0 }
 0xd7b   :  { %v1897_v30 = vpop.f32.mrf.mxu0 }
 0xd83   :  { %v1899_v49 = vpop.f32.mrf.mxu0 }
 0xd8b   :  { %v1910_v23 = vpop.f32.mrf.mxu1 }
 0xd8c   :  { %v1911_v58 = vadd.f32 %v1910_v23, %v1892_v46  ;;  %v3164_v46 = vld [vmem:[%s4966_s9 + $0x30] sm:$0xff]  ;;  %v3162_v23 = vld [vmem:[%s4966_s9 + $0x20] sm:$0xff] }
 0xd8d   :  { %2166 = vmatpush.bf16.msrb.mxu3 %v3164_v46 }
 0xd93   :  { %v1912_v47 = vpop.f32.mrf.mxu1 }
 0xd94   :  { %v1913_v45 = vadd.f32 %v1912_v47, %v1894_v26  ;;  %v3163_v26 = vld [vmem:[%s4966_s9 + $0x28] sm:$0xff] }
 0xd95   :  { %2167 = vmatpush.bf16.msrb.mxu3 %v3163_v26 }
 0xd96   :  { %v1928_v34 = vpack.c.bf16 %v1913_v45, %v1911_v58 }
 0xd98   :  { %3025 = vmatmul.msk.bf16.vlgmr.msrb.gmra.mxu2 %vm208_vm2, %v1928_v34 }
 0xd99   :  { %2168 = vmatpush.bf16.msrb.mxu3 %v3162_v23 }
 0xd9b   :  { %v1915_v52 = vpop.f32.mrf.mxu1 }
 0xd9c   :  { %v1916_v21 = vadd.f32 %v1915_v52, %v1897_v30 }
 0xd9e   :  { %v1929_v57 = vpack.c.bf16 %v1916_v21, %v1916_v21 }
 0xda3   :  { %v1917_v61 = vpop.f32.mrf.mxu1 }
 0xda8   :  { %3026 = vmatmul.msk.bf16.gmra.mxu2 %vm208_vm2, %v1929_v57 }
 0xe1b   :  { %v1970_v4 = vpop.f32.mrf.mxu2 }
 0xe1c   :  { %v1971_v27 = vadd.f32 %v1970_v4, %v1930_v56 }
 0xe1e   :  { %v4619_v59 = vadd.f32 %v1971_v27, %v4343_v22 }
 0xe20   :  { %1997 = vrot.lane.b32.xlu1 %v4619_v59, %s3344_s23 }
 0xe23   :  { %v1972_v8 = vpop.f32.mrf.mxu2 }
 0xe24   :  { %v1973_v7 = vadd.f32 %v1972_v8, %v1930_v56 }
 0xe26   :  { %v4624_v10 = vadd.f32 %v1973_v7, %v4345_v50  ;;  %v1982_v50 = vsel %vm874_vm7, %v4619_v59, 0.0 }
 0xe28   :  { %1999 = vrot.lane.b32.xlu2 %v4624_v10, %s3344_s23  ;;  %v1985_v33 = vsel %vm874_vm7, %v4624_v10, 0.0 }
 0xe2b   :  { %v1975_v12 = vpop.f32.mrf.mxu2 }
 0xe2c   :  { %v4628_v25 = vadd.f32 %v1975_v12, %v1930_v56 }
 0xe33   :  { %v1977_v19 = vpop.f32.mrf.mxu2 }
 0xe4a   :  { %1986 = vadd.xlane.f32.xlu1 %v1985_v33 }
 0xe82   :  { %v2000_v54 = vpop.permute.xlu2 %1999 }
 0xe83   :  { %v2009_v1 = vsel %vm874_vm7, %v2000_v54, 0.0  ;;  %v4676_v54 = vperm.slane %v4370_v62, 2 }
 0xe92   :  { %v1998_v22 = vpop.permute.xlu1 %1997 }
 0xe93   :  { %v2006_v32 = vsel %vm874_vm7, %v1998_v22, 0.0 }
 0xe94   :  { %2007 = vadd.xlane.f32.xlu0 %v2006_v32 }
 0xe9c   :  { %2010 = vadd.xlane.f32.xlu0 %v2009_v1 }
 0xea4   :  { %1983 = vadd.xlane.f32.xlu0 %v1982_v50 }
 0xebd   :  { %v1987_v11 = vpop.xlane.xlu1 %1986 }
 0xebe   :  { %v1992_v0 = vmul.f32 %v1987_v11, %v4071_v38 }
 0xec0   :  { %v2019_v42 = vsub.f32 %v4624_v10, %v1992_v0 }
 0xec2   :  { %v2022_v40 = vmul.f32 %v2019_v42, %v2019_v42  ;;  %v3173_v42 = vld [vmem:[%s4967_s10 + $0x78] sm:$0xff] }
 0xec3   :  { %2367 = vmatpush.bf16.msrb.mxu0 %v3173_v42 }
 0xec4   :  { %v2027_v5 = vsel %vm874_vm7, %v2022_v40, 0.0 }
 0xf07   :  { %v2008_v14 = vpop.xlane.xlu0 %2007 }
 0xf08   :  { %v2015_v36 = vmul.f32 %v2008_v14, %v4071_v38 }
 0xf0a   :  { %v2036_v2 = vsub.f32 %v4619_v59, %v2015_v36 }
 0xf0c   :  { %v2039_v28 = vmul.f32 %v2036_v2, %v2036_v2 }
 0xf0e   :  { %2045 = vrot.lane.b32.xlu2 %v2039_v28, %s3344_s23 }
 0xf0f   :  { %v2011_v53 = vpop.xlane.xlu0 %2010 }
 0xf10   :  { %v2016_v44 = vmul.f32 %v2011_v53, %v4071_v38 }
 0xf12   :  { %v2037_v35 = vsub.f32 %v4624_v10, %v2016_v44  ;;  %v2067_v33 = vsel %vm51_vm10, %v1992_v0, %v2016_v44 }
 0xf13   :  { %v2073_v50 = vsub.f32 %v4624_v10, %v2067_v33  ;;  %v4694_v10 = vperm.slane %v4370_v62, 4 }
 0xf14   :  { %v2040_v55 = vmul.f32 %v2037_v35, %v2037_v35 }
 0xf16   :  { %2047 = vrot.lane.b32.xlu0 %v2040_v55, %s3344_s23 }
 0xf17   :  { %v1984_v29 = vpop.xlane.xlu0 %1983 }
 0xf18   :  { %v1991_v16 = vmul.f32 %v1984_v29, %v4071_v38 }
 0xf1a   :  { %v2066_v6 = vsel %vm51_vm10, %v1991_v16, %v2015_v36  ;;  %v2018_v3 = vsub.f32 %v4619_v59, %v1991_v16 }
 0xf1b   :  { %v2072_v19 = vsub.f32 %v4619_v59, %v2066_v6  ;;  %v4681_v59 = vperm.slane %v4370_v62, 3 }
 0xf1c   :  { %v2021_v20 = vmul.f32 %v2018_v3, %v2018_v3 }
 0xf1e   :  { %v2024_v41 = vsel %vm874_vm7, %v2021_v20, 0.0 }
 0xf37   :  { %2025 = vadd.xlane.f32.xlu2 %v2024_v41 }
 0xf40   :  { %2028 = vadd.xlane.f32.xlu0 %v2027_v5 }
 0xf68   :  { %v2046_v37 = vpop.permute.xlu2 %2045 }
 0xf69   :  { %v2054_v17 = vsel %vm874_vm7, %v2046_v37, 0.0 }
 0xf6a   :  { %2055 = vadd.xlane.f32.xlu1 %v2054_v17 }
 0xf88   :  { %v2048_v18 = vpop.permute.xlu0 %2047 }
 0xf89   :  { %v2057_v9 = vsel %vm874_vm7, %v2048_v18, 0.0  ;;  %v3172_v18 = vld [vmem:[%s4967_s10 + $0x70] sm:$0xff] }
 0xf8a   :  { %2058 = vadd.xlane.f32.xlu1 %v2057_v9  ;;  %2368 = vmatpush.bf16.msrb.mxu0 %v3172_v18 }
 0xfaa   :  { %v2026_v60 = vpop.xlane.xlu2 %2025 }
 0xfab   :  { %v2033_v51 = vmul.f32 %v2026_v60, %v4071_v38 }
 0xfb3   :  { %v2029_v49 = vpop.xlane.xlu0 %2028 }
 0xfb4   :  { %v2034_v58 = vmul.f32 %v2029_v49, %v4071_v38  ;;  %v3170_v49 = vld [vmem:[%s4967_s10 + $0x60] sm:$0xff] }
 0xfdd   :  { %v2056_v31 = vpop.xlane.xlu1 %2055 }
 0xfde   :  { %v2063_v48 = vmul.f32 %v2056_v31, %v4071_v38 }
 0xfe0   :  { %v2069_v63 = vsel %vm51_vm10, %v2033_v51, %v2063_v48  ;;  %v3171_v48 = vld [vmem:[%s4967_s10 + $0x68] sm:$0xff] }
 0xfe1   :  { %v2075_v13 = vadd.f32 1e-05, %v2069_v63  ;;  %2369 = vmatpush.bf16.msrb.mxu0 %v3171_v48 }
 0xfe3   :  { %3261 = vrsqrt.f32 %v2075_v13  ;;  %vm2084_vm4 = vweird.f32 %v2075_v13 }
 0xfe5   :  { %2370 = vmatpush.bf16.msrb.mxu0 %v3170_v49 }
 0xfe9   :  { %v3262_v43 = vpop.eup %3261 }
 0xfea   :  { %v2079_v30 = vmul.f32 %v3262_v43, %v2075_v13  ;;  %vm2085_vm0 = vweird.f32 %v3262_v43 }
 0xfeb   :  { %vm2086_vm5 = vmor %vm2084_vm4, %vm2085_vm0 }
 0xfec   :  { %v2080_v45 = vmul.f32 %v3262_v43, %v2079_v30 }
 0xfee   :  { %v2081_v61 = vmul.f32 0.5, %v2080_v45 }
 0xff0   :  { %v2082_v57 = vsub.f32 1.5, %v2081_v61  ;;  %v3169_v61 = vld [vmem:[%s4967_s10 + $0x58] sm:$0xff] }
 0xff1   :  { %2371 = vmatpush.bf16.msrb.mxu0 %v3169_v61 }
 0xff2   :  { %v2083_v4 = vmul.f32 %v3262_v43, %v2082_v57 }
 0xff4   :  { %v2087_v7 = vsel %vm2086_vm5, %v3262_v43, %v2083_v4 }
 0xff5   :  { %v2108_v32 = vmul.f32 %v2087_v7, %v2072_v19 }
 0xff7   :  { %v2112_v2 = vmul.f32 %v4676_v54, %v2108_v32 }
 0xff9   :  { %v4685_v53 = vadd.f32 %v4681_v59, %v2112_v2 }
 0xffd   :  { %v2059_v47 = vpop.xlane.xlu1 %2058 }
 0xffe   :  { %v2064_v34 = vmul.f32 %v2059_v47, %v4071_v38 }
0x1000   :  { %v2070_v52 = vsel %vm51_vm10, %v2034_v58, %v2064_v34 }
0x1001   :  { %v2076_v21 = vadd.f32 1e-05, %v2070_v52 }
0x1003   :  { %3263 = vrsqrt.f32 %v2076_v21  ;;  %vm2094_vm1 = vweird.f32 %v2076_v21 }
0x1009   :  { %v3264_v56 = vpop.eup %3263 }
0x100a   :  { %v2089_v27 = vmul.f32 %v3264_v56, %v2076_v21  ;;  %vm2095_vm6 = vweird.f32 %v3264_v56 }
0x100b   :  { %vm2096_vm9 = vmor %vm2094_vm1, %vm2095_vm6 }
0x100c   :  { %v2090_v8 = vmul.f32 %v3264_v56, %v2089_v27 }
0x100e   :  { %v2091_v12 = vmul.f32 0.5, %v2090_v8  ;;  %v3168_v8 = vld [vmem:[%s4967_s10 + $0x50] sm:$0xff] }
0x100f   :  { %2372 = vmatpush.bf16.msrb.mxu0 %v3168_v8 }
0x1010   :  { %v2092_v22 = vsub.f32 1.5, %v2091_v12 }
0x1012   :  { %v2093_v1 = vmul.f32 %v3264_v56, %v2092_v22 }
0x1014   :  { %v2097_v14 = vsel %vm2096_vm9, %v3264_v56, %v2093_v1  ;;  %v3167_v1 = vld [vmem:[%s4967_s10 + $0x48] sm:$0xff]  ;;  %vm2505_vm9 = vcmask 97280  }
0x1015   :  { %v2109_v36 = vmul.f32 %v2097_v14, %v2073_v50  ;;  %2373 = vmatpush.bf16.msrb.mxu0 %v3167_v1  ;;  %v4773_v1 = vld [vmem:[%s4969_s12 + $0x8] sm:$0xff] }
0x1016   :  { %3101 = vmatpush.msk.msra.mxu1 %vm263_vm3, %v4773_v1 }
0x1017   :  { %v2113_v28 = vmul.f32 %v4676_v54, %v2109_v36 }
0x1019   :  { %v4688_v44 = vadd.f32 %v4681_v59, %v2113_v28 }
0x101b   :  { %v2128_v35 = vpack.c.bf16 %v4688_v44, %v4685_v53 }
0x101d   :  { %3051 = vmatmul.msk.bf16.vlgmr.msrb.gmra.mxu3 %vm208_vm2, %v2128_v35  ;;  %v3166_v35 = vld [vmem:[%s4967_s10 + $0x40] sm:$0xff] }
0x101e   :  { %2374 = vmatpush.bf16.msrb.mxu0 %v3166_v35  ;;  %v2503_v35 = vld [vmem:[%s4958_s1] sm:$0x3] }
0x10a0   :  { %v2170_v55 = vpop.f32.mrf.mxu3 }
0x10a1   :  { %v4697_v29 = vadd.f32 %v2170_v55, %v4694_v10 }
0x10a3   :  { %v4700_v16 = vmul.f32 0.70710677, %v4697_v29 }
0x10a5   :  { %v2185_v6 = vand.u32 2147483647, %v4700_v16  ;;  %vm2284_vm6 = vcmp.ge.f32.partialorder %v4700_v16, 0.0  ;;  %v4741_v16 = vld [vmem:[%s4968_s11 + $0x10] sm:$0xff] }
0x10a7   :  { %v2188_v3 = vmul.f32 0.3275911, %v2185_v6  ;;  %v2266_v26 = vsub.f32 0.0, %v2185_v6 }
0x10a8   :  { %v2172_v11 = vpop.f32.mrf.mxu3 }
0x10a9   :  { %v2191_v20 = vadd.f32 1.0, %v2188_v3  ;;  %v4704_v0 = vadd.f32 %v2172_v11, %v4694_v10  ;;  %v2269_v34 = vmul.f32 %v2266_v26, %v2185_v6 }
0x10ab   :  { %3265 = vrcp.f32 %v2191_v20  ;;  %v4707_v41 = vmul.f32 0.70710677, %v4704_v0  ;;  %v2205_v39 = vand.u32 2147483648, %v2191_v20  ;;  %v2203_v60 = vand.u32 2147483647, %v2191_v20 }
0x10ac   :  { %vm2199_vm12 = vweird.f32 %v2191_v20  ;;  %v2272_v7 = vmul.f32 1.442695, %v2269_v34 }
0x10ad   :  { %v2186_v62 = vand.u32 2147483647, %v4707_v41  ;;  %v2206_v63 = vor.u32 1.1754944e-38, %v2205_v39  ;;  %vm2204_vm14 = vcmp.eq.f32.partialorder %v2203_v60, 8.507059e+37  ;;  %vm2285_vm1 = vcmp.ge.f32.partialorder %v4707_v41, 0.0 }
0x10af   :  { %v2189_v40 = vmul.f32 0.3275911, %v2186_v62  ;;  %v2267_v22 = vsub.f32 0.0, %v2186_v62 }
0x10b1   :  { %v3266_v5 = vpop.eup %3265  ;;  %v2192_v17 = vadd.f32 1.0, %v2189_v40  ;;  %v2270_v2 = vmul.f32 %v2267_v22, %v2186_v62 }
0x10b2   :  { %v2195_v37 = vmul.f32 %v3266_v5, %v2191_v20  ;;  %vm2200_vm11 = vweird.f32 %v3266_v5 }
0x10b3   :  { %3267 = vrcp.f32 %v2192_v17  ;;  %vm2201_vm13 = vmor %vm2199_vm12, %vm2200_vm11  ;;  %v2220_v45 = vand.u32 2147483648, %v2192_v17  ;;  %v2218_v21 = vand.u32 2147483647, %v2192_v17  ;;  %vm2214_vm0 = vweird.f32 %v2192_v17 }
0x10b4   :  { %v2196_v9 = vsub.f32 1.0, %v2195_v37  ;;  %3269 = vpow2.f32 %v2272_v7  ;;  %v2274_v11 = vmul.f32 1.442695, %v2270_v2 }
0x10b5   :  { %v2221_v27 = vor.u32 1.1754944e-38, %v2220_v45  ;;  %vm2219_vm5 = vcmp.eq.f32.partialorder %v2218_v21, 8.507059e+37 }
0x10b6   :  { %v2197_v31 = vmul.f32 %v3266_v5, %v2196_v9  ;;  %3271 = vpow2.f32 %v2274_v11 }
0x10b8   :  { %v2198_v51 = vadd.f32 %v3266_v5, %v2197_v31 }
0x10b9   :  { %v3268_v13 = vpop.eup %3267 }
0x10ba   :  { %v2202_v46 = vsel %vm2201_vm13, %v3266_v5, %v2198_v51  ;;  %v2210_v30 = vmul.f32 %v3268_v13, %v2192_v17  ;;  %vm2215_vm15 = vweird.f32 %v3268_v13  ;;  %v3270_v20 = vpop.eup %3269 }
0x10bb   :  { %v2207_v43 = vsel %vm2204_vm14, %v2206_v63, %v2202_v46  ;;  %vm2216_vm4 = vmor %vm2214_vm0, %vm2215_vm15  ;;  %v2179_v46 = vmul.f32 0.5, %v4697_v29  ;;  %vm2478_vm0 = vcmask 1040384  }
0x10bc   :  { %v2239_v23 = vmul.f32 1.0614054, %v2207_v43  ;;  %v2211_v47 = vsub.f32 1.0, %v2210_v30  ;;  %v3272_v39 = vpop.eup %3271 }
0x10be   :  { %v2242_v58 = vadd.f32 -1.4531521, %v2239_v23  ;;  %v2212_v52 = vmul.f32 %v3268_v13, %v2211_v47  ;;  %v2318_v47 = vperm.slane %v4741_v16, 5 }
0x10c0   :  { %v2245_v57 = vmul.f32 %v2242_v58, %v2207_v43  ;;  %v2213_v56 = vadd.f32 %v3268_v13, %v2212_v52 }
0x10c2   :  { %v2248_v4 = vadd.f32 1.4214138, %v2245_v57  ;;  %v2217_v12 = vsel %vm2216_vm4, %v3268_v13, %v2213_v56  ;;  %vm2538_vm4 = vcmask 648192  }
0x10c3   :  { %v2222_v33 = vsel %vm2219_vm5, %v2221_v27, %v2217_v12 }
0x10c4   :  { %v2251_v19 = vmul.f32 %v2248_v4, %v2207_v43  ;;  %v2240_v32 = vmul.f32 1.0614054, %v2222_v33 }
0x10c6   :  { %v2254_v50 = vadd.f32 -0.28449672, %v2251_v19  ;;  %v2243_v14 = vadd.f32 -1.4531521, %v2240_v32 }
0x10c8   :  { %v2257_v36 = vmul.f32 %v2254_v50, %v2207_v43  ;;  %v2246_v28 = vmul.f32 %v2243_v14, %v2222_v33  ;;  %v2480_v50 = vld [vmem:[%s4969_s12] sm:$0xff] }
0x10c9   :  { %2527 = vmatpush.msra.mxu1 %v2480_v50 }
0x10ca   :  { %v2260_v55 = vadd.f32 0.2548296, %v2257_v36  ;;  %v2249_v6 = vadd.f32 1.4214138, %v2246_v28  ;;  %3102 = vmatmul.msk.f32.vlgmr.msra.gmra.mxu1 %vm2505_vm9, %v2503_v35  ;;  %v2472_v35 = vperm.slane %v4741_v16, 6 }
0x10cc   :  { %v2263_v3 = vmul.f32 %v2260_v55, %v2207_v43  ;;  %v2252_v42 = vmul.f32 %v2249_v6, %v2222_v33  ;;  %v2180_v43 = vmul.f32 0.5, %v4704_v0  ;;  %v4791_v55 = vadd.f32 %v4628_v25, %v4361_v24 }
0x10ce   :  { %v2278_v40 = vmul.f32 %v3270_v20, %v2263_v3  ;;  %v2255_v5 = vadd.f32 -0.28449672, %v2252_v42 }
0x10d0   :  { %v2281_v37 = vsub.f32 1.0, %v2278_v40  ;;  %v2258_v17 = vmul.f32 %v2255_v5, %v2222_v33 }
0x10d2   :  { %v2261_v18 = vadd.f32 0.2548296, %v2258_v17  ;;  %v2287_v62 = vsub.f32 0.0, %v2281_v37 }
0x10d4   :  { %v2264_v9 = vmul.f32 %v2261_v18, %v2222_v33  ;;  %v2290_v60 = vsel %vm2284_vm6, %v2281_v37, %v2287_v62  ;;  %v1988_v18 = vsel %vm881_vm8, %v4791_v55, 0.0  ;;  %v3182_v62 = vld [vmem:[%s4970_s13 + $0x4] ss:$0 sm:$0xff] }
0x10d5   :  { %v2293_v63 = vadd.f32 1.0, %v2290_v60 }
0x10d6   :  { %v2279_v31 = vmul.f32 %v3272_v39, %v2264_v9 }
0x10d7   :  { %v2296_v30 = vmul.f32 %v2293_v63, %v2179_v46 }
0x10d8   :  { %v2282_v48 = vsub.f32 1.0, %v2279_v31 }
0x10da   :  { %v2288_v51 = vsub.f32 0.0, %v2282_v48 }
0x10dc   :  { %v2291_v13 = vsel %vm2285_vm1, %v2282_v48, %v2288_v51 }
0x10dd   :  { %v2294_v26 = vadd.f32 1.0, %v2291_v13 }
0x10df   :  { %v2297_v49 = vmul.f32 %v2294_v26, %v2180_v43 }
0x10e1   :  { %v2316_v23 = vpack.c.bf16 %v2297_v49, %v2296_v30 }
0x10e3   :  { %2375 = vmatmul.bf16.vlgmr.msrb.gmra.mxu0 %v2316_v23 }
0x1147   :  { %v2529_v9 = vpop.f32.mrf.mxu1 }
0x1148   :  { %v2530_v39 = vadd.f32 %v3182_v62, %v2529_v9 }
0x114a   :  { %v2532_v31 = vmax.f32 %v2530_v39, 0.0 }
0x1160   :  { %v2376_v58 = vpop.f32.mrf.mxu0 }
0x1161   :  { %v2377_v45 = vadd.f32 %v2376_v58, %v2318_v47 }
0x1163   :  { %v4745_v41 = vadd.f32 %v2377_v45, %v4685_v53 }
0x1165   :  { %2396 = vrot.lane.b32.xlu2 %v4745_v41, %s3344_s23  ;;  %v2386_v52 = vsel %vm874_vm7, %v4745_v41, 0.0 }
0x1168   :  { %v2378_v29 = vpop.f32.mrf.mxu0 }
0x1169   :  { %v2379_v0 = vadd.f32 %v2378_v29, %v2318_v47 }
0x116b   :  { %v4750_v34 = vadd.f32 %v2379_v0, %v4688_v44 }
0x116d   :  { %2398 = vrot.lane.b32.xlu1 %v4750_v34, %s3344_s23  ;;  %v2389_v21 = vsel %vm874_vm7, %v4750_v34, 0.0 }
0x118e   :  { %2387 = vadd.xlane.f32.xlu2 %v2386_v52 }
0x1197   :  { %2390 = vadd.xlane.f32.xlu1 %v2389_v21 }
0x11bf   :  { %v2397_v53 = vpop.permute.xlu2 %2396 }
0x11c0   :  { %v2402_v61 = vsel %vm874_vm7, %v2397_v53, 0.0 }
0x11c1   :  { %2403 = vadd.xlane.f32.xlu0 %v2402_v61 }
0x11df   :  { %v2399_v57 = vpop.permute.xlu1 %2398 }
0x11e0   :  { %v2405_v56 = vsel %vm874_vm7, %v2399_v57, 0.0 }
0x11e1   :  { %2406 = vadd.xlane.f32.xlu0 %v2405_v56 }
0x1201   :  { %v2388_v44 = vpop.xlane.xlu2 %2387 }
0x1202   :  { %v2392_v4 = vmul.f32 %v2388_v44, %v4071_v38 }
0x1204   :  { %v2410_v27 = vsub.f32 %v4745_v41, %v2392_v4 }
0x1206   :  { %v2412_v8 = vmul.f32 %v2410_v27, %v2410_v27 }
0x1208   :  { %v2414_v7 = vsel %vm874_vm7, %v2412_v8, 0.0 }
0x1209   :  { %2415 = vadd.xlane.f32.xlu2 %v2414_v7 }
0x120a   :  { %v2391_v6 = vpop.xlane.xlu1 %2390 }
0x120b   :  { %v2393_v3 = vmul.f32 %v2391_v6, %v4071_v38 }
0x120d   :  { %v2411_v11 = vsub.f32 %v4750_v34, %v2393_v3 }
0x120f   :  { %v2413_v20 = vmul.f32 %v2411_v11, %v2411_v11 }
0x1211   :  { %v2417_v42 = vsel %vm874_vm7, %v2413_v20, 0.0 }
0x1234   :  { %v2404_v12 = vpop.xlane.xlu0 %2403 }
0x1235   :  { %v2408_v19 = vmul.f32 %v2404_v12, %v4071_v38 }
0x1237   :  { %v2422_v33 = vsub.f32 %v4745_v41, %v2408_v19  ;;  %v4767_v22 = vsel %vm51_vm10, %v2392_v4, %v2408_v19 }
0x1239   :  { %v2424_v32 = vmul.f32 %v2422_v33, %v2422_v33  ;;  %v2446_v33 = vsub.f32 %v4745_v41, %v4767_v22 }
0x123b   :  { %2428 = vrot.lane.b32.xlu0 %v2424_v32, %s3344_s23 }
0x1254   :  { %v2407_v14 = vpop.xlane.xlu0 %2406 }
0x1255   :  { %v4781_v36 = vmul.f32 %v2407_v14, %v4071_v38 }
0x1257   :  { %v2423_v2 = vsub.f32 %v4750_v34, %v4781_v36  ;;  %v2443_v32 = vsel %vm51_vm10, %v2393_v3, %v4781_v36 }
0x1258   :  { %v2447_v41 = vsub.f32 %v4750_v34, %v2443_v32  ;;  %v2486_v32 = vld [vmem:[%s4969_s12 + $0x30] sm:$0xff] }
0x1259   :  { %v2425_v28 = vmul.f32 %v2423_v2, %v2423_v2 }
0x125b   :  { %2430 = vrot.lane.b32.xlu0 %v2425_v28, %s3344_s23 }
0x1263   :  { %2001 = vrot.lane.b32.xlu0 %v4791_v55, %s3344_s23 }
0x127c   :  { %v2416_v48 = vpop.xlane.xlu2 %2415 }
0x127d   :  { %v2420_v63 = vmul.f32 %v2416_v48, %v4071_v38 }
0x128d   :  { %2418 = vadd.xlane.f32.xlu0 %v2417_v42  ;;  %v2475_v42 = vperm.slane %v4741_v16, 7 }
0x12ad   :  { %v2429_v40 = vpop.permute.xlu0 %2428 }
0x12ae   :  { %v2434_v5 = vsel %vm874_vm7, %v2429_v40, 0.0 }
0x12af   :  { %2435 = vadd.xlane.f32.xlu1 %v2434_v5 }
0x12cd   :  { %v2431_v37 = vpop.permute.xlu0 %2430 }
0x12ce   :  { %v2437_v24 = vsel %vm874_vm7, %v2431_v37, 0.0 }
0x12cf   :  { %2438 = vadd.xlane.f32.xlu2 %v2437_v24 }
0x12d5   :  { %v2002_v25 = vpop.permute.xlu0 %2001 }
0x12d6   :  { %v2012_v17 = vsel %vm881_vm8, %v2002_v25, 0.0 }
0x12d7   :  { %2013 = vadd.xlane.f32.xlu1 %v2012_v17 }
0x12df   :  { %1989 = vadd.xlane.f32.xlu1 %v1988_v18  ;;  %v3346_v18 = vmov 80.0  }
0x12e7   :  { %2534 = vrot.lane.b32.xlu2 %v2532_v31, %s3343_s19 }
0x1300   :  { %v2419_v30 = vpop.xlane.xlu0 %2418 }
0x1301   :  { %v2421_v23 = vmul.f32 %v2419_v30, %v4071_v38  ;;  %v2490_v30 = vld [vmem:[%s4969_s12 + $0x50] sm:$0xff] }
0x1322   :  { %v2436_v60 = vpop.xlane.xlu1 %2435 }
0x1323   :  { %v2440_v51 = vmul.f32 %v2436_v60, %v4071_v38 }
0x1325   :  { %v2444_v13 = vsel %vm51_vm10, %v2420_v63, %v2440_v51 }
0x1326   :  { %v2448_v46 = vadd.f32 1e-05, %v2444_v13 }
0x1328   :  { %3273 = vrsqrt.f32 %v2448_v46  ;;  %vm2456_vm11 = vweird.f32 %v2448_v46 }
0x132e   :  { %v3274_v43 = vpop.eup %3273 }
0x132f   :  { %v2451_v26 = vmul.f32 %v3274_v43, %v2448_v46  ;;  %vm2457_vm7 = vweird.f32 %v3274_v43 }
0x1330   :  { %vm2458_vm12 = vmor %vm2456_vm11, %vm2457_vm7 }
0x1331   :  { %v2452_v47 = vmul.f32 %v3274_v43, %v2451_v26 }
0x1333   :  { %v2453_v0 = vmul.f32 0.5, %v2452_v47 }
0x1335   :  { %v2454_v21 = vsub.f32 1.5, %v2453_v0 }
0x1337   :  { %v2455_v56 = vmul.f32 %v3274_v43, %v2454_v21 }
0x1339   :  { %v2459_v7 = vsel %vm2458_vm12, %v3274_v43, %v2455_v56  ;;  %v2489_v56 = vld [vmem:[%s4969_s12 + $0x48] sm:$0xff] }
0x133a   :  { %v2470_v28 = vmul.f32 %v2459_v7, %v2446_v33 }
0x133c   :  { %v2473_v20 = vmul.f32 %v2472_v35, %v2470_v28  ;;  %v2485_v28 = vld [vmem:[%s4969_s12 + $0x28] sm:$0xff] }
0x133e   :  { %v2476_v37 = vadd.f32 %v2475_v42, %v2473_v20 }
0x1342   :  { %v2439_v49 = vpop.xlane.xlu2 %2438 }
0x1343   :  { %v2441_v58 = vmul.f32 %v2439_v49, %v4071_v38  ;;  %v4847_v49 = vld [vmem:[%s4969_s12 + $0x58] sm:$0xff] }
0x1344   :  { %v2602_v47 = vrot.slane %v4847_v49, 4 }
0x1345   :  { %v2445_v45 = vsel %vm51_vm10, %v2421_v23, %v2441_v58  ;;  %v2600_v23 = vrot.slane %v2490_v30, 4 }
0x1346   :  { %v2449_v29 = vadd.f32 1e-05, %v2445_v45 }
0x1347   :  { %v2603_v58 = vsel %vm263_vm3, %v2600_v23, %v2602_v47 }
0x1348   :  { %3275 = vrsqrt.f32 %v2449_v29  ;;  %vm2466_vm14 = vweird.f32 %v2449_v29  ;;  %2624 = vmatpush.msra.mxu2 %v2603_v58 }
0x1349   :  { %3277 = vrcp.f32 %v3346_v18 }
0x134a   :  { %v2014_v52 = vpop.xlane.xlu1 %2013  ;;  %v2535_v5 = vpop.permute.xlu2 %2534 }
0x134b   :  { %v2017_v53 = vmul.f32 %v2014_v52, %v4071_v38 }
0x134d   :  { %v2038_v61 = vsub.f32 %v4791_v55, %v2017_v53 }
0x134e   :  { %v3276_v57 = vpop.eup %3275 }
0x134f   :  { %v2461_v44 = vmul.f32 %v3276_v57, %v2449_v29  ;;  %v2041_v4 = vmul.f32 %v2038_v61, %v2038_v61  ;;  %vm2467_vm13 = vweird.f32 %v3276_v57  ;;  %v3278_v62 = vpop.eup %3277 }
0x1350   :  { %vm2468_vm15 = vmor %vm2466_vm14, %vm2467_vm13  ;;  %v2543_v31 = vmul.f32 80.0, %v3278_v62  ;;  %vm2547_vm5 = vweird.f32 %v3278_v62 }
0x1351   :  { %v2462_v27 = vmul.f32 %v3276_v57, %v2461_v44  ;;  %2049 = vrot.lane.b32.xlu1 %v2041_v4, %s3344_s23  ;;  %v2598_v44 = vrot.slane %v2489_v56, 4 }
0x1352   :  { %v1990_v8 = vpop.xlane.xlu1 %1989  ;;  %v2544_v16 = vsub.f32 1.0, %v2543_v31 }
0x1353   :  { %v2463_v12 = vmul.f32 0.5, %v2462_v27  ;;  %v1993_v19 = vmul.f32 %v1990_v8, %v4071_v38  ;;  %v2488_v27 = vld [vmem:[%s4969_s12 + $0x40] sm:$0xff]  ;;  %v2601_v8 = vsel %vm263_vm3, %v2598_v44, %v2600_v23 }
0x1354   :  { %v2545_v60 = vmul.f32 %v3278_v62, %v2544_v16  ;;  %2625 = vmatpush.msra.mxu2 %v2601_v8 }
0x1355   :  { %v2464_v50 = vsub.f32 1.5, %v2463_v12  ;;  %v2020_v14 = vsub.f32 %v4791_v55, %v1993_v19  ;;  %v4827_v2 = vsel %vm51_vm10, %v1993_v19, %v2017_v53  ;;  %v2594_v19 = vrot.slane %v2487_v15, 4 }
0x1356   :  { %v2546_v48 = vadd.f32 %v3278_v62, %v2545_v60 }
0x1357   :  { %v2465_v6 = vmul.f32 %v3276_v57, %v2464_v50  ;;  %v2023_v11 = vmul.f32 %v2020_v14, %v2020_v14  ;;  %v2592_v14 = vrot.slane %v2486_v32, 4 }
0x1358   :  { %v2548_v51 = vsel %vm2547_vm5, %v3278_v62, %v2546_v48 }
0x1359   :  { %v2469_v22 = vsel %vm2468_vm15, %v3276_v57, %v2465_v6  ;;  %v2030_v36 = vsel %vm881_vm8, %v2023_v11, 0.0  ;;  %v2483_v6 = vld [vmem:[%s4969_s12 + $0x18] sm:$0xff]  ;;  %v2595_v20 = vsel %vm263_vm3, %v2592_v14, %v2594_v19 }
0x135a   :  { %2031 = vadd.xlane.f32.xlu0 %v2030_v36  ;;  %v2471_v3 = vmul.f32 %v2469_v22, %v2447_v41  ;;  %v2590_v41 = vrot.slane %v2485_v28, 4  ;;  %v2482_v36 = vld [vmem:[%s4969_s12 + $0x10] sm:$0xff] }
0x135c   :  { %v2474_v40 = vmul.f32 %v2472_v35, %v2471_v3  ;;  %v2484_v35 = vld [vmem:[%s4969_s12 + $0x20] sm:$0xff]  ;;  %v2074_v3 = vsub.f32 %v4791_v55, %v4827_v2  ;;  %v2583_v2 = vrot.slane %v4773_v1, 4 }
0x135d   :  { %v2588_v22 = vrot.slane %v2484_v35, 4 }
0x135e   :  { %v2477_v24 = vadd.f32 %v2475_v42, %v2474_v40  ;;  %v2586_v42 = vrot.slane %v2483_v6, 4 }
0x1360   :  { %v2479_v25 = vsel %vm2478_vm0, %v2476_v37, %v2477_v24  ;;  %v2591_v24 = vsel %vm263_vm3, %v2588_v22, %v2590_v41  ;;  %v2589_v55 = vsel %vm263_vm3, %v2586_v42, %v2588_v22 }
0x1361   :  { %v2537_v17 = vsel %vm208_vm2, %v2479_v25, %v2535_v5  ;;  %v2593_v5 = vsel %vm263_vm3, %v2590_v41, %v2592_v14  ;;  %v2584_v25 = vrot.slane %v2482_v36, 4 }
0x1362   :  { %v2539_v34 = vsel %vm2538_vm4, %v2537_v17, 0.0 }
0x1363   :  { %2540 = vadd.xlane.f32.xlu2 %v2539_v34  ;;  %v2585_v16 = vsel %vm263_vm3, %v2583_v2, %v2584_v25 }
0x13c3   :  { %v2050_v9 = vpop.permute.xlu1 %2049 }
0x13c4   :  { %v2060_v39 = vsel %vm881_vm8, %v2050_v9, 0.0 }
0x13c5   :  { %2061 = vadd.xlane.f32.xlu0 %v2060_v39  ;;  %v2587_v39 = vsel %vm263_vm3, %v2584_v25, %v2586_v42 }
0x13cd   :  { %v2032_v45 = vpop.xlane.xlu0 %2031 }
0x13ce   :  { %v2035_v0 = vmul.f32 %v2032_v45, %v4071_v38 }
0x13d6   :  { %v2541_v63 = vpop.xlane.xlu2 %2540 }
0x13d7   :  { %v2549_v13 = vmul.f32 %v2548_v51, %v2541_v63 }
0x13d9   :  { %v4836_v46 = vsub.f32 %v2537_v17, %v2549_v13 }
0x13db   :  { %v2551_v43 = vmul.f32 %v4836_v46, %v4836_v46 }
0x13dd   :  { %v2552_v26 = vsel %vm2538_vm4, %v2551_v43, 0.0  ;;  %v3184_v43 = vld [vmem:[%s4970_s13 + $0x1] ss:$0 sm:$0xff] }
0x13de   :  { %2553 = vadd.xlane.f32.xlu1 %v2552_v26 }
0x1438   :  { %v2062_v29 = vpop.xlane.xlu0 %2061 }
0x1439   :  { %v2065_v52 = vmul.f32 %v2062_v29, %v4071_v38  ;;  %v2596_v38 = vrot.slane %v2488_v27, 4 }
0x143b   :  { %v2071_v21 = vsel %vm51_vm10, %v2035_v0, %v2065_v52  ;;  %v2599_v12 = vsel %vm263_vm3, %v2596_v38, %v2598_v44  ;;  %v2597_v50 = vsel %vm263_vm3, %v2594_v19, %v2596_v38 }
0x143c   :  { %v2077_v53 = vadd.f32 1e-05, %v2071_v21  ;;  %2626 = vmatpush.msra.mxu2 %v2599_v12 }
0x143e   :  { %3279 = vrsqrt.f32 %v2077_v53  ;;  %vm2104_vm10 = vweird.f32 %v2077_v53  ;;  %2627 = vmatpush.msra.mxu2 %v2597_v50 }
0x1440   :  { %2628 = vmatpush.msra.mxu2 %v2595_v20 }
0x1442   :  { %2629 = vmatpush.msra.mxu2 %v2593_v5 }
0x1444   :  { %v3280_v61 = vpop.eup %3279  ;;  %2630 = vmatpush.msra.mxu2 %v2591_v24 }
0x1445   :  { %v2099_v57 = vmul.f32 %v3280_v61, %v2077_v53  ;;  %vm2105_vm8 = vweird.f32 %v3280_v61 }
0x1446   :  { %vm2106_vm6 = vmor %vm2104_vm10, %vm2105_vm8  ;;  %2631 = vmatpush.msra.mxu2 %v2589_v55  ;;  %v2497_v55 = vld [vmem:[%s4969_s12 + $0x88] sm:$0xf] }
0x1447   :  { %v2100_v4 = vmul.f32 %v3280_v61, %v2099_v57 }
0x1448   :  { %2632 = vmatpush.msra.mxu2 %v2587_v39  ;;  %v2495_v39 = vld [vmem:[%s4969_s12 + $0x78] sm:$0xff] }
0x1449   :  { %v2101_v7 = vmul.f32 0.5, %v2100_v4 }
0x144a   :  { %2633 = vmatpush.msra.mxu2 %v2585_v16  ;;  %v2493_v16 = vld [vmem:[%s4969_s12 + $0x68] sm:$0xff] }
0x144b   :  { %v2102_v33 = vsub.f32 1.5, %v2101_v7 }
0x144d   :  { %v2103_v11 = vmul.f32 %v3280_v61, %v2102_v33 }
0x144f   :  { %v2107_v40 = vsel %vm2106_vm6, %v3280_v61, %v2103_v11  ;;  %vm2727_vm6 = vcmask 33792  }
0x1450   :  { %v2110_v37 = vmul.f32 %v2107_v40, %v2074_v3 }
0x1451   :  { %v2554_v17 = vpop.xlane.xlu1 %2553 }
0x1452   :  { %v2555_v34 = vmul.f32 %v2554_v17, %v2548_v51  ;;  %v2114_v18 = vmul.f32 %v4676_v54, %v2110_v37 }
0x1454   :  { %v2556_v62 = vadd.f32 1e-05, %v2555_v34  ;;  %v2118_v9 = vadd.f32 %v4681_v59, %v2114_v18  ;;  %v3183_v59 = vld [vmem:[%s4970_s13] ss:$0 sm:$0xff] }
0x1455   :  { %v2496_v18 = vld [vmem:[%s4969_s12 + $0x80] sm:$0xff] }
0x1456   :  { %3281 = vrsqrt.f32 %v2556_v62  ;;  %v2129_v31 = vpack.c.bf16 %v2118_v9, %v2118_v9  ;;  %vm2563_vm9 = vweird.f32 %v2556_v62  ;;  %v2695_v9 = vrot.slane %v2497_v55, 4 }
0x1458   :  { %3052 = vmatmul.msk.bf16.gmra.mxu3 %vm208_vm2, %v2129_v31  ;;  %vm2614_vm2 = vcmask 654336   ;;  %v2494_v31 = vld [vmem:[%s4969_s12 + $0x70] sm:$0xff] }
0x145c   :  { %v3282_v54 = vpop.eup %3281 }
0x145d   :  { %v2558_v60 = vmul.f32 %v3282_v54, %v2556_v62  ;;  %vm2564_vm1 = vweird.f32 %v3282_v54  ;;  %v2693_v62 = vrot.slane %v2496_v18, 4 }
0x145e   :  { %vm2565_vm7 = vmor %vm2563_vm9, %vm2564_vm1 }
0x145f   :  { %v2559_v48 = vmul.f32 %v3282_v54, %v2558_v60 }
0x1461   :  { %v2560_v51 = vmul.f32 0.5, %v2559_v48  ;;  %v2691_v48 = vrot.slane %v2495_v39, 4 }
0x1463   :  { %v2561_v1 = vsub.f32 1.5, %v2560_v51  ;;  %v2689_v51 = vrot.slane %v2494_v31, 4 }
0x1465   :  { %v2562_v63 = vmul.f32 %v3282_v54, %v2561_v1  ;;  %v2492_v1 = vld [vmem:[%s4969_s12 + $0x60] sm:$0xff] }
0x1467   :  { %v2566_v13 = vsel %vm2565_vm7, %v3282_v54, %v2562_v63 }
0x1468   :  { %v2567_v26 = vmul.f32 %v2566_v13, %v4836_v46  ;;  %v3185_v46 = vld [vmem:[%s4970_s13 + $0x2] ss:$0 sm:$0xff]  ;;  %v2687_v13 = vrot.slane %v2493_v16, 4 }
0x146a   :  { %v2569_v30 = vmul.f32 %v3183_v59, %v2567_v26  ;;  %v2696_v59 = vsel %vm263_vm3, %v2693_v62, %v2695_v9 }
0x146b   :  { %2717 = vmatpush.msrb.mxu1 %v2696_v59 }
0x146c   :  { %v2571_v23 = vadd.f32 %v3184_v43, %v2569_v30  ;;  %v2694_v30 = vsel %vm263_vm3, %v2691_v48, %v2693_v62 }
0x146d   :  { %2718 = vmatpush.msrb.mxu1 %v2694_v30 }
0x146e   :  { %3103 = vmatmul.msk.f32.vlgmr.msra.gmra.mxu2 %vm2614_vm2, %v2571_v23 }
0x14db   :  { %v2175_v58 = vpop.f32.mrf.mxu3 }
0x14dc   :  { %v4905_v45 = vadd.f32 %v2175_v58, %v4694_v10 }
0x14de   :  { %v4908_v29 = vmul.f32 0.70710677, %v4905_v45 }
0x14e0   :  { %v2187_v0 = vand.u32 2147483647, %v4908_v29  ;;  %vm2286_vm8 = vcmp.ge.f32.partialorder %v4908_v29, 0.0 }
0x14e2   :  { %v2190_v52 = vmul.f32 0.3275911, %v2187_v0  ;;  %v2268_v19 = vsub.f32 0.0, %v2187_v0 }
0x14e3   :  { %v2177_v21 = vpop.f32.mrf.mxu3 }
0x14e4   :  { %v2193_v53 = vadd.f32 1.0, %v2190_v52  ;;  %v2271_v35 = vmul.f32 %v2268_v19, %v2187_v0  ;;  %v2692_v0 = vsel %vm263_vm3, %v2689_v51, %v2691_v48  ;;  %v2685_v52 = vrot.slane %v2492_v1, 4 }
0x14e5   :  { %2719 = vmatpush.msrb.mxu1 %v2692_v0 }
0x14e6   :  { %3283 = vrcp.f32 %v2193_v53  ;;  %v2235_v44 = vand.u32 2147483648, %v2193_v53  ;;  %v2233_v10 = vand.u32 2147483647, %v2193_v53  ;;  %vm2229_vm12 = vweird.f32 %v2193_v53 }
0x14e7   :  { %v2276_v22 = vmul.f32 1.442695, %v2271_v35 }
0x14e8   :  { %v2236_v7 = vor.u32 1.1754944e-38, %v2235_v44  ;;  %vm2234_vm14 = vcmp.eq.f32.partialorder %v2233_v10, 8.507059e+37  ;;  %v2688_v10 = vsel %vm263_vm3, %v2685_v52, %v2687_v13 }
0x14ec   :  { %v3284_v61 = vpop.eup %3283 }
0x14ed   :  { %v2225_v57 = vmul.f32 %v3284_v61, %v2193_v53  ;;  %vm2230_vm11 = vweird.f32 %v3284_v61 }
0x14ee   :  { %vm2231_vm13 = vmor %vm2229_vm12, %vm2230_vm11 }
0x14ef   :  { %v2226_v56 = vsub.f32 1.0, %v2225_v57 }
0x14f1   :  { %v2227_v4 = vmul.f32 %v3284_v61, %v2226_v56  ;;  %v2635_v27 = vpop.f32.mrf.mxu2  ;;  %v2181_v56 = vmul.f32 0.5, %v4905_v45 }
0x14f2   :  { %v4914_v8 = vadd.f32 %v3185_v46, %v2635_v27 }
0x14f3   :  { %v2228_v38 = vadd.f32 %v3284_v61, %v2227_v4 }
0x14f4   :  { %v4917_v15 = vmul.f32 0.70710677, %v4914_v8 }
0x14f5   :  { %v2232_v12 = vsel %vm2231_vm13, %v3284_v61, %v2228_v38  ;;  %v2690_v61 = vsel %vm263_vm3, %v2687_v13, %v2689_v51 }
0x14f6   :  { %v2640_v33 = vand.u32 2147483647, %v4917_v15  ;;  %v2237_v32 = vsel %vm2234_vm14, %v2236_v7, %v2232_v12  ;;  %2720 = vmatpush.msrb.mxu1 %v2690_v61  ;;  %v2686_v7 = vsel %vm263_vm3, %v2602_v47, %v2685_v52  ;;  %vm2673_vm10 = vcmp.ge.f32.partialorder %v4917_v15, 0.0 }
0x14f7   :  { %v2241_v50 = vmul.f32 1.0614054, %v2237_v32  ;;  %v2638_v47 = vmul.f32 0.5, %v4914_v8  ;;  %vm2703_vm3 = vcmask 392192  }
0x14f8   :  { %v2641_v14 = vmul.f32 0.3275911, %v2640_v33  ;;  %v2667_v58 = vsub.f32 0.0, %v2640_v33  ;;  %2721 = vmatpush.msrb.mxu1 %v2688_v10 }
0x14f9   :  { %v2244_v28 = vadd.f32 -1.4531521, %v2241_v50 }
0x14fa   :  { %v2642_v6 = vadd.f32 1.0, %v2641_v14  ;;  %v2668_v44 = vmul.f32 %v2667_v58, %v2640_v33  ;;  %2722 = vmatpush.msrb.mxu1 %v2686_v7 }
0x14fb   :  { %v2247_v11 = vmul.f32 %v2244_v28, %v2237_v32 }
0x14fc   :  { %3285 = vrcp.f32 %v2642_v6  ;;  %v2654_v24 = vand.u32 2147483648, %v2642_v6  ;;  %v2652_v17 = vand.u32 2147483647, %v2642_v6  ;;  %vm2648_vm0 = vweird.f32 %v2642_v6 }
0x14fd   :  { %v2250_v41 = vadd.f32 1.4214138, %v2247_v11  ;;  %3287 = vpow2.f32 %v2276_v22  ;;  %v2669_v29 = vmul.f32 1.442695, %v2668_v44 }
0x14fe   :  { %v2655_v63 = vor.u32 1.1754944e-38, %v2654_v24  ;;  %vm2653_vm5 = vcmp.eq.f32.partialorder %v2652_v17, 8.507059e+37 }
0x14ff   :  { %v2253_v36 = vmul.f32 %v2250_v41, %v2237_v32  ;;  %3289 = vpow2.f32 %v2669_v29 }
0x1501   :  { %v2256_v3 = vadd.f32 -0.28449672, %v2253_v36 }
0x1502   :  { %v3286_v20 = vpop.eup %3285 }
0x1503   :  { %v2644_v42 = vmul.f32 %v3286_v20, %v2642_v6  ;;  %v2259_v40 = vmul.f32 %v2256_v3, %v2237_v32  ;;  %vm2649_vm15 = vweird.f32 %v3286_v20  ;;  %v3288_v2 = vpop.eup %3287 }
0x1504   :  { %vm2650_vm4 = vmor %vm2648_vm0, %vm2649_vm15 }
0x1505   :  { %v2645_v5 = vsub.f32 1.0, %v2644_v42  ;;  %v2262_v37 = vadd.f32 0.2548296, %v2259_v40  ;;  %v3290_v28 = vpop.eup %3289 }
0x1507   :  { %v2646_v25 = vmul.f32 %v3286_v20, %v2645_v5  ;;  %v2265_v34 = vmul.f32 %v2262_v37, %v2237_v32 }
0x1509   :  { %v2647_v54 = vadd.f32 %v3286_v20, %v2646_v25  ;;  %v2280_v60 = vmul.f32 %v3288_v2, %v2265_v34 }
0x150b   :  { %v2651_v43 = vsel %vm2650_vm4, %v3286_v20, %v2647_v54  ;;  %v2283_v26 = vsub.f32 1.0, %v2280_v60  ;;  %v3186_v20 = vld [vmem:[%s4970_s13 + $0x3] ss:$0 sm:$0xff] }
0x150c   :  { %v2656_v23 = vsel %vm2653_vm5, %v2655_v63, %v2651_v43 }
0x150d   :  { %v2658_v21 = vmul.f32 1.0614054, %v2656_v23  ;;  %v2289_v53 = vsub.f32 0.0, %v2283_v26 }
0x150f   :  { %v2659_v57 = vadd.f32 -1.4531521, %v2658_v21  ;;  %v2292_v46 = vsel %vm2286_vm8, %v2283_v26, %v2289_v53 }
0x1510   :  { %v2295_v4 = vadd.f32 1.0, %v2292_v46 }
0x1511   :  { %v2660_v27 = vmul.f32 %v2659_v57, %v2656_v23 }
0x1512   :  { %v2298_v38 = vmul.f32 %v2295_v4, %v2181_v56 }
0x1513   :  { %v2661_v12 = vadd.f32 1.4214138, %v2660_v27 }
0x1514   :  { %v2317_v19 = vpack.c.bf16 %v2298_v38, %v2298_v38 }
0x1515   :  { %v2662_v32 = vmul.f32 %v2661_v12, %v2656_v23 }
0x1516   :  { %2380 = vmatmul.bf16.gmra.mxu0 %v2317_v19 }
0x1517   :  { %v2663_v50 = vadd.f32 -0.28449672, %v2662_v32 }
0x1519   :  { %v2664_v45 = vmul.f32 %v2663_v50, %v2656_v23 }
0x151b   :  { %v2665_v33 = vadd.f32 0.2548296, %v2664_v45 }
0x151d   :  { %v2666_v14 = vmul.f32 %v2665_v33, %v2656_v23 }
0x151f   :  { %v2671_v35 = vmul.f32 %v3290_v28, %v2666_v14 }
0x1521   :  { %v2672_v6 = vsub.f32 1.0, %v2671_v35 }
0x1523   :  { %v2674_v11 = vsub.f32 0.0, %v2672_v6 }
0x1525   :  { %v2675_v49 = vsel %vm2673_vm10, %v2672_v6, %v2674_v11 }
0x1526   :  { %v2676_v41 = vadd.f32 1.0, %v2675_v49 }
0x1528   :  { %v2677_v22 = vmul.f32 %v2676_v41, %v2638_v47 }
0x152a   :  { %3104 = vmatmul.msk.f32.vlgmr.msrb.gmra.mxu1 %vm2703_vm3, %v2677_v22 }
0x1593   :  { %v2381_v36 = vpop.f32.mrf.mxu0 }
0x159b   :  { %v2382_v3 = vpop.f32.mrf.mxu0 }
0x15a7   :  { %v2724_v15 = vpop.f32.mrf.mxu1 }
0x15a8   :  { %v2725_v42 = vadd.f32 %v3186_v20, %v2724_v15 }
0x15aa   :  { %2728 = vst.msk [vmem:[#allocation2] sm:$0x3] %vm2727_vm6, %v2725_v42 }
0x15ab   :  { %2739 = dma.vmem_to_hbm [thread:$0]  %s2735_s24, 32, %s2737_s0, [#allocation3]  }
0x15ac   :  { %3341 = dma.done.wait [#allocation3], 32  }
0x15ad   :  { %3342 = vsyncadd [#allocation3], 4294967264 }
0x15ae   :  { %2744 = vsyncpa [#allocation3], 1 }

</bundles_post_ra>
